<compile_context>
chip_gen: v7x
topology: tpu7x:2x2x1
jax: 0.10.0
libtpu: 0.0.40
codegen_flags: <defaults>
</compile_context>

<pallas_src>
import functools

import jax
import jax.numpy as jnp
from jax.experimental import pallas as pl
from jax.experimental.pallas import tpu as pltpu


def _make_deconv_kernel(KH, KW, C_in, Wp, Mpp):
    """Kernel closure over static geometry."""

    def kernel(x_ref, w_ref, b_ref, o_ref, patch_ref):
        # x_ref:     (1, C_in, Lxp)  flat dilated+padded input, row stride = Wp
        # w_ref:     (CO_P, K)       flattened, spatially-flipped weight, K = KH*KW*C_in
        # b_ref:     (CO_P, 1)       bias (zero rows in the channel padding)
        # o_ref:     (1, CO_P, Mpp)  output, column m = oh*Wp + ow  (lane-dense)
        # patch_ref: (K, Mpp)        VMEM scratch: in-kernel im2col tile
        for kh in range(KH):
            for kw in range(KW):
                tap = kh * KW + kw
                off = kh * Wp + kw        # flat-stride trick: contiguous lane slice
                patch_ref[tap * C_in:(tap + 1) * C_in, :] = x_ref[0, :, off:off + Mpp]
        out = jnp.dot(w_ref[...], patch_ref[...], preferred_element_type=jnp.float32)
        o_ref[0] = (out + b_ref[...]).astype(o_ref.dtype)

    return kernel


def deconv1_forward(x_nchw, weight, bias, *, stride=2, padding=3):
    """ConvTranspose2d forward matching PyTorch semantics.

    x_nchw : (N, C_in, H, W)        float32
    weight : (C_in, C_out, KH, KW)  float32  (PyTorch ConvTranspose2d layout)
    bias   : (C_out,)               float32
    returns: (N, C_out, H_out, W_out), H_out = (H-1)*stride - 2*padding + KH
    """
    N, C_in, H, W = x_nchw.shape
    _, C_out, KH, KW = weight.shape
    # assumes padding <= K-1 and output_padding == 0 (true for DeConv1)
    pad_h, pad_w = KH - 1 - padding, KW - 1 - padding
    Hd, Wd = (H - 1) * stride + 1, (W - 1) * stride + 1
    Hp, Wp = Hd + 2 * pad_h, Wd + 2 * pad_w
    H_out, W_out = Hp - KH + 1, Wp - KW + 1          # == (H-1)*s - 2p + K
    K = KH * KW * C_in
    CO_P = max(8, ((C_out + 7) // 8) * 8)            # pad channels -> unmasked stores
    Mpp = ((H_out * Wp + 127) // 128) * 128          # lane-dense matmul width
    max_off = (KH - 1) * Wp + (KW - 1)
    Lxp = ((max(Hp * Wp, max_off + Mpp) + 127) // 128) * 128

    # ---- tiny plain-JAX layout glue (~25 KB / item, traced once under jit) ----
    # stride dilation via interleave-reshape (no strided scatter)
    if stride > 1:
        zw = jnp.zeros((N, C_in, H, W, stride - 1), x_nchw.dtype)
        xd = jnp.concatenate([x_nchw[..., None], zw], axis=-1)
        xd = xd.reshape(N, C_in, H, W * stride)[..., :Wd]
        zh = jnp.zeros((N, C_in, H, stride - 1, Wd), x_nchw.dtype)
        xd = jnp.concatenate([xd[:, :, :, None, :], zh], axis=3)
        xd = xd.reshape(N, C_in, H * stride, Wd)[:, :, :Hd, :]
    else:
        xd = x_nchw
    x_pad = jnp.pad(xd, ((0, 0), (0, 0), (pad_h, pad_h), (pad_w, pad_w)))
    x_flat = x_pad.reshape(N, C_in, Hp * Wp)
    x_flat = jnp.pad(x_flat, ((0, 0), (0, 0), (0, Lxp - Hp * Wp)))

    # flattened, spatially-flipped kernel, (CO_P, K); K ordering = (kh, kw, ci)
    w_flip = jnp.transpose(weight[:, :, ::-1, ::-1], (2, 3, 0, 1))   # (KH,KW,C_in,C_out)
    w2d = w_flip.reshape(K, C_out).T                                 # (C_out, K)
    w2d = jnp.pad(w2d, ((0, CO_P - C_out), (0, 0)))                  # (CO_P, K)
    b2 = jnp.pad(bias.reshape(C_out, 1), ((0, CO_P - C_out), (0, 0)))

    kernel = _make_deconv_kernel(KH, KW, C_in, Wp, Mpp)

    out_p = pl.pallas_call(
        kernel,
        out_shape=jax.ShapeDtypeStruct((N, CO_P, Mpp), x_nchw.dtype),
        grid_spec=pltpu.PrefetchScalarGridSpec(
            num_scalar_prefetch=0,
            grid=(N,),
            in_specs=[
                pl.BlockSpec((1, C_in, Lxp), lambda n: (n, 0, 0)),
                pl.BlockSpec((CO_P, K), lambda n: (0, 0)),
                pl.BlockSpec((CO_P, 1), lambda n: (0, 0)),
            ],
            out_specs=pl.BlockSpec((1, CO_P, Mpp), lambda n: (n, 0, 0)),
            scratch_shapes=[pltpu.VMEM((K, Mpp), jnp.float32)],
        ),
        compiler_params=pltpu.CompilerParams(
            dimension_semantics=("parallel",),
        ),
    )(x_flat, w2d, b2)

    # drop channel padding, drop garbage columns (ow >= W_out), un-stride rows
    out = out_p[:, :C_out, :H_out * Wp].reshape(N, C_out, H_out, Wp)[..., :W_out]
    return out


if __name__ == "__main__":
    # Small shapes consistent with the module: DeConv1(in_channel=4, out_channel=3)
    N, C_in, C_out, H, W = 2, 4, 3, 16, 16
    KH = KW = 7
    STRIDE, PADDING = 2, 3

    key = jax.random.PRNGKey(0)
    k1, k2, k3 = jax.random.split(key, 3)
    x = jax.random.normal(k1, (N, C_in, H, W), jnp.float32)
    weight = 0.1 * jax.random.normal(k2, (C_in, C_out, KH, KW), jnp.float32)
    bias = jax.random.uniform(k3, (C_out,), jnp.float32, minval=-0.1, maxval=0.1)

    fwd = jax.jit(functools.partial(deconv1_forward, stride=STRIDE, padding=PADDING))
    out = jax.block_until_ready(fwd(x, weight, bias))

    # Reference: ConvTranspose2d == conv_general_dilated with lhs_dilation + flipped kernel
    w_oihw = jnp.transpose(weight[:, :, ::-1, ::-1], (1, 0, 2, 3))   # (C_out, C_in, KH, KW)
    ref = jax.lax.conv_general_dilated(
        x, w_oihw, window_strides=(1, 1),
        padding=((KH - 1 - PADDING,) * 2, (KW - 1 - PADDING,) * 2),
        lhs_dilation=(STRIDE, STRIDE),
        dimension_numbers=("NCHW", "OIHW", "NCHW"),
    ) + bias.reshape(1, C_out, 1, 1)

    H_out = (H - 1) * STRIDE - 2 * PADDING + KH
    W_out = (W - 1) * STRIDE - 2 * PADDING + KW
    assert out.shape == (N, C_out, H_out, W_out), out.shape
    assert jnp.allclose(out, ref, atol=1e-4, rtol=1e-4)
    print("KERNEL_OK")
</pallas_src>

<mosaic_0001>
module attributes {stable_mosaic.version = 11 : i64} {
  func.func @kernel(%arg0: i32, %arg1: memref<1x4x1408xf32, #tpu.memory_space<vmem>>, %arg2: memref<8x196xf32, #tpu.memory_space<vmem>>, %arg3: memref<8x1xf32, #tpu.memory_space<vmem>>, %arg4: memref<1x8x1152xf32, #tpu.memory_space<vmem>>, %arg5: memref<196x1152xf32, #tpu.memory_space<vmem>>) attributes {dimension_semantics = [#tpu.dimension_semantics<parallel>], iteration_bounds = array<i64: 2>, scalar_prefetch = 0 : i64, scratch_operands = 1 : i64, tpu.core_type = #tpu.core_type<tc>, window_params = [{transform_indices = @transform_0, window_bounds = array<i64: 1, 4, 1408>}, {pipeline_mode = #tpu.pipeline_mode<synchronous>, transform_indices = @transform_1, window_bounds = array<i64: 8, 196>}, {pipeline_mode = #tpu.pipeline_mode<synchronous>, transform_indices = @transform_2, window_bounds = array<i64: 8, 1>}, {transform_indices = @transform_3, window_bounds = array<i64: 1, 8, 1152>}]} {
    %c0 = arith.constant 0 : index
    %c0_0 = arith.constant 0 : index
    %c0_1 = arith.constant 0 : index
    %0 = vector.load %arg1[%c0, %c0_0, %c0_1] : memref<1x4x1408xf32, #tpu.memory_space<vmem>>, vector<1x4x1152xf32>
    %1 = vector.shape_cast %0 : vector<1x4x1152xf32> to vector<4x1152xf32>
    %c0_2 = arith.constant 0 : index
    %c0_3 = arith.constant 0 : index
    %2 = vector.load %arg5[%c0_2, %c0_3] : memref<196x1152xf32, #tpu.memory_space<vmem>>, vector<4x1152xf32>
    tpu.vector_store %arg5[%c0_2, %c0_3], %1 {strides = array<i32>} : memref<196x1152xf32, #tpu.memory_space<vmem>>, vector<4x1152xf32>,
    %c0_4 = arith.constant 0 : index
    %c0_5 = arith.constant 0 : index
    %c1 = arith.constant 1 : index
    %3 = vector.load %arg1[%c0_4, %c0_5, %c1] : memref<1x4x1408xf32, #tpu.memory_space<vmem>>, vector<1x4x1152xf32>
    %4 = vector.shape_cast %3 : vector<1x4x1152xf32> to vector<4x1152xf32>
    %c4 = arith.constant 4 : index
    %c0_6 = arith.constant 0 : index
    %5 = vector.load %arg5[%c4, %c0_6] : memref<196x1152xf32, #tpu.memory_space<vmem>>, vector<4x1152xf32>
    tpu.vector_store %arg5[%c4, %c0_6], %4 {strides = array<i32>} : memref<196x1152xf32, #tpu.memory_space<vmem>>, vector<4x1152xf32>,
    %c0_7 = arith.constant 0 : index
    %c0_8 = arith.constant 0 : index
    %c2 = arith.constant 2 : index
    %6 = vector.load %arg1[%c0_7, %c0_8, %c2] : memref<1x4x1408xf32, #tpu.memory_space<vmem>>, vector<1x4x1152xf32>
    %7 = vector.shape_cast %6 : vector<1x4x1152xf32> to vector<4x1152xf32>
    %c8 = arith.constant 8 : index
    %c0_9 = arith.constant 0 : index
    %8 = vector.load %arg5[%c8, %c0_9] : memref<196x1152xf32, #tpu.memory_space<vmem>>, vector<4x1152xf32>
    tpu.vector_store %arg5[%c8, %c0_9], %7 {strides = array<i32>} : memref<196x1152xf32, #tpu.memory_space<vmem>>, vector<4x1152xf32>,
    %c0_10 = arith.constant 0 : index
    %c0_11 = arith.constant 0 : index
    %c3 = arith.constant 3 : index
    %9 = vector.load %arg1[%c0_10, %c0_11, %c3] : memref<1x4x1408xf32, #tpu.memory_space<vmem>>, vector<1x4x1152xf32>
    %10 = vector.shape_cast %9 : vector<1x4x1152xf32> to vector<4x1152xf32>
    %c12 = arith.constant 12 : index
    %c0_12 = arith.constant 0 : index
    %11 = vector.load %arg5[%c12, %c0_12] : memref<196x1152xf32, #tpu.memory_space<vmem>>, vector<4x1152xf32>
    tpu.vector_store %arg5[%c12, %c0_12], %10 {strides = array<i32>} : memref<196x1152xf32, #tpu.memory_space<vmem>>, vector<4x1152xf32>,
    %c0_13 = arith.constant 0 : index
    %c0_14 = arith.constant 0 : index
    %c4_15 = arith.constant 4 : index
    %12 = vector.load %arg1[%c0_13, %c0_14, %c4_15] : memref<1x4x1408xf32, #tpu.memory_space<vmem>>, vector<1x4x1152xf32>
    %13 = vector.shape_cast %12 : vector<1x4x1152xf32> to vector<4x1152xf32>
    %c16 = arith.constant 16 : index
    %c0_16 = arith.constant 0 : index
    %14 = vector.load %arg5[%c16, %c0_16] : memref<196x1152xf32, #tpu.memory_space<vmem>>, vector<4x1152xf32>
    tpu.vector_store %arg5[%c16, %c0_16], %13 {strides = array<i32>} : memref<196x1152xf32, #tpu.memory_space<vmem>>, vector<4x1152xf32>,
    %c0_17 = arith.constant 0 : index
    %c0_18 = arith.constant 0 : index
    %c5 = arith.constant 5 : index
    %15 = vector.load %arg1[%c0_17, %c0_18, %c5] : memref<1x4x1408xf32, #tpu.memory_space<vmem>>, vector<1x4x1152xf32>
    %16 = vector.shape_cast %15 : vector<1x4x1152xf32> to vector<4x1152xf32>
    %c20 = arith.constant 20 : index
    %c0_19 = arith.constant 0 : index
    %17 = vector.load %arg5[%c20, %c0_19] : memref<196x1152xf32, #tpu.memory_space<vmem>>, vector<4x1152xf32>
    tpu.vector_store %arg5[%c20, %c0_19], %16 {strides = array<i32>} : memref<196x1152xf32, #tpu.memory_space<vmem>>, vector<4x1152xf32>,
    %c0_20 = arith.constant 0 : index
    %c0_21 = arith.constant 0 : index
    %c6 = arith.constant 6 : index
    %18 = vector.load %arg1[%c0_20, %c0_21, %c6] : memref<1x4x1408xf32, #tpu.memory_space<vmem>>, vector<1x4x1152xf32>
    %19 = vector.shape_cast %18 : vector<1x4x1152xf32> to vector<4x1152xf32>
    %c24 = arith.constant 24 : index
    %c0_22 = arith.constant 0 : index
    %20 = vector.load %arg5[%c24, %c0_22] : memref<196x1152xf32, #tpu.memory_space<vmem>>, vector<4x1152xf32>
    tpu.vector_store %arg5[%c24, %c0_22], %19 {strides = array<i32>} : memref<196x1152xf32, #tpu.memory_space<vmem>>, vector<4x1152xf32>,
    %c0_23 = arith.constant 0 : index
    %c0_24 = arith.constant 0 : index
    %c37 = arith.constant 37 : index
    %21 = vector.load %arg1[%c0_23, %c0_24, %c37] : memref<1x4x1408xf32, #tpu.memory_space<vmem>>, vector<1x4x1152xf32>
    %22 = vector.shape_cast %21 : vector<1x4x1152xf32> to vector<4x1152xf32>
    %c28 = arith.constant 28 : index
    %c0_25 = arith.constant 0 : index
    %23 = vector.load %arg5[%c28, %c0_25] : memref<196x1152xf32, #tpu.memory_space<vmem>>, vector<4x1152xf32>
    tpu.vector_store %arg5[%c28, %c0_25], %22 {strides = array<i32>} : memref<196x1152xf32, #tpu.memory_space<vmem>>, vector<4x1152xf32>,
    %c0_26 = arith.constant 0 : index
    %c0_27 = arith.constant 0 : index
    %c38 = arith.constant 38 : index
    %24 = vector.load %arg1[%c0_26, %c0_27, %c38] : memref<1x4x1408xf32, #tpu.memory_space<vmem>>, vector<1x4x1152xf32>
    %25 = vector.shape_cast %24 : vector<1x4x1152xf32> to vector<4x1152xf32>
    %c32 = arith.constant 32 : index
    %c0_28 = arith.constant 0 : index
    %26 = vector.load %arg5[%c32, %c0_28] : memref<196x1152xf32, #tpu.memory_space<vmem>>, vector<4x1152xf32>
    tpu.vector_store %arg5[%c32, %c0_28], %25 {strides = array<i32>} : memref<196x1152xf32, #tpu.memory_space<vmem>>, vector<4x1152xf32>,
    %c0_29 = arith.constant 0 : index
    %c0_30 = arith.constant 0 : index
    %c39 = arith.constant 39 : index
    %27 = vector.load %arg1[%c0_29, %c0_30, %c39] : memref<1x4x1408xf32, #tpu.memory_space<vmem>>, vector<1x4x1152xf32>
    %28 = vector.shape_cast %27 : vector<1x4x1152xf32> to vector<4x1152xf32>
    %c36 = arith.constant 36 : index
    %c0_31 = arith.constant 0 : index
    %29 = vector.load %arg5[%c36, %c0_31] : memref<196x1152xf32, #tpu.memory_space<vmem>>, vector<4x1152xf32>
    tpu.vector_store %arg5[%c36, %c0_31], %28 {strides = array<i32>} : memref<196x1152xf32, #tpu.memory_space<vmem>>, vector<4x1152xf32>,
    %c0_32 = arith.constant 0 : index
    %c0_33 = arith.constant 0 : index
    %c40 = arith.constant 40 : index
    %30 = vector.load %arg1[%c0_32, %c0_33, %c40] : memref<1x4x1408xf32, #tpu.memory_space<vmem>>, vector<1x4x1152xf32>
    %31 = vector.shape_cast %30 : vector<1x4x1152xf32> to vector<4x1152xf32>
    %c40_34 = arith.constant 40 : index
    %c0_35 = arith.constant 0 : index
    %32 = vector.load %arg5[%c40_34, %c0_35] : memref<196x1152xf32, #tpu.memory_space<vmem>>, vector<4x1152xf32>
    tpu.vector_store %arg5[%c40_34, %c0_35], %31 {strides = array<i32>} : memref<196x1152xf32, #tpu.memory_space<vmem>>, vector<4x1152xf32>,
    %c0_36 = arith.constant 0 : index
    %c0_37 = arith.constant 0 : index
    %c41 = arith.constant 41 : index
    %33 = vector.load %arg1[%c0_36, %c0_37, %c41] : memref<1x4x1408xf32, #tpu.memory_space<vmem>>, vector<1x4x1152xf32>
    %34 = vector.shape_cast %33 : vector<1x4x1152xf32> to vector<4x1152xf32>
    %c44 = arith.constant 44 : index
    %c0_38 = arith.constant 0 : index
    %35 = vector.load %arg5[%c44, %c0_38] : memref<196x1152xf32, #tpu.memory_space<vmem>>, vector<4x1152xf32>
    tpu.vector_store %arg5[%c44, %c0_38], %34 {strides = array<i32>} : memref<196x1152xf32, #tpu.memory_space<vmem>>, vector<4x1152xf32>,
    %c0_39 = arith.constant 0 : index
    %c0_40 = arith.constant 0 : index
    %c42 = arith.constant 42 : index
    %36 = vector.load %arg1[%c0_39, %c0_40, %c42] : memref<1x4x1408xf32, #tpu.memory_space<vmem>>, vector<1x4x1152xf32>
    %37 = vector.shape_cast %36 : vector<1x4x1152xf32> to vector<4x1152xf32>
    %c48 = arith.constant 48 : index
    %c0_41 = arith.constant 0 : index
    %38 = vector.load %arg5[%c48, %c0_41] : memref<196x1152xf32, #tpu.memory_space<vmem>>, vector<4x1152xf32>
    tpu.vector_store %arg5[%c48, %c0_41], %37 {strides = array<i32>} : memref<196x1152xf32, #tpu.memory_space<vmem>>, vector<4x1152xf32>,
    %c0_42 = arith.constant 0 : index
    %c0_43 = arith.constant 0 : index
    %c43 = arith.constant 43 : index
    %39 = vector.load %arg1[%c0_42, %c0_43, %c43] : memref<1x4x1408xf32, #tpu.memory_space<vmem>>, vector<1x4x1152xf32>
    %40 = vector.shape_cast %39 : vector<1x4x1152xf32> to vector<4x1152xf32>
    %c52 = arith.constant 52 : index
    %c0_44 = arith.constant 0 : index
    %41 = vector.load %arg5[%c52, %c0_44] : memref<196x1152xf32, #tpu.memory_space<vmem>>, vector<4x1152xf32>
    tpu.vector_store %arg5[%c52, %c0_44], %40 {strides = array<i32>} : memref<196x1152xf32, #tpu.memory_space<vmem>>, vector<4x1152xf32>,
    %c0_45 = arith.constant 0 : index
    %c0_46 = arith.constant 0 : index
    %c74 = arith.constant 74 : index
    %42 = vector.load %arg1[%c0_45, %c0_46, %c74] : memref<1x4x1408xf32, #tpu.memory_space<vmem>>, vector<1x4x1152xf32>
    %43 = vector.shape_cast %42 : vector<1x4x1152xf32> to vector<4x1152xf32>
    %c56 = arith.constant 56 : index
    %c0_47 = arith.constant 0 : index
    %44 = vector.load %arg5[%c56, %c0_47] : memref<196x1152xf32, #tpu.memory_space<vmem>>, vector<4x1152xf32>
    tpu.vector_store %arg5[%c56, %c0_47], %43 {strides = array<i32>} : memref<196x1152xf32, #tpu.memory_space<vmem>>, vector<4x1152xf32>,
    %c0_48 = arith.constant 0 : index
    %c0_49 = arith.constant 0 : index
    %c75 = arith.constant 75 : index
    %45 = vector.load %arg1[%c0_48, %c0_49, %c75] : memref<1x4x1408xf32, #tpu.memory_space<vmem>>, vector<1x4x1152xf32>
    %46 = vector.shape_cast %45 : vector<1x4x1152xf32> to vector<4x1152xf32>
    %c60 = arith.constant 60 : index
    %c0_50 = arith.constant 0 : index
    %47 = vector.load %arg5[%c60, %c0_50] : memref<196x1152xf32, #tpu.memory_space<vmem>>, vector<4x1152xf32>
    tpu.vector_store %arg5[%c60, %c0_50], %46 {strides = array<i32>} : memref<196x1152xf32, #tpu.memory_space<vmem>>, vector<4x1152xf32>,
    %c0_51 = arith.constant 0 : index
    %c0_52 = arith.constant 0 : index
    %c76 = arith.constant 76 : index
    %48 = vector.load %arg1[%c0_51, %c0_52, %c76] : memref<1x4x1408xf32, #tpu.memory_space<vmem>>, vector<1x4x1152xf32>
    %49 = vector.shape_cast %48 : vector<1x4x1152xf32> to vector<4x1152xf32>
    %c64 = arith.constant 64 : index
    %c0_53 = arith.constant 0 : index
    %50 = vector.load %arg5[%c64, %c0_53] : memref<196x1152xf32, #tpu.memory_space<vmem>>, vector<4x1152xf32>
    tpu.vector_store %arg5[%c64, %c0_53], %49 {strides = array<i32>} : memref<196x1152xf32, #tpu.memory_space<vmem>>, vector<4x1152xf32>,
    %c0_54 = arith.constant 0 : index
    %c0_55 = arith.constant 0 : index
    %c77 = arith.constant 77 : index
    %51 = vector.load %arg1[%c0_54, %c0_55, %c77] : memref<1x4x1408xf32, #tpu.memory_space<vmem>>, vector<1x4x1152xf32>
    %52 = vector.shape_cast %51 : vector<1x4x1152xf32> to vector<4x1152xf32>
    %c68 = arith.constant 68 : index
    %c0_56 = arith.constant 0 : index
    %53 = vector.load %arg5[%c68, %c0_56] : memref<196x1152xf32, #tpu.memory_space<vmem>>, vector<4x1152xf32>
    tpu.vector_store %arg5[%c68, %c0_56], %52 {strides = array<i32>} : memref<196x1152xf32, #tpu.memory_space<vmem>>, vector<4x1152xf32>,
    %c0_57 = arith.constant 0 : index
    %c0_58 = arith.constant 0 : index
    %c78 = arith.constant 78 : index
    %54 = vector.load %arg1[%c0_57, %c0_58, %c78] : memref<1x4x1408xf32, #tpu.memory_space<vmem>>, vector<1x4x1152xf32>
    %55 = vector.shape_cast %54 : vector<1x4x1152xf32> to vector<4x1152xf32>
    %c72 = arith.constant 72 : index
    %c0_59 = arith.constant 0 : index
    %56 = vector.load %arg5[%c72, %c0_59] : memref<196x1152xf32, #tpu.memory_space<vmem>>, vector<4x1152xf32>
    tpu.vector_store %arg5[%c72, %c0_59], %55 {strides = array<i32>} : memref<196x1152xf32, #tpu.memory_space<vmem>>, vector<4x1152xf32>,
    %c0_60 = arith.constant 0 : index
    %c0_61 = arith.constant 0 : index
    %c79 = arith.constant 79 : index
    %57 = vector.load %arg1[%c0_60, %c0_61, %c79] : memref<1x4x1408xf32, #tpu.memory_space<vmem>>, vector<1x4x1152xf32>
    %58 = vector.shape_cast %57 : vector<1x4x1152xf32> to vector<4x1152xf32>
    %c76_62 = arith.constant 76 : index
    %c0_63 = arith.constant 0 : index
    %59 = vector.load %arg5[%c76_62, %c0_63] : memref<196x1152xf32, #tpu.memory_space<vmem>>, vector<4x1152xf32>
    tpu.vector_store %arg5[%c76_62, %c0_63], %58 {strides = array<i32>} : memref<196x1152xf32, #tpu.memory_space<vmem>>, vector<4x1152xf32>,
    %c0_64 = arith.constant 0 : index
    %c0_65 = arith.constant 0 : index
    %c80 = arith.constant 80 : index
    %60 = vector.load %arg1[%c0_64, %c0_65, %c80] : memref<1x4x1408xf32, #tpu.memory_space<vmem>>, vector<1x4x1152xf32>
    %61 = vector.shape_cast %60 : vector<1x4x1152xf32> to vector<4x1152xf32>
    %c80_66 = arith.constant 80 : index
    %c0_67 = arith.constant 0 : index
    %62 = vector.load %arg5[%c80_66, %c0_67] : memref<196x1152xf32, #tpu.memory_space<vmem>>, vector<4x1152xf32>
    tpu.vector_store %arg5[%c80_66, %c0_67], %61 {strides = array<i32>} : memref<196x1152xf32, #tpu.memory_space<vmem>>, vector<4x1152xf32>,
    %c0_68 = arith.constant 0 : index
    %c0_69 = arith.constant 0 : index
    %c111 = arith.constant 111 : index
    %63 = vector.load %arg1[%c0_68, %c0_69, %c111] : memref<1x4x1408xf32, #tpu.memory_space<vmem>>, vector<1x4x1152xf32>
    %64 = vector.shape_cast %63 : vector<1x4x1152xf32> to vector<4x1152xf32>
    %c84 = arith.constant 84 : index
    %c0_70 = arith.constant 0 : index
    %65 = vector.load %arg5[%c84, %c0_70] : memref<196x1152xf32, #tpu.memory_space<vmem>>, vector<4x1152xf32>
    tpu.vector_store %arg5[%c84, %c0_70], %64 {strides = array<i32>} : memref<196x1152xf32, #tpu.memory_space<vmem>>, vector<4x1152xf32>,
    %c0_71 = arith.constant 0 : index
    %c0_72 = arith.constant 0 : index
    %c112 = arith.constant 112 : index
    %66 = vector.load %arg1[%c0_71, %c0_72, %c112] : memref<1x4x1408xf32, #tpu.memory_space<vmem>>, vector<1x4x1152xf32>
    %67 = vector.shape_cast %66 : vector<1x4x1152xf32> to vector<4x1152xf32>
    %c88 = arith.constant 88 : index
    %c0_73 = arith.constant 0 : index
    %68 = vector.load %arg5[%c88, %c0_73] : memref<196x1152xf32, #tpu.memory_space<vmem>>, vector<4x1152xf32>
    tpu.vector_store %arg5[%c88, %c0_73], %67 {strides = array<i32>} : memref<196x1152xf32, #tpu.memory_space<vmem>>, vector<4x1152xf32>,
    %c0_74 = arith.constant 0 : index
    %c0_75 = arith.constant 0 : index
    %c113 = arith.constant 113 : index
    %69 = vector.load %arg1[%c0_74, %c0_75, %c113] : memref<1x4x1408xf32, #tpu.memory_space<vmem>>, vector<1x4x1152xf32>
    %70 = vector.shape_cast %69 : vector<1x4x1152xf32> to vector<4x1152xf32>
    %c92 = arith.constant 92 : index
    %c0_76 = arith.constant 0 : index
    %71 = vector.load %arg5[%c92, %c0_76] : memref<196x1152xf32, #tpu.memory_space<vmem>>, vector<4x1152xf32>
    tpu.vector_store %arg5[%c92, %c0_76], %70 {strides = array<i32>} : memref<196x1152xf32, #tpu.memory_space<vmem>>, vector<4x1152xf32>,
    %c0_77 = arith.constant 0 : index
    %c0_78 = arith.constant 0 : index
    %c114 = arith.constant 114 : index
    %72 = vector.load %arg1[%c0_77, %c0_78, %c114] : memref<1x4x1408xf32, #tpu.memory_space<vmem>>, vector<1x4x1152xf32>
    %73 = vector.shape_cast %72 : vector<1x4x1152xf32> to vector<4x1152xf32>
    %c96 = arith.constant 96 : index
    %c0_79 = arith.constant 0 : index
    %74 = vector.load %arg5[%c96, %c0_79] : memref<196x1152xf32, #tpu.memory_space<vmem>>, vector<4x1152xf32>
    tpu.vector_store %arg5[%c96, %c0_79], %73 {strides = array<i32>} : memref<196x1152xf32, #tpu.memory_space<vmem>>, vector<4x1152xf32>,
    %c0_80 = arith.constant 0 : index
    %c0_81 = arith.constant 0 : index
    %c115 = arith.constant 115 : index
    %75 = vector.load %arg1[%c0_80, %c0_81, %c115] : memref<1x4x1408xf32, #tpu.memory_space<vmem>>, vector<1x4x1152xf32>
    %76 = vector.shape_cast %75 : vector<1x4x1152xf32> to vector<4x1152xf32>
    %c100 = arith.constant 100 : index
    %c0_82 = arith.constant 0 : index
    %77 = vector.load %arg5[%c100, %c0_82] : memref<196x1152xf32, #tpu.memory_space<vmem>>, vector<4x1152xf32>
    tpu.vector_store %arg5[%c100, %c0_82], %76 {strides = array<i32>} : memref<196x1152xf32, #tpu.memory_space<vmem>>, vector<4x1152xf32>,
    %c0_83 = arith.constant 0 : index
    %c0_84 = arith.constant 0 : index
    %c116 = arith.constant 116 : index
    %78 = vector.load %arg1[%c0_83, %c0_84, %c116] : memref<1x4x1408xf32, #tpu.memory_space<vmem>>, vector<1x4x1152xf32>
    %79 = vector.shape_cast %78 : vector<1x4x1152xf32> to vector<4x1152xf32>
    %c104 = arith.constant 104 : index
    %c0_85 = arith.constant 0 : index
    %80 = vector.load %arg5[%c104, %c0_85] : memref<196x1152xf32, #tpu.memory_space<vmem>>, vector<4x1152xf32>
    tpu.vector_store %arg5[%c104, %c0_85], %79 {strides = array<i32>} : memref<196x1152xf32, #tpu.memory_space<vmem>>, vector<4x1152xf32>,
    %c0_86 = arith.constant 0 : index
    %c0_87 = arith.constant 0 : index
    %c117 = arith.constant 117 : index
    %81 = vector.load %arg1[%c0_86, %c0_87, %c117] : memref<1x4x1408xf32, #tpu.memory_space<vmem>>, vector<1x4x1152xf32>
    %82 = vector.shape_cast %81 : vector<1x4x1152xf32> to vector<4x1152xf32>
    %c108 = arith.constant 108 : index
    %c0_88 = arith.constant 0 : index
    %83 = vector.load %arg5[%c108, %c0_88] : memref<196x1152xf32, #tpu.memory_space<vmem>>, vector<4x1152xf32>
    tpu.vector_store %arg5[%c108, %c0_88], %82 {strides = array<i32>} : memref<196x1152xf32, #tpu.memory_space<vmem>>, vector<4x1152xf32>,
    %c0_89 = arith.constant 0 : index
    %c0_90 = arith.constant 0 : index
    %c148 = arith.constant 148 : index
    %84 = vector.load %arg1[%c0_89, %c0_90, %c148] : memref<1x4x1408xf32, #tpu.memory_space<vmem>>, vector<1x4x1152xf32>
    %85 = vector.shape_cast %84 : vector<1x4x1152xf32> to vector<4x1152xf32>
    %c112_91 = arith.constant 112 : index
    %c0_92 = arith.constant 0 : index
    %86 = vector.load %arg5[%c112_91, %c0_92] : memref<196x1152xf32, #tpu.memory_space<vmem>>, vector<4x1152xf32>
    tpu.vector_store %arg5[%c112_91, %c0_92], %85 {strides = array<i32>} : memref<196x1152xf32, #tpu.memory_space<vmem>>, vector<4x1152xf32>,
    %c0_93 = arith.constant 0 : index
    %c0_94 = arith.constant 0 : index
    %c149 = arith.constant 149 : index
    %87 = vector.load %arg1[%c0_93, %c0_94, %c149] : memref<1x4x1408xf32, #tpu.memory_space<vmem>>, vector<1x4x1152xf32>
    %88 = vector.shape_cast %87 : vector<1x4x1152xf32> to vector<4x1152xf32>
    %c116_95 = arith.constant 116 : index
    %c0_96 = arith.constant 0 : index
    %89 = vector.load %arg5[%c116_95, %c0_96] : memref<196x1152xf32, #tpu.memory_space<vmem>>, vector<4x1152xf32>
    tpu.vector_store %arg5[%c116_95, %c0_96], %88 {strides = array<i32>} : memref<196x1152xf32, #tpu.memory_space<vmem>>, vector<4x1152xf32>,
    %c0_97 = arith.constant 0 : index
    %c0_98 = arith.constant 0 : index
    %c150 = arith.constant 150 : index
    %90 = vector.load %arg1[%c0_97, %c0_98, %c150] : memref<1x4x1408xf32, #tpu.memory_space<vmem>>, vector<1x4x1152xf32>
    %91 = vector.shape_cast %90 : vector<1x4x1152xf32> to vector<4x1152xf32>
    %c120 = arith.constant 120 : index
    %c0_99 = arith.constant 0 : index
    %92 = vector.load %arg5[%c120, %c0_99] : memref<196x1152xf32, #tpu.memory_space<vmem>>, vector<4x1152xf32>
    tpu.vector_store %arg5[%c120, %c0_99], %91 {strides = array<i32>} : memref<196x1152xf32, #tpu.memory_space<vmem>>, vector<4x1152xf32>,
    %c0_100 = arith.constant 0 : index
    %c0_101 = arith.constant 0 : index
    %c151 = arith.constant 151 : index
    %93 = vector.load %arg1[%c0_100, %c0_101, %c151] : memref<1x4x1408xf32, #tpu.memory_space<vmem>>, vector<1x4x1152xf32>
    %94 = vector.shape_cast %93 : vector<1x4x1152xf32> to vector<4x1152xf32>
    %c124 = arith.constant 124 : index
    %c0_102 = arith.constant 0 : index
    %95 = vector.load %arg5[%c124, %c0_102] : memref<196x1152xf32, #tpu.memory_space<vmem>>, vector<4x1152xf32>
    tpu.vector_store %arg5[%c124, %c0_102], %94 {strides = array<i32>} : memref<196x1152xf32, #tpu.memory_space<vmem>>, vector<4x1152xf32>,
    %c0_103 = arith.constant 0 : index
    %c0_104 = arith.constant 0 : index
    %c152 = arith.constant 152 : index
    %96 = vector.load %arg1[%c0_103, %c0_104, %c152] : memref<1x4x1408xf32, #tpu.memory_space<vmem>>, vector<1x4x1152xf32>
    %97 = vector.shape_cast %96 : vector<1x4x1152xf32> to vector<4x1152xf32>
    %c128 = arith.constant 128 : index
    %c0_105 = arith.constant 0 : index
    %98 = vector.load %arg5[%c128, %c0_105] : memref<196x1152xf32, #tpu.memory_space<vmem>>, vector<4x1152xf32>
    tpu.vector_store %arg5[%c128, %c0_105], %97 {strides = array<i32>} : memref<196x1152xf32, #tpu.memory_space<vmem>>, vector<4x1152xf32>,
    %c0_106 = arith.constant 0 : index
    %c0_107 = arith.constant 0 : index
    %c153 = arith.constant 153 : index
    %99 = vector.load %arg1[%c0_106, %c0_107, %c153] : memref<1x4x1408xf32, #tpu.memory_space<vmem>>, vector<1x4x1152xf32>
    %100 = vector.shape_cast %99 : vector<1x4x1152xf32> to vector<4x1152xf32>
    %c132 = arith.constant 132 : index
    %c0_108 = arith.constant 0 : index
    %101 = vector.load %arg5[%c132, %c0_108] : memref<196x1152xf32, #tpu.memory_space<vmem>>, vector<4x1152xf32>
    tpu.vector_store %arg5[%c132, %c0_108], %100 {strides = array<i32>} : memref<196x1152xf32, #tpu.memory_space<vmem>>, vector<4x1152xf32>,
    %c0_109 = arith.constant 0 : index
    %c0_110 = arith.constant 0 : index
    %c154 = arith.constant 154 : index
    %102 = vector.load %arg1[%c0_109, %c0_110, %c154] : memref<1x4x1408xf32, #tpu.memory_space<vmem>>, vector<1x4x1152xf32>
    %103 = vector.shape_cast %102 : vector<1x4x1152xf32> to vector<4x1152xf32>
    %c136 = arith.constant 136 : index
    %c0_111 = arith.constant 0 : index
    %104 = vector.load %arg5[%c136, %c0_111] : memref<196x1152xf32, #tpu.memory_space<vmem>>, vector<4x1152xf32>
    tpu.vector_store %arg5[%c136, %c0_111], %103 {strides = array<i32>} : memref<196x1152xf32, #tpu.memory_space<vmem>>, vector<4x1152xf32>,
    %c0_112 = arith.constant 0 : index
    %c0_113 = arith.constant 0 : index
    %c185 = arith.constant 185 : index
    %105 = vector.load %arg1[%c0_112, %c0_113, %c185] : memref<1x4x1408xf32, #tpu.memory_space<vmem>>, vector<1x4x1152xf32>
    %106 = vector.shape_cast %105 : vector<1x4x1152xf32> to vector<4x1152xf32>
    %c140 = arith.constant 140 : index
    %c0_114 = arith.constant 0 : index
    %107 = vector.load %arg5[%c140, %c0_114] : memref<196x1152xf32, #tpu.memory_space<vmem>>, vector<4x1152xf32>
    tpu.vector_store %arg5[%c140, %c0_114], %106 {strides = array<i32>} : memref<196x1152xf32, #tpu.memory_space<vmem>>, vector<4x1152xf32>,
    %c0_115 = arith.constant 0 : index
    %c0_116 = arith.constant 0 : index
    %c186 = arith.constant 186 : index
    %108 = vector.load %arg1[%c0_115, %c0_116, %c186] : memref<1x4x1408xf32, #tpu.memory_space<vmem>>, vector<1x4x1152xf32>
    %109 = vector.shape_cast %108 : vector<1x4x1152xf32> to vector<4x1152xf32>
    %c144 = arith.constant 144 : index
    %c0_117 = arith.constant 0 : index
    %110 = vector.load %arg5[%c144, %c0_117] : memref<196x1152xf32, #tpu.memory_space<vmem>>, vector<4x1152xf32>
    tpu.vector_store %arg5[%c144, %c0_117], %109 {strides = array<i32>} : memref<196x1152xf32, #tpu.memory_space<vmem>>, vector<4x1152xf32>,
    %c0_118 = arith.constant 0 : index
    %c0_119 = arith.constant 0 : index
    %c187 = arith.constant 187 : index
    %111 = vector.load %arg1[%c0_118, %c0_119, %c187] : memref<1x4x1408xf32, #tpu.memory_space<vmem>>, vector<1x4x1152xf32>
    %112 = vector.shape_cast %111 : vector<1x4x1152xf32> to vector<4x1152xf32>
    %c148_120 = arith.constant 148 : index
    %c0_121 = arith.constant 0 : index
    %113 = vector.load %arg5[%c148_120, %c0_121] : memref<196x1152xf32, #tpu.memory_space<vmem>>, vector<4x1152xf32>
    tpu.vector_store %arg5[%c148_120, %c0_121], %112 {strides = array<i32>} : memref<196x1152xf32, #tpu.memory_space<vmem>>, vector<4x1152xf32>,
    %c0_122 = arith.constant 0 : index
    %c0_123 = arith.constant 0 : index
    %c188 = arith.constant 188 : index
    %114 = vector.load %arg1[%c0_122, %c0_123, %c188] : memref<1x4x1408xf32, #tpu.memory_space<vmem>>, vector<1x4x1152xf32>
    %115 = vector.shape_cast %114 : vector<1x4x1152xf32> to vector<4x1152xf32>
    %c152_124 = arith.constant 152 : index
    %c0_125 = arith.constant 0 : index
    %116 = vector.load %arg5[%c152_124, %c0_125] : memref<196x1152xf32, #tpu.memory_space<vmem>>, vector<4x1152xf32>
    tpu.vector_store %arg5[%c152_124, %c0_125], %115 {strides = array<i32>} : memref<196x1152xf32, #tpu.memory_space<vmem>>, vector<4x1152xf32>,
    %c0_126 = arith.constant 0 : index
    %c0_127 = arith.constant 0 : index
    %c189 = arith.constant 189 : index
    %117 = vector.load %arg1[%c0_126, %c0_127, %c189] : memref<1x4x1408xf32, #tpu.memory_space<vmem>>, vector<1x4x1152xf32>
    %118 = vector.shape_cast %117 : vector<1x4x1152xf32> to vector<4x1152xf32>
    %c156 = arith.constant 156 : index
    %c0_128 = arith.constant 0 : index
    %119 = vector.load %arg5[%c156, %c0_128] : memref<196x1152xf32, #tpu.memory_space<vmem>>, vector<4x1152xf32>
    tpu.vector_store %arg5[%c156, %c0_128], %118 {strides = array<i32>} : memref<196x1152xf32, #tpu.memory_space<vmem>>, vector<4x1152xf32>,
    %c0_129 = arith.constant 0 : index
    %c0_130 = arith.constant 0 : index
    %c190 = arith.constant 190 : index
    %120 = vector.load %arg1[%c0_129, %c0_130, %c190] : memref<1x4x1408xf32, #tpu.memory_space<vmem>>, vector<1x4x1152xf32>
    %121 = vector.shape_cast %120 : vector<1x4x1152xf32> to vector<4x1152xf32>
    %c160 = arith.constant 160 : index
    %c0_131 = arith.constant 0 : index
    %122 = vector.load %arg5[%c160, %c0_131] : memref<196x1152xf32, #tpu.memory_space<vmem>>, vector<4x1152xf32>
    tpu.vector_store %arg5[%c160, %c0_131], %121 {strides = array<i32>} : memref<196x1152xf32, #tpu.memory_space<vmem>>, vector<4x1152xf32>,
    %c0_132 = arith.constant 0 : index
    %c0_133 = arith.constant 0 : index
    %c191 = arith.constant 191 : index
    %123 = vector.load %arg1[%c0_132, %c0_133, %c191] : memref<1x4x1408xf32, #tpu.memory_space<vmem>>, vector<1x4x1152xf32>
    %124 = vector.shape_cast %123 : vector<1x4x1152xf32> to vector<4x1152xf32>
    %c164 = arith.constant 164 : index
    %c0_134 = arith.constant 0 : index
    %125 = vector.load %arg5[%c164, %c0_134] : memref<196x1152xf32, #tpu.memory_space<vmem>>, vector<4x1152xf32>
    tpu.vector_store %arg5[%c164, %c0_134], %124 {strides = array<i32>} : memref<196x1152xf32, #tpu.memory_space<vmem>>, vector<4x1152xf32>,
    %c0_135 = arith.constant 0 : index
    %c0_136 = arith.constant 0 : index
    %c222 = arith.constant 222 : index
    %126 = vector.load %arg1[%c0_135, %c0_136, %c222] : memref<1x4x1408xf32, #tpu.memory_space<vmem>>, vector<1x4x1152xf32>
    %127 = vector.shape_cast %126 : vector<1x4x1152xf32> to vector<4x1152xf32>
    %c168 = arith.constant 168 : index
    %c0_137 = arith.constant 0 : index
    %128 = vector.load %arg5[%c168, %c0_137] : memref<196x1152xf32, #tpu.memory_space<vmem>>, vector<4x1152xf32>
    tpu.vector_store %arg5[%c168, %c0_137], %127 {strides = array<i32>} : memref<196x1152xf32, #tpu.memory_space<vmem>>, vector<4x1152xf32>,
    %c0_138 = arith.constant 0 : index
    %c0_139 = arith.constant 0 : index
    %c223 = arith.constant 223 : index
    %129 = vector.load %arg1[%c0_138, %c0_139, %c223] : memref<1x4x1408xf32, #tpu.memory_space<vmem>>, vector<1x4x1152xf32>
    %130 = vector.shape_cast %129 : vector<1x4x1152xf32> to vector<4x1152xf32>
    %c172 = arith.constant 172 : index
    %c0_140 = arith.constant 0 : index
    %131 = vector.load %arg5[%c172, %c0_140] : memref<196x1152xf32, #tpu.memory_space<vmem>>, vector<4x1152xf32>
    tpu.vector_store %arg5[%c172, %c0_140], %130 {strides = array<i32>} : memref<196x1152xf32, #tpu.memory_space<vmem>>, vector<4x1152xf32>,
    %c0_141 = arith.constant 0 : index
    %c0_142 = arith.constant 0 : index
    %c224 = arith.constant 224 : index
    %132 = vector.load %arg1[%c0_141, %c0_142, %c224] : memref<1x4x1408xf32, #tpu.memory_space<vmem>>, vector<1x4x1152xf32>
    %133 = vector.shape_cast %132 : vector<1x4x1152xf32> to vector<4x1152xf32>
    %c176 = arith.constant 176 : index
    %c0_143 = arith.constant 0 : index
    %134 = vector.load %arg5[%c176, %c0_143] : memref<196x1152xf32, #tpu.memory_space<vmem>>, vector<4x1152xf32>
    tpu.vector_store %arg5[%c176, %c0_143], %133 {strides = array<i32>} : memref<196x1152xf32, #tpu.memory_space<vmem>>, vector<4x1152xf32>,
    %c0_144 = arith.constant 0 : index
    %c0_145 = arith.constant 0 : index
    %c225 = arith.constant 225 : index
    %135 = vector.load %arg1[%c0_144, %c0_145, %c225] : memref<1x4x1408xf32, #tpu.memory_space<vmem>>, vector<1x4x1152xf32>
    %136 = vector.shape_cast %135 : vector<1x4x1152xf32> to vector<4x1152xf32>
    %c180 = arith.constant 180 : index
    %c0_146 = arith.constant 0 : index
    %137 = vector.load %arg5[%c180, %c0_146] : memref<196x1152xf32, #tpu.memory_space<vmem>>, vector<4x1152xf32>
    tpu.vector_store %arg5[%c180, %c0_146], %136 {strides = array<i32>} : memref<196x1152xf32, #tpu.memory_space<vmem>>, vector<4x1152xf32>,
    %c0_147 = arith.constant 0 : index
    %c0_148 = arith.constant 0 : index
    %c226 = arith.constant 226 : index
    %138 = vector.load %arg1[%c0_147, %c0_148, %c226] : memref<1x4x1408xf32, #tpu.memory_space<vmem>>, vector<1x4x1152xf32>
    %139 = vector.shape_cast %138 : vector<1x4x1152xf32> to vector<4x1152xf32>
    %c184 = arith.constant 184 : index
    %c0_149 = arith.constant 0 : index
    %140 = vector.load %arg5[%c184, %c0_149] : memref<196x1152xf32, #tpu.memory_space<vmem>>, vector<4x1152xf32>
    tpu.vector_store %arg5[%c184, %c0_149], %139 {strides = array<i32>} : memref<196x1152xf32, #tpu.memory_space<vmem>>, vector<4x1152xf32>,
    %c0_150 = arith.constant 0 : index
    %c0_151 = arith.constant 0 : index
    %c227 = arith.constant 227 : index
    %141 = vector.load %arg1[%c0_150, %c0_151, %c227] : memref<1x4x1408xf32, #tpu.memory_space<vmem>>, vector<1x4x1152xf32>
    %142 = vector.shape_cast %141 : vector<1x4x1152xf32> to vector<4x1152xf32>
    %c188_152 = arith.constant 188 : index
    %c0_153 = arith.constant 0 : index
    %143 = vector.load %arg5[%c188_152, %c0_153] : memref<196x1152xf32, #tpu.memory_space<vmem>>, vector<4x1152xf32>
    tpu.vector_store %arg5[%c188_152, %c0_153], %142 {strides = array<i32>} : memref<196x1152xf32, #tpu.memory_space<vmem>>, vector<4x1152xf32>,
    %c0_154 = arith.constant 0 : index
    %c0_155 = arith.constant 0 : index
    %c228 = arith.constant 228 : index
    %144 = vector.load %arg1[%c0_154, %c0_155, %c228] : memref<1x4x1408xf32, #tpu.memory_space<vmem>>, vector<1x4x1152xf32>
    %145 = vector.shape_cast %144 : vector<1x4x1152xf32> to vector<4x1152xf32>
    %c192 = arith.constant 192 : index
    %c0_156 = arith.constant 0 : index
    %146 = vector.load %arg5[%c192, %c0_156] : memref<196x1152xf32, #tpu.memory_space<vmem>>, vector<4x1152xf32>
    tpu.vector_store %arg5[%c192, %c0_156], %145 {strides = array<i32>} : memref<196x1152xf32, #tpu.memory_space<vmem>>, vector<4x1152xf32>,
    %c0_157 = arith.constant 0 : index
    %c0_158 = arith.constant 0 : index
    %147 = vector.load %arg2[%c0_157, %c0_158] : memref<8x196xf32, #tpu.memory_space<vmem>>, vector<8x196xf32>
    %c0_159 = arith.constant 0 : index
    %c0_160 = arith.constant 0 : index
    %148 = vector.load %arg5[%c0_159, %c0_160] : memref<196x1152xf32, #tpu.memory_space<vmem>>, vector<196x1152xf32>
    %cst = arith.constant dense<0.000000e+00> : vector<8x1152xf32>
    %149 = tpu.matmul %147, %148, %cst {dimension_numbers = #tpu.dot_dimension_numbers<[1], [0], [0], [1], [0, 0, 1, 1], [], []>} : vector<8x196xf32>, vector<196x1152xf32>, vector<8x1152xf32> -> vector<8x1152xf32>
    %c0_161 = arith.constant 0 : index
    %c0_162 = arith.constant 0 : index
    %150 = vector.load %arg3[%c0_161, %c0_162] : memref<8x1xf32, #tpu.memory_space<vmem>>, vector<8x1xf32>
    %151 = vector.broadcast %150 : vector<8x1xf32> to vector<8x1152xf32>
    %152 = arith.addf %149, %151 : vector<8x1152xf32>
    %c0_163 = arith.constant 0 : index
    %c0_164 = arith.constant 0 : index
    %c0_165 = arith.constant 0 : index
    %153 = vector.load %arg4[%c0_163, %c0_164, %c0_165] : memref<1x8x1152xf32, #tpu.memory_space<vmem>>, vector<1x8x1152xf32>
    %154 = vector.shape_cast %153 : vector<1x8x1152xf32> to vector<8x1152xf32>
    %155 = vector.shape_cast %152 : vector<8x1152xf32> to vector<1x8x1152xf32>
    tpu.vector_store %arg4[%c0_163, %c0_164, %c0_165], %155 {strides = array<i32>} : memref<1x8x1152xf32, #tpu.memory_space<vmem>>, vector<1x8x1152xf32>,
    return
  }
  func.func @transform_0(%arg0: i32) -> (i32, i32, i32) {
    %c0_i32 = arith.constant 0 : i32
    %c0_i32_0 = arith.constant 0 : i32
    %c0_i32_1 = arith.constant 0 : i32
    return %arg0, %c0_i32, %c0_i32_0 : i32, i32, i32
  }
  func.func @transform_1(%arg0: i32) -> (i32, i32) {
    %c0_i32 = arith.constant 0 : i32
    %c0_i32_0 = arith.constant 0 : i32
    %c0_i32_1 = arith.constant 0 : i32
    return %c0_i32, %c0_i32_0 : i32, i32
  }
  func.func @transform_2(%arg0: i32) -> (i32, i32) {
    %c0_i32 = arith.constant 0 : i32
    %c0_i32_0 = arith.constant 0 : i32
    %c0_i32_1 = arith.constant 0 : i32
    return %c0_i32, %c0_i32_0 : i32, i32
  }
  func.func @transform_3(%arg0: i32) -> (i32, i32, i32) {
    %c0_i32 = arith.constant 0 : i32
    %c0_i32_0 = arith.constant 0 : i32
    %c0_i32_1 = arith.constant 0 : i32
    return %arg0, %c0_i32, %c0_i32_0 : i32, i32, i32
  }
}

</mosaic_0001>

<bundles_post_ra>
// kernel: deconv1_forward.1
= control target key start
LH: loop header
LB: loop body
LE: loop exit
PB: predicated region body
PF: predicated region fallthrough
CT: control target
= control target key end

     0   :  { %s4347_s12 = smov 0   ;;  %s6189_s0 = inlined_call_operand.vmem [shape: f32[2,4,1408], index: 0, kind: input, shape index: {}]   ;;  %s6190_s1 = inlined_call_operand.vmem [shape: f32[8,196], index: 1, kind: input, shape index: {}]   ;;  %s6191_s2 = inlined_call_operand.vmem [shape: f32[8,1], index: 2, kind: input, shape index: {}]   ;;  %s6192_s3 = inlined_call_operand.vmem [shape: f32[2,8,1152], index: 3, kind: output, shape index: {}]  }
   0x1 LB: > { %s3903_s13 = sadd.s32 4294967295, %s4274_s12   ;;  %p3907_p0 = scmp.ge.s32.totalorder %s4274_s12, 1  ;;  %s4274_s12 = sphi %s4347_s12, %s13_s12  }
   0x2   : > { %p137_p1 = scmp.lt.s32.totalorder %s4274_s12, 3 }
   0x4   : > { %p138_p2 = pnand %p3907_p0, %p137_p1 }
   0x5   : > { %p161_p3 = scmp.lt.s32.totalorder (!%p138_p2), %s3903_s13, 1  ;;  %s4276_s18 = smov (!%p138_p2), 127   ;;  %vm232_vm0 = vcmask (!%p138_p2), 1039360   ;;  %vm295_vm1 = vcmask (!%p138_p2), 1031168   ;;  %vm358_vm2 = vcmask (!%p138_p2), 1022976   ;;  %vm421_vm3 = vcmask (!%p138_p2), 1014784  }
   0x6   : > { %141 = sbr.rel (%p138_p2) target bundleno = 1316 (0x524), region = 32  ;;  %s4277_s19 = smov (!%p138_p2), 126   ;;  %vm484_vm4 = vcmask (!%p138_p2), 1006592   ;;  %vm547_vm5 = vcmask (!%p138_p2), 998400   ;;  %vm610_vm6 = vcmask (!%p138_p2), 744448   ;;  %vm673_vm7 = vcmask (!%p138_p2), 736256  }
   0x7   : > { %s4278_s20 = smov (!%p138_p2), 125   ;;  %s4279_s21 = smov (!%p138_p2), 124   ;;  %vm736_vm8 = vcmask (!%p138_p2), 728064   ;;  %vm799_vm9 = vcmask (!%p138_p2), 719872   ;;  %vm862_vm10 = vcmask (!%p138_p2), 711680   ;;  %vm925_vm11 = vcmask (!%p138_p2), 703488  }
   0x8   : > { %s4280_s22 = smov (!%p138_p2), 123   ;;  %s4281_s23 = smov (!%p138_p2), 122   ;;  %vm988_vm12 = vcmask (!%p138_p2), 695296   ;;  %vm1051_vm13 = vcmask (!%p138_p2), 441344   ;;  %vm1114_vm14 = vcmask (!%p138_p2), 433152   ;;  %vm1177_vm15 = vcmask (!%p138_p2), 424960  }
   0x9   : > { %s4282_s24 = smov (!%p138_p2), 91   ;;  %s4283_s25 = smov (!%p138_p2), 90  }
   0xa   : > { %s4284_s26 = smov (!%p138_p2), 89   ;;  %s4285_s27 = smov (!%p138_p2), 88  }
   0xb   : > { %s4286_s28 = smov (!%p138_p2), 87   ;;  %s4287_s29 = smov (!%p138_p2), 86  }
   0xc   : > { %s4288_s30 = smov (!%p138_p2), 85   ;;  %s4289_s4 = smov (!%p138_p2), 54  }
   0xd   : > { %s6249_s13 = smov (!%p161_p3, %s3903_s13), 1  ;;  %s4290_s5 = smov 53  }
   0xe   : > { %s4154_s14 = smul.u32 44, %s6249_s13  ;;  %s4291_s6 = smov 52  }
   0xf   : > { %s4292_s7 = smov 51   ;;  %s4293_s8 = smov 50  }
  0x10   : > { %s4361_s17 = scalar_lea.vmem %s6189_s0, %s4154_s14  ;;  %s4294_s9 = smov 49  }
  0x11   : > { %v4364_v0 = vld [vmem:[%s4361_s17 + $0x8] sm:$0xff]  ;;  %v4367_v1 = vld [vmem:[%s4361_s17] sm:$0xff]  ;;  %v4380_v3 = vld [vmem:[%s4361_s17 + $0x10] sm:$0xff]  ;;  %s4295_s10 = smov 48   ;;  %s4296_s11 = smov 17  }
  0x12   : > { %218 = vrot.lane.b32.xlu1 %v4364_v0, %s4276_s18  ;;  %214 = vrot.lane.b32.xlu0 %v4367_v1, %s4276_s18  ;;  %v4375_v2 = vcombine.low %v4367_v1, %v4367_v1  ;;  %188 = vst [vmem:[#allocation2] sm:$0xf] %v4367_v1  ;;  %190 = vst [vmem:[#allocation2 + $0x10] sm:$0xf] %v4364_v0  ;;  %v4384_v4 = vcombine.high %v4367_v1, %v4367_v1  ;;  %v173_v6 = vld [vmem:[%s4361_s17 + $0x10] sm:$0xff]  ;;  %v174_v7 = vld [vmem:[%s4361_s17 + $0x18] sm:$0xff] }
  0x13   : > { %v4388_v5 = vcombine.high %v4364_v0, %v4364_v0  ;;  %v182_v8 = vcombine.high %v173_v6, %v173_v6  ;;  %192 = vst [vmem:[#allocation2 + $0x20] sm:$0xf] %v173_v6  ;;  %194 = vst [vmem:[#allocation2 + $0x30] sm:$0xf] %v174_v7  ;;  %v183_v9 = vcombine.high %v174_v7, %v174_v7  ;;  %v175_v12 = vld [vmem:[%s4361_s17 + $0x20] sm:$0xf] }
  0x14   : > { %189 = vst [vmem:[#allocation2 + $0x8] sm:$0xf] %v4384_v4  ;;  %v4396_v10 = vcombine.low %v4364_v0, %v4364_v0  ;;  %v4400_v11 = vcombine.low %v4380_v3, %v4380_v3  ;;  %v4408_v13 = vld [vmem:[%s4361_s17 + $0x18] sm:$0xff]  ;;  %196 = vst [vmem:[#allocation2 + $0x40] sm:$0xf] %v175_v12  ;;  %v4419_v15 = vld [vmem:[%s4361_s17 + $0x20] sm:$0xff]  ;;  %v4439_v17 = vcombine.high %v4380_v3, %v4380_v3 }
  0x15   : > { %191 = vst [vmem:[#allocation2 + $0x18] sm:$0xf] %v4388_v5  ;;  %193 = vst [vmem:[#allocation2 + $0x28] sm:$0xf] %v182_v8  ;;  %v4416_v14 = vcombine.low %v4408_v13, %v4408_v13  ;;  %v4427_v16 = vcombine.low %v4419_v15, %v4419_v15  ;;  %v4445_v18 = vcombine.high %v4408_v13, %v4408_v13  ;;  %s4297_s14 = smov 16   ;;  %s4298_s15 = smov 15  }
  0x16   : > { %222 = vrot.lane.b32.xlu1 %v4380_v3, %s4276_s18  ;;  %212 = vrot.lane.b32.xlu0 %v4375_v2, %s4276_s18  ;;  %195 = vst [vmem:[#allocation2 + $0x38] sm:$0xf] %v183_v9  ;;  %v4451_v19 = vcombine.high %v4419_v15, %v4419_v15  ;;  %s4299_s16 = smov 14  }
  0x1a   : > { %216 = vrot.lane.b32.xlu1 %v4396_v10, %s4276_s18  ;;  %220 = vrot.lane.b32.xlu0 %v4400_v11, %s4276_s18 }
  0x1e   : > { %226 = vrot.lane.b32.xlu1 %v4408_v13, %s4276_s18  ;;  %224 = vrot.lane.b32.xlu0 %v4416_v14, %s4276_s18 }
  0x22   : > { %230 = vrot.lane.b32.xlu1 %v4419_v15, %s4276_s18  ;;  %228 = vrot.lane.b32.xlu0 %v4427_v16, %s4276_s18  ;;  %s4300_s18 = smov 13  }
  0x26   : > { %277 = vrot.lane.b32.xlu1 %v4384_v4, %s4277_s19  ;;  %275 = vrot.lane.b32.xlu0 %v4367_v1, %s4277_s19 }
  0x2a   : > { %281 = vrot.lane.b32.xlu1 %v4388_v5, %s4277_s19  ;;  %279 = vrot.lane.b32.xlu0 %v4364_v0, %s4277_s19 }
  0x2e   : > { %285 = vrot.lane.b32.xlu1 %v4439_v17, %s4277_s19  ;;  %283 = vrot.lane.b32.xlu0 %v4380_v3, %s4277_s19 }
  0x32   : > { %289 = vrot.lane.b32.xlu1 %v4445_v18, %s4277_s19  ;;  %287 = vrot.lane.b32.xlu0 %v4408_v13, %s4277_s19 }
  0x36   : > { %293 = vrot.lane.b32.xlu1 %v4451_v19, %s4277_s19  ;;  %291 = vrot.lane.b32.xlu0 %v4419_v15, %s4277_s19  ;;  %s4301_s19 = smov 12  }
  0x3a   : > { %340 = vrot.lane.b32.xlu1 %v4367_v1, %s4278_s20  ;;  %338 = vrot.lane.b32.xlu0 %v4375_v2, %s4278_s20 }
  0x3e   : > { %344 = vrot.lane.b32.xlu1 %v4364_v0, %s4278_s20  ;;  %342 = vrot.lane.b32.xlu0 %v4396_v10, %s4278_s20 }
  0x42   : > { %348 = vrot.lane.b32.xlu1 %v4380_v3, %s4278_s20  ;;  %346 = vrot.lane.b32.xlu0 %v4400_v11, %s4278_s20 }
  0x46   : > { %352 = vrot.lane.b32.xlu1 %v4408_v13, %s4278_s20  ;;  %350 = vrot.lane.b32.xlu0 %v4416_v14, %s4278_s20 }
  0x4a   : > { %356 = vrot.lane.b32.xlu1 %v4419_v15, %s4278_s20  ;;  %354 = vrot.lane.b32.xlu0 %v4427_v16, %s4278_s20  ;;  %s4302_s20 = smov 11  }
  0x4e   : > { %403 = vrot.lane.b32.xlu1 %v4384_v4, %s4279_s21  ;;  %401 = vrot.lane.b32.xlu0 %v4367_v1, %s4279_s21 }
  0x52   : > { %407 = vrot.lane.b32.xlu1 %v4388_v5, %s4279_s21  ;;  %405 = vrot.lane.b32.xlu0 %v4364_v0, %s4279_s21 }
  0x56   : > { %411 = vrot.lane.b32.xlu1 %v4439_v17, %s4279_s21  ;;  %409 = vrot.lane.b32.xlu0 %v4380_v3, %s4279_s21 }
  0x5a   : > { %415 = vrot.lane.b32.xlu1 %v4445_v18, %s4279_s21  ;;  %413 = vrot.lane.b32.xlu0 %v4408_v13, %s4279_s21 }
  0x5e   : > { %419 = vrot.lane.b32.xlu1 %v4451_v19, %s4279_s21  ;;  %417 = vrot.lane.b32.xlu0 %v4419_v15, %s4279_s21  ;;  %s4303_s21 = smov 108  }
  0x62   : > { %466 = vrot.lane.b32.xlu1 %v4367_v1, %s4280_s22  ;;  %464 = vrot.lane.b32.xlu0 %v4375_v2, %s4280_s22 }
  0x66   : > { %470 = vrot.lane.b32.xlu1 %v4364_v0, %s4280_s22  ;;  %468 = vrot.lane.b32.xlu0 %v4396_v10, %s4280_s22 }
  0x6a   : > { %474 = vrot.lane.b32.xlu1 %v4380_v3, %s4280_s22  ;;  %472 = vrot.lane.b32.xlu0 %v4400_v11, %s4280_s22 }
  0x6e   : > { %478 = vrot.lane.b32.xlu1 %v4408_v13, %s4280_s22  ;;  %476 = vrot.lane.b32.xlu0 %v4416_v14, %s4280_s22 }
  0x72   : > { %482 = vrot.lane.b32.xlu1 %v4419_v15, %s4280_s22  ;;  %480 = vrot.lane.b32.xlu0 %v4427_v16, %s4280_s22  ;;  %s4304_s22 = smov 107  }
  0x76   : > { %529 = vrot.lane.b32.xlu1 %v4384_v4, %s4281_s23  ;;  %527 = vrot.lane.b32.xlu0 %v4367_v1, %s4281_s23 }
  0x7a   : > { %533 = vrot.lane.b32.xlu1 %v4388_v5, %s4281_s23  ;;  %531 = vrot.lane.b32.xlu0 %v4364_v0, %s4281_s23 }
  0x7e   : > { %537 = vrot.lane.b32.xlu1 %v4439_v17, %s4281_s23  ;;  %535 = vrot.lane.b32.xlu0 %v4380_v3, %s4281_s23 }
  0x82   : > { %541 = vrot.lane.b32.xlu1 %v4445_v18, %s4281_s23  ;;  %539 = vrot.lane.b32.xlu0 %v4408_v13, %s4281_s23 }
  0x84   : > { %v219_v20 = vpop.permute.xlu1 %218  ;;  %v215_v21 = vpop.permute.xlu0 %214 }
  0x86   : > { %545 = vrot.lane.b32.xlu1 %v4451_v19, %s4281_s23  ;;  %543 = vrot.lane.b32.xlu0 %v4419_v15, %s4281_s23  ;;  %s4305_s23 = smov 106  }
  0x88   : > { %v223_v22 = vpop.permute.xlu1 %222  ;;  %v213_v23 = vpop.permute.xlu0 %212 }
  0x89   : > { %v233_v24 = vsel %vm232_vm0, %v213_v23, %v215_v21 }
  0x8a   : > { %251 = vst [vmem:[#allocation2] sm:$0xf0] %v233_v24  ;;  %592 = vrot.lane.b32.xlu1 %v4367_v1, %s4282_s24  ;;  %590 = vrot.lane.b32.xlu0 %v4375_v2, %s4282_s24 }
  0x8c   : > { %v217_v25 = vpop.permute.xlu1 %216  ;;  %v221_v26 = vpop.permute.xlu0 %220 }
  0x8d   : > { %v234_v27 = vsel %vm232_vm0, %v215_v21, %v217_v25  ;;  %v235_v28 = vsel %vm232_vm0, %v217_v25, %v219_v20  ;;  %v236_v29 = vsel %vm232_vm0, %v219_v20, %v221_v26  ;;  %v237_v30 = vsel %vm232_vm0, %v221_v26, %v223_v22 }
  0x8e   : > { %252 = vst [vmem:[#allocation2 + $0x8] sm:$0xf0] %v234_v27  ;;  %253 = vst [vmem:[#allocation2 + $0x10] sm:$0xf0] %v235_v28  ;;  %596 = vrot.lane.b32.xlu1 %v4364_v0, %s4282_s24  ;;  %594 = vrot.lane.b32.xlu0 %v4396_v10, %s4282_s24 }
  0x8f   : > { %254 = vst [vmem:[#allocation2 + $0x18] sm:$0xf0] %v236_v29  ;;  %255 = vst [vmem:[#allocation2 + $0x20] sm:$0xf0] %v237_v30 }
  0x90   : > { %v227_v31 = vpop.permute.xlu1 %226  ;;  %v225_v32 = vpop.permute.xlu0 %224 }
  0x91   : > { %v238_v33 = vsel %vm232_vm0, %v223_v22, %v225_v32  ;;  %v239_v34 = vsel %vm232_vm0, %v225_v32, %v227_v31  ;;  %v3223_v28 = vld [vmem:[#allocation2] sm:$0xff] }
  0x92   : > { %256 = vst [vmem:[#allocation2 + $0x28] sm:$0xf0] %v238_v33  ;;  %257 = vst [vmem:[#allocation2 + $0x30] sm:$0xf0] %v239_v34  ;;  %600 = vrot.lane.b32.xlu1 %v4380_v3, %s4282_s24  ;;  %598 = vrot.lane.b32.xlu0 %v4400_v11, %s4282_s24 }
  0x94   : > { %v231_v35 = vpop.permute.xlu1 %230  ;;  %v229_v36 = vpop.permute.xlu0 %228 }
  0x95   : > { %v240_v37 = vsel %vm232_vm0, %v227_v31, %v229_v36  ;;  %v241_v38 = vsel %vm232_vm0, %v229_v36, %v231_v35  ;;  %v3224_v25 = vld [vmem:[#allocation2 + $0x8] sm:$0xff]  ;;  %vm1240_vm0 = vcmask 416768  }
  0x96   : > { %258 = vst [vmem:[#allocation2 + $0x38] sm:$0xf0] %v240_v37  ;;  %259 = vst [vmem:[#allocation2 + $0x40] sm:$0xf0] %v241_v38  ;;  %604 = vrot.lane.b32.xlu1 %v4408_v13, %s4282_s24  ;;  %602 = vrot.lane.b32.xlu0 %v4416_v14, %s4282_s24  ;;  %v3226_v35 = vld [vmem:[#allocation2 + $0x18] sm:$0xff]  ;;  %v3225_v38 = vld [vmem:[#allocation2 + $0x10] sm:$0xff] }
  0x98   : > { %v278_v39 = vpop.permute.xlu1 %277  ;;  %v276_v40 = vpop.permute.xlu0 %275 }
  0x99   : > { %v296_v41 = vsel %vm295_vm1, %v276_v40, %v278_v39 }
  0x9a   : > { %314 = vst [vmem:[#allocation2 + $0x48] sm:$0xf] %v296_v41  ;;  %608 = vrot.lane.b32.xlu1 %v4419_v15, %s4282_s24  ;;  %606 = vrot.lane.b32.xlu0 %v4427_v16, %s4282_s24  ;;  %s4306_s24 = smov 105  }
  0x9c   : > { %v282_v42 = vpop.permute.xlu1 %281  ;;  %v280_v43 = vpop.permute.xlu0 %279 }
  0x9d   : > { %v297_v44 = vsel %vm295_vm1, %v278_v39, %v280_v43  ;;  %v298_v45 = vsel %vm295_vm1, %v280_v43, %v282_v42 }
  0x9e   : > { %315 = vst [vmem:[#allocation2 + $0x50] sm:$0xf] %v297_v44  ;;  %316 = vst [vmem:[#allocation2 + $0x58] sm:$0xf] %v298_v45  ;;  %655 = vrot.lane.b32.xlu1 %v4384_v4, %s4283_s25  ;;  %653 = vrot.lane.b32.xlu0 %v4367_v1, %s4283_s25 }
  0xa0   : > { %v286_v46 = vpop.permute.xlu1 %285  ;;  %v284_v47 = vpop.permute.xlu0 %283 }
  0xa1   : > { %v299_v48 = vsel %vm295_vm1, %v282_v42, %v284_v47  ;;  %v300_v49 = vsel %vm295_vm1, %v284_v47, %v286_v46 }
  0xa2   : > { %317 = vst [vmem:[#allocation2 + $0x60] sm:$0xf] %v299_v48  ;;  %318 = vst [vmem:[#allocation2 + $0x68] sm:$0xf] %v300_v49  ;;  %659 = vrot.lane.b32.xlu1 %v4388_v5, %s4283_s25  ;;  %657 = vrot.lane.b32.xlu0 %v4364_v0, %s4283_s25 }
  0xa4   : > { %v290_v50 = vpop.permute.xlu1 %289  ;;  %v288_v51 = vpop.permute.xlu0 %287 }
  0xa5   : > { %v301_v52 = vsel %vm295_vm1, %v286_v46, %v288_v51  ;;  %v302_v53 = vsel %vm295_vm1, %v288_v51, %v290_v50 }
  0xa6   : > { %319 = vst [vmem:[#allocation2 + $0x70] sm:$0xf] %v301_v52  ;;  %320 = vst [vmem:[#allocation2 + $0x78] sm:$0xf] %v302_v53  ;;  %663 = vrot.lane.b32.xlu1 %v4439_v17, %s4283_s25  ;;  %661 = vrot.lane.b32.xlu0 %v4380_v3, %s4283_s25 }
  0xa8   : > { %v294_v54 = vpop.permute.xlu1 %293  ;;  %v292_v55 = vpop.permute.xlu0 %291 }
  0xa9   : > { %v303_v56 = vsel %vm295_vm1, %v290_v50, %v292_v55  ;;  %v304_v57 = vsel %vm295_vm1, %v292_v55, %v294_v54  ;;  %vm1303_vm1 = vcmask 408576  }
  0xaa   : > { %321 = vst [vmem:[#allocation2 + $0x80] sm:$0xf] %v303_v56  ;;  %322 = vst [vmem:[#allocation2 + $0x88] sm:$0xf] %v304_v57  ;;  %667 = vrot.lane.b32.xlu1 %v4445_v18, %s4283_s25  ;;  %665 = vrot.lane.b32.xlu0 %v4408_v13, %s4283_s25 }
  0xac   : > { %v341_v58 = vpop.permute.xlu1 %340  ;;  %v339_v59 = vpop.permute.xlu0 %338 }
  0xad   : > { %v359_v60 = vsel %vm358_vm2, %v339_v59, %v341_v58 }
  0xae   : > { %377 = vst [vmem:[#allocation2 + $0x48] sm:$0xf0] %v359_v60  ;;  %671 = vrot.lane.b32.xlu1 %v4451_v19, %s4283_s25  ;;  %669 = vrot.lane.b32.xlu0 %v4419_v15, %s4283_s25  ;;  %s4307_s25 = smov 104  }
  0xb0   : > { %v345_v61 = vpop.permute.xlu1 %344  ;;  %v343_v62 = vpop.permute.xlu0 %342 }
  0xb1   : > { %v360_v63 = vsel %vm358_vm2, %v341_v58, %v343_v62  ;;  %v361_v6 = vsel %vm358_vm2, %v343_v62, %v345_v61 }
  0xb2   : > { %378 = vst [vmem:[#allocation2 + $0x50] sm:$0xf0] %v360_v63  ;;  %379 = vst [vmem:[#allocation2 + $0x58] sm:$0xf0] %v361_v6  ;;  %718 = vrot.lane.b32.xlu1 %v4367_v1, %s4284_s26  ;;  %716 = vrot.lane.b32.xlu0 %v4375_v2, %s4284_s26 }
  0xb4   : > { %v349_v7 = vpop.permute.xlu1 %348  ;;  %v347_v8 = vpop.permute.xlu0 %346 }
  0xb5   : > { %v362_v9 = vsel %vm358_vm2, %v345_v61, %v347_v8  ;;  %v363_v12 = vsel %vm358_vm2, %v347_v8, %v349_v7  ;;  %v3232_v22 = vld [vmem:[#allocation2 + $0x48] sm:$0xff] }
  0xb6   : > { %380 = vst [vmem:[#allocation2 + $0x60] sm:$0xf0] %v362_v9  ;;  %381 = vst [vmem:[#allocation2 + $0x68] sm:$0xf0] %v363_v12  ;;  %722 = vrot.lane.b32.xlu1 %v4364_v0, %s4284_s26  ;;  %720 = vrot.lane.b32.xlu0 %v4396_v10, %s4284_s26  ;;  %v3928_v29 = vpack.c.bf16 %v3232_v22, %v3223_v28 }
  0xb8   : > { %v353_v20 = vpop.permute.xlu1 %352  ;;  %v351_v21 = vpop.permute.xlu0 %350 }
  0xb9   : > { %v364_v23 = vsel %vm358_vm2, %v349_v7, %v351_v21  ;;  %v365_v24 = vsel %vm358_vm2, %v351_v21, %v353_v20  ;;  %v3233_v26 = vld [vmem:[#allocation2 + $0x50] sm:$0xff]  ;;  %v3234_v32 = vld [vmem:[#allocation2 + $0x58] sm:$0xff] }
  0xba   : > { %382 = vst [vmem:[#allocation2 + $0x70] sm:$0xf0] %v364_v23  ;;  %383 = vst [vmem:[#allocation2 + $0x78] sm:$0xf0] %v365_v24  ;;  %726 = vrot.lane.b32.xlu1 %v4380_v3, %s4284_s26  ;;  %724 = vrot.lane.b32.xlu0 %v4400_v11, %s4284_s26  ;;  %v3926_v27 = vpack.c.bf16 %v3233_v26, %v3224_v25  ;;  %v3976_v39 = vpack.c.bf16 %v3234_v32, %v3225_v38 }
  0xbc   : > { %v357_v30 = vpop.permute.xlu1 %356  ;;  %v355_v31 = vpop.permute.xlu0 %354  ;;  %3927 = vmatprep.subr.bf16.mxu0 %v3926_v27 }
  0xbd   : > { %v366_v33 = vsel %vm358_vm2, %v353_v20, %v355_v31  ;;  %v367_v34 = vsel %vm358_vm2, %v355_v31, %v357_v30  ;;  %3929 = vmatpush1.bf16.msra.mxu0 %v3928_v29  ;;  %v3235_v36 = vld [vmem:[#allocation2 + $0x60] sm:$0xff]  ;;  %vm1366_vm2 = vcmask 400384  }
  0xbe   : > { %384 = vst [vmem:[#allocation2 + $0x80] sm:$0xf0] %v366_v33  ;;  %385 = vst [vmem:[#allocation2 + $0x88] sm:$0xf0] %v367_v34  ;;  %730 = vrot.lane.b32.xlu1 %v4408_v13, %s4284_s26  ;;  %728 = vrot.lane.b32.xlu0 %v4416_v14, %s4284_s26  ;;  %v3974_v37 = vpack.c.bf16 %v3235_v36, %v3226_v35 }
  0xc0   : > { %v404_v40 = vpop.permute.xlu1 %403  ;;  %v402_v41 = vpop.permute.xlu0 %401  ;;  %3975 = vmatprep.subr.bf16.mxu1 %v3974_v37 }
  0xc1   : > { %v422_v42 = vsel %vm421_vm3, %v402_v41, %v404_v40  ;;  %3977 = vmatpush1.bf16.msra.mxu1 %v3976_v39 }
  0xc2   : > { %440 = vst [vmem:[#allocation2 + $0x90] sm:$0xf] %v422_v42  ;;  %734 = vrot.lane.b32.xlu1 %v4419_v15, %s4284_s26  ;;  %732 = vrot.lane.b32.xlu0 %v4427_v16, %s4284_s26  ;;  %s4308_s26 = smov 103  }
  0xc4   : > { %v408_v43 = vpop.permute.xlu1 %407  ;;  %v406_v44 = vpop.permute.xlu0 %405 }
  0xc5   : > { %v423_v45 = vsel %vm421_vm3, %v404_v40, %v406_v44  ;;  %v424_v46 = vsel %vm421_vm3, %v406_v44, %v408_v43 }
  0xc6   : > { %441 = vst [vmem:[#allocation2 + $0x98] sm:$0xf] %v423_v45  ;;  %442 = vst [vmem:[#allocation2 + $0xa0] sm:$0xf] %v424_v46  ;;  %781 = vrot.lane.b32.xlu1 %v4384_v4, %s4285_s27  ;;  %779 = vrot.lane.b32.xlu0 %v4367_v1, %s4285_s27 }
  0xc8   : > { %v412_v47 = vpop.permute.xlu1 %411  ;;  %v410_v48 = vpop.permute.xlu0 %409 }
  0xc9   : > { %v425_v49 = vsel %vm421_vm3, %v408_v43, %v410_v48  ;;  %v426_v50 = vsel %vm421_vm3, %v410_v48, %v412_v47 }
  0xca   : > { %443 = vst [vmem:[#allocation2 + $0xa8] sm:$0xf] %v425_v49  ;;  %444 = vst [vmem:[#allocation2 + $0xb0] sm:$0xf] %v426_v50  ;;  %785 = vrot.lane.b32.xlu1 %v4388_v5, %s4285_s27  ;;  %783 = vrot.lane.b32.xlu0 %v4364_v0, %s4285_s27 }
  0xcc   : > { %v416_v51 = vpop.permute.xlu1 %415  ;;  %v414_v52 = vpop.permute.xlu0 %413 }
  0xcd   : > { %v427_v53 = vsel %vm421_vm3, %v412_v47, %v414_v52  ;;  %v428_v54 = vsel %vm421_vm3, %v414_v52, %v416_v51 }
  0xce   : > { %445 = vst [vmem:[#allocation2 + $0xb8] sm:$0xf] %v427_v53  ;;  %446 = vst [vmem:[#allocation2 + $0xc0] sm:$0xf] %v428_v54  ;;  %789 = vrot.lane.b32.xlu1 %v4439_v17, %s4285_s27  ;;  %787 = vrot.lane.b32.xlu0 %v4380_v3, %s4285_s27 }
  0xd0   : > { %v420_v55 = vpop.permute.xlu1 %419  ;;  %v418_v56 = vpop.permute.xlu0 %417 }
  0xd1   : > { %v429_v57 = vsel %vm421_vm3, %v416_v51, %v418_v56  ;;  %v430_v58 = vsel %vm421_vm3, %v418_v56, %v420_v55  ;;  %vm1429_vm3 = vcmask 392192  }
  0xd2   : > { %447 = vst [vmem:[#allocation2 + $0xc8] sm:$0xf] %v429_v57  ;;  %448 = vst [vmem:[#allocation2 + $0xd0] sm:$0xf] %v430_v58  ;;  %793 = vrot.lane.b32.xlu1 %v4445_v18, %s4285_s27  ;;  %791 = vrot.lane.b32.xlu0 %v4408_v13, %s4285_s27 }
  0xd4   : > { %v467_v59 = vpop.permute.xlu1 %466  ;;  %v465_v60 = vpop.permute.xlu0 %464 }
  0xd5   : > { %v485_v61 = vsel %vm484_vm4, %v465_v60, %v467_v59 }
  0xd6   : > { %503 = vst [vmem:[#allocation2 + $0x90] sm:$0xf0] %v485_v61  ;;  %797 = vrot.lane.b32.xlu1 %v4451_v19, %s4285_s27  ;;  %795 = vrot.lane.b32.xlu0 %v4419_v15, %s4285_s27  ;;  %s4309_s27 = smov 102  }
  0xd8   : > { %v471_v62 = vpop.permute.xlu1 %470  ;;  %v469_v63 = vpop.permute.xlu0 %468 }
  0xd9   : > { %v486_v6 = vsel %vm484_vm4, %v467_v59, %v469_v63  ;;  %v487_v7 = vsel %vm484_vm4, %v469_v63, %v471_v62 }
  0xda   : > { %504 = vst [vmem:[#allocation2 + $0x98] sm:$0xf0] %v486_v6  ;;  %505 = vst [vmem:[#allocation2 + $0xa0] sm:$0xf0] %v487_v7  ;;  %844 = vrot.lane.b32.xlu1 %v4367_v1, %s4286_s28  ;;  %842 = vrot.lane.b32.xlu0 %v4375_v2, %s4286_s28 }
  0xdc   : > { %v475_v8 = vpop.permute.xlu1 %474  ;;  %v473_v9 = vpop.permute.xlu0 %472 }
  0xdd   : > { %v488_v12 = vsel %vm484_vm4, %v471_v62, %v473_v9  ;;  %v489_v20 = vsel %vm484_vm4, %v473_v9, %v475_v8  ;;  %v3241_v59 = vld [vmem:[#allocation2 + $0x90] sm:$0xff] }
  0xde   : > { %506 = vst [vmem:[#allocation2 + $0xa8] sm:$0xf0] %v488_v12  ;;  %507 = vst [vmem:[#allocation2 + $0xb0] sm:$0xf0] %v489_v20  ;;  %848 = vrot.lane.b32.xlu1 %v4364_v0, %s4286_s28  ;;  %846 = vrot.lane.b32.xlu0 %v4396_v10, %s4286_s28  ;;  %v4695_v12 = vld [vmem:[%s4361_s17] sm:$0xff] }
  0xe0   : > { %v479_v21 = vpop.permute.xlu1 %478  ;;  %v477_v22 = vpop.permute.xlu0 %476 }
  0xe1   : > { %v490_v23 = vsel %vm484_vm4, %v475_v8, %v477_v22  ;;  %v491_v24 = vsel %vm484_vm4, %v477_v22, %v479_v21  ;;  %v3242_v57 = vld [vmem:[#allocation2 + $0x98] sm:$0xff] }
  0xe2   : > { %508 = vst [vmem:[#allocation2 + $0xb8] sm:$0xf0] %v490_v23  ;;  %509 = vst [vmem:[#allocation2 + $0xc0] sm:$0xf0] %v491_v24  ;;  %852 = vrot.lane.b32.xlu1 %v4380_v3, %s4286_s28  ;;  %850 = vrot.lane.b32.xlu0 %v4400_v11, %s4286_s28 }
  0xe4   : > { %v483_v25 = vpop.permute.xlu1 %482  ;;  %v481_v26 = vpop.permute.xlu0 %480 }
  0xe5   : > { %v492_v27 = vsel %vm484_vm4, %v479_v21, %v481_v26  ;;  %v493_v28 = vsel %vm484_vm4, %v481_v26, %v483_v25  ;;  %v3244_v7 = vld [vmem:[#allocation2 + $0xa8] sm:$0xff]  ;;  %vm1492_vm4 = vcmask 138240  }
  0xe6   : > { %510 = vst [vmem:[#allocation2 + $0xc8] sm:$0xf0] %v492_v27  ;;  %511 = vst [vmem:[#allocation2 + $0xd0] sm:$0xf0] %v493_v28  ;;  %856 = vrot.lane.b32.xlu1 %v4408_v13, %s4286_s28  ;;  %854 = vrot.lane.b32.xlu0 %v4416_v14, %s4286_s28 }
  0xe8   : > { %v530_v29 = vpop.permute.xlu1 %529  ;;  %v528_v30 = vpop.permute.xlu0 %527 }
  0xe9   : > { %v548_v31 = vsel %vm547_vm5, %v528_v30, %v530_v29 }
  0xea   : > { %566 = vst [vmem:[#allocation2 + $0xd8] sm:$0xf] %v548_v31  ;;  %860 = vrot.lane.b32.xlu1 %v4419_v15, %s4286_s28  ;;  %858 = vrot.lane.b32.xlu0 %v4427_v16, %s4286_s28  ;;  %s4310_s28 = smov 71  }
  0xec   : > { %v534_v32 = vpop.permute.xlu1 %533  ;;  %v532_v33 = vpop.permute.xlu0 %531 }
  0xed   : > { %v549_v34 = vsel %vm547_vm5, %v530_v29, %v532_v33  ;;  %v550_v35 = vsel %vm547_vm5, %v532_v33, %v534_v32 }
  0xee   : > { %567 = vst [vmem:[#allocation2 + $0xe0] sm:$0xf] %v549_v34  ;;  %568 = vst [vmem:[#allocation2 + $0xe8] sm:$0xf] %v550_v35  ;;  %907 = vrot.lane.b32.xlu1 %v4384_v4, %s4287_s29  ;;  %905 = vrot.lane.b32.xlu0 %v4367_v1, %s4287_s29 }
  0xf0   : > { %v538_v36 = vpop.permute.xlu1 %537  ;;  %v536_v37 = vpop.permute.xlu0 %535 }
  0xf1   : > { %v551_v38 = vsel %vm547_vm5, %v534_v32, %v536_v37  ;;  %v552_v39 = vsel %vm547_vm5, %v536_v37, %v538_v36  ;;  %v4733_v32 = vld [vmem:[%s4361_s17 + $0x18] sm:$0xff] }
  0xf2   : > { %569 = vst [vmem:[#allocation2 + $0xf0] sm:$0xf] %v551_v38  ;;  %570 = vst [vmem:[#allocation2 + $0xf8] sm:$0xf] %v552_v39  ;;  %911 = vrot.lane.b32.xlu1 %v4388_v5, %s4287_s29  ;;  %909 = vrot.lane.b32.xlu0 %v4364_v0, %s4287_s29  ;;  %v4743_v37 = vcombine.high %v4733_v32, %v4733_v32  ;;  %v4746_v38 = vld [vmem:[%s4361_s17 + $0x20] sm:$0xff] }
  0xf4   : > { %v542_v40 = vpop.permute.xlu1 %541  ;;  %v540_v41 = vpop.permute.xlu0 %539 }
  0xf5   : > { %v553_v4 = vsel %vm547_vm5, %v538_v36, %v540_v41  ;;  %v554_v42 = vsel %vm547_vm5, %v540_v41, %v542_v40 }
  0xf6   : > { %571 = vst [vmem:[#allocation2 + $0x100] sm:$0xf] %v553_v4  ;;  %572 = vst [vmem:[#allocation2 + $0x108] sm:$0xf] %v554_v42  ;;  %915 = vrot.lane.b32.xlu1 %v4439_v17, %s4287_s29  ;;  %913 = vrot.lane.b32.xlu0 %v4380_v3, %s4287_s29  ;;  %v4756_v42 = vcombine.high %v4746_v38, %v4746_v38 }
  0xf8   : > { %v546_v43 = vpop.permute.xlu1 %545  ;;  %v544_v44 = vpop.permute.xlu0 %543 }
  0xf9   : > { %v555_v5 = vsel %vm547_vm5, %v542_v40, %v544_v44  ;;  %v556_v45 = vsel %vm547_vm5, %v544_v44, %v546_v43  ;;  %vm1555_vm5 = vcmask 130048  }
  0xfa   : > { %573 = vst [vmem:[#allocation2 + $0x110] sm:$0xf] %v555_v5  ;;  %574 = vst [vmem:[#allocation2 + $0x118] sm:$0xf] %v556_v45  ;;  %919 = vrot.lane.b32.xlu1 %v4445_v18, %s4287_s29  ;;  %917 = vrot.lane.b32.xlu0 %v4408_v13, %s4287_s29  ;;  %v4765_v45 = vcombine.low %v4695_v12, %v4695_v12 }
  0xfc   : > { %v593_v46 = vpop.permute.xlu1 %592  ;;  %v591_v17 = vpop.permute.xlu0 %590 }
  0xfd   : > { %v611_v47 = vsel %vm610_vm6, %v591_v17, %v593_v46 }
  0xfe   : > { %629 = vst [vmem:[#allocation2 + $0xd8] sm:$0xf0] %v611_v47  ;;  %923 = vrot.lane.b32.xlu1 %v4451_v19, %s4287_s29  ;;  %921 = vrot.lane.b32.xlu0 %v4419_v15, %s4287_s29  ;;  %s4311_s29 = smov 70  }
 0x100   : > { %v597_v48 = vpop.permute.xlu1 %596  ;;  %v595_v49 = vpop.permute.xlu0 %594 }
 0x101   : > { %v612_v50 = vsel %vm610_vm6, %v593_v46, %v595_v49  ;;  %v613_v18 = vsel %vm610_vm6, %v595_v49, %v597_v48 }
 0x102   : > { %630 = vst [vmem:[#allocation2 + $0xe0] sm:$0xf0] %v612_v50  ;;  %631 = vst [vmem:[#allocation2 + $0xe8] sm:$0xf0] %v613_v18  ;;  %970 = vrot.lane.b32.xlu1 %v4367_v1, %s4288_s30  ;;  %968 = vrot.lane.b32.xlu0 %v4375_v2, %s4288_s30 }
 0x104   : > { %v601_v51 = vpop.permute.xlu1 %600  ;;  %v599_v19 = vpop.permute.xlu0 %598 }
 0x105   : > { %v614_v52 = vsel %vm610_vm6, %v597_v48, %v599_v19  ;;  %v615_v53 = vsel %vm610_vm6, %v599_v19, %v601_v51  ;;  %v3250_v1 = vld [vmem:[#allocation2 + $0xd8] sm:$0xff] }
 0x106   : > { %632 = vst [vmem:[#allocation2 + $0xf0] sm:$0xf0] %v614_v52  ;;  %633 = vst [vmem:[#allocation2 + $0xf8] sm:$0xf0] %v615_v53  ;;  %974 = vrot.lane.b32.xlu1 %v4364_v0, %s4288_s30  ;;  %972 = vrot.lane.b32.xlu0 %v4396_v10, %s4288_s30  ;;  %v3932_v10 = vpack.c.bf16 %v3250_v1, %v3241_v59  ;;  %v4805_v59 = vcombine.low %v4746_v38, %v4746_v38 }
 0x108   : > { %v605_v54 = vpop.permute.xlu1 %604  ;;  %v603_v55 = vpop.permute.xlu0 %602 }
 0x109   : > { %v616_v56 = vsel %vm610_vm6, %v601_v51, %v603_v55  ;;  %v617_v2 = vsel %vm610_vm6, %v603_v55, %v605_v54  ;;  %v3251_v58 = vld [vmem:[#allocation2 + $0xe0] sm:$0xff]  ;;  %v3252_v62 = vld [vmem:[#allocation2 + $0xe8] sm:$0xff] }
 0x10a   : > { %634 = vst [vmem:[#allocation2 + $0x100] sm:$0xf0] %v616_v56  ;;  %635 = vst [vmem:[#allocation2 + $0x108] sm:$0xf0] %v617_v2  ;;  %978 = vrot.lane.b32.xlu1 %v4380_v3, %s4288_s30  ;;  %976 = vrot.lane.b32.xlu0 %v4400_v11, %s4288_s30  ;;  %v3930_v0 = vpack.c.bf16 %v3251_v58, %v3242_v57  ;;  %v3243_v11 = vld [vmem:[#allocation2 + $0xa0] sm:$0xff]  ;;  %v4795_v56 = vcombine.low %v4733_v32, %v4733_v32 }
 0x10b   : > { %v3980_v9 = vpack.c.bf16 %v3252_v62, %v3243_v11 }
 0x10c   : > { %v609_v60 = vpop.permute.xlu1 %608  ;;  %v607_v61 = vpop.permute.xlu0 %606  ;;  %3931 = vmatprep.subr.bf16.mxu0 %v3930_v0 }
 0x10d   : > { %v618_v63 = vsel %vm610_vm6, %v605_v54, %v607_v61  ;;  %v619_v6 = vsel %vm610_vm6, %v607_v61, %v609_v60  ;;  %3933 = vmatpush1.bf16.msra.mxu0 %v3932_v10  ;;  %v3253_v8 = vld [vmem:[#allocation2 + $0xf0] sm:$0xff]  ;;  %vm1618_vm6 = vcmask 121856  }
 0x10e   : > { %636 = vst [vmem:[#allocation2 + $0x110] sm:$0xf0] %v618_v63  ;;  %637 = vst [vmem:[#allocation2 + $0x118] sm:$0xf0] %v619_v6  ;;  %982 = vrot.lane.b32.xlu1 %v4408_v13, %s4288_s30  ;;  %980 = vrot.lane.b32.xlu0 %v4416_v14, %s4288_s30  ;;  %v3978_v3 = vpack.c.bf16 %v3253_v8, %v3244_v7  ;;  %v4704_v13 = vcombine.high %v4695_v12, %v4695_v12  ;;  %v4707_v14 = vld [vmem:[%s4361_s17 + $0x8] sm:$0xff] }
 0x10f   : > { %v4775_v49 = vcombine.low %v4707_v14, %v4707_v14 }
 0x110   : > { %v656_v20 = vpop.permute.xlu1 %655  ;;  %v654_v21 = vpop.permute.xlu0 %653  ;;  %3979 = vmatprep.subr.bf16.mxu1 %v3978_v3 }
 0x111   : > { %v674_v22 = vsel %vm673_vm7, %v654_v21, %v656_v20  ;;  %3981 = vmatpush1.bf16.msra.mxu1 %v3980_v9 }
 0x112   : > { %692 = vst [vmem:[#allocation2 + $0x120] sm:$0xf] %v674_v22  ;;  %986 = vrot.lane.b32.xlu1 %v4419_v15, %s4288_s30  ;;  %984 = vrot.lane.b32.xlu0 %v4427_v16, %s4288_s30  ;;  %v4717_v15 = vcombine.high %v4707_v14, %v4707_v14  ;;  %v4720_v16 = vld [vmem:[%s4361_s17 + $0x10] sm:$0xff]  ;;  %s4312_s30 = smov 69  }
 0x113   : > { %v4730_v31 = vcombine.high %v4720_v16, %v4720_v16  ;;  %v4785_v52 = vcombine.low %v4720_v16, %v4720_v16 }
 0x114   : > { %v660_v23 = vpop.permute.xlu1 %659  ;;  %v658_v24 = vpop.permute.xlu0 %657 }
 0x115   : > { %v675_v25 = vsel %vm673_vm7, %v656_v20, %v658_v24  ;;  %v676_v26 = vsel %vm673_vm7, %v658_v24, %v660_v23 }
 0x116   : > { %693 = vst [vmem:[#allocation2 + $0x128] sm:$0xf] %v675_v25  ;;  %694 = vst [vmem:[#allocation2 + $0x130] sm:$0xf] %v676_v26  ;;  %1033 = vrot.lane.b32.xlu1 %v4704_v13, %s4289_s4  ;;  %1031 = vrot.lane.b32.xlu0 %v4695_v12, %s4289_s4 }
 0x118   : > { %v664_v27 = vpop.permute.xlu1 %663  ;;  %v662_v28 = vpop.permute.xlu0 %661 }
 0x119   : > { %v677_v29 = vsel %vm673_vm7, %v660_v23, %v662_v28  ;;  %v678_v30 = vsel %vm673_vm7, %v662_v28, %v664_v27 }
 0x11a   : > { %695 = vst [vmem:[#allocation2 + $0x138] sm:$0xf] %v677_v29  ;;  %696 = vst [vmem:[#allocation2 + $0x140] sm:$0xf] %v678_v30  ;;  %1037 = vrot.lane.b32.xlu1 %v4717_v15, %s4289_s4  ;;  %1035 = vrot.lane.b32.xlu0 %v4707_v14, %s4289_s4 }
 0x11c   : > { %v668_v33 = vpop.permute.xlu1 %667  ;;  %v666_v34 = vpop.permute.xlu0 %665 }
 0x11d   : > { %v679_v35 = vsel %vm673_vm7, %v664_v27, %v666_v34  ;;  %v680_v36 = vsel %vm673_vm7, %v666_v34, %v668_v33 }
 0x11e   : > { %697 = vst [vmem:[#allocation2 + $0x148] sm:$0xf] %v679_v35  ;;  %698 = vst [vmem:[#allocation2 + $0x150] sm:$0xf] %v680_v36  ;;  %1041 = vrot.lane.b32.xlu1 %v4730_v31, %s4289_s4  ;;  %1039 = vrot.lane.b32.xlu0 %v4720_v16, %s4289_s4 }
 0x120   : > { %v672_v39 = vpop.permute.xlu1 %671  ;;  %v670_v40 = vpop.permute.xlu0 %669 }
 0x121   : > { %v681_v41 = vsel %vm673_vm7, %v668_v33, %v670_v40  ;;  %v682_v4 = vsel %vm673_vm7, %v670_v40, %v672_v39  ;;  %vm1681_vm7 = vcmask 113664  }
 0x122   : > { %699 = vst [vmem:[#allocation2 + $0x158] sm:$0xf] %v681_v41  ;;  %700 = vst [vmem:[#allocation2 + $0x160] sm:$0xf] %v682_v4  ;;  %1045 = vrot.lane.b32.xlu1 %v4743_v37, %s4289_s4  ;;  %1043 = vrot.lane.b32.xlu0 %v4733_v32, %s4289_s4 }
 0x124   : > { %v719_v43 = vpop.permute.xlu1 %718  ;;  %v717_v44 = vpop.permute.xlu0 %716 }
 0x125   : > { %v737_v5 = vsel %vm736_vm8, %v717_v44, %v719_v43 }
 0x126   : > { %755 = vst [vmem:[#allocation2 + $0x120] sm:$0xf0] %v737_v5  ;;  %1049 = vrot.lane.b32.xlu1 %v4756_v42, %s4289_s4  ;;  %1047 = vrot.lane.b32.xlu0 %v4746_v38, %s4289_s4  ;;  %s4313_s4 = smov 68  }
 0x128   : > { %v723_v46 = vpop.permute.xlu1 %722  ;;  %v721_v17 = vpop.permute.xlu0 %720 }
 0x129   : > { %v738_v47 = vsel %vm736_vm8, %v719_v43, %v721_v17  ;;  %v739_v48 = vsel %vm736_vm8, %v721_v17, %v723_v46 }
 0x12a   : > { %756 = vst [vmem:[#allocation2 + $0x128] sm:$0xf0] %v738_v47  ;;  %757 = vst [vmem:[#allocation2 + $0x130] sm:$0xf0] %v739_v48  ;;  %1096 = vrot.lane.b32.xlu1 %v4695_v12, %s4290_s5  ;;  %1094 = vrot.lane.b32.xlu0 %v4765_v45, %s4290_s5 }
 0x12c   : > { %v727_v50 = vpop.permute.xlu1 %726  ;;  %v725_v18 = vpop.permute.xlu0 %724 }
 0x12d   : > { %v740_v51 = vsel %vm736_vm8, %v723_v46, %v725_v18  ;;  %v741_v19 = vsel %vm736_vm8, %v725_v18, %v727_v50  ;;  %v3259_v18 = vld [vmem:[#allocation2 + $0x120] sm:$0xff] }
 0x12e   : > { %758 = vst [vmem:[#allocation2 + $0x138] sm:$0xf0] %v740_v51  ;;  %759 = vst [vmem:[#allocation2 + $0x140] sm:$0xf0] %v741_v19  ;;  %1100 = vrot.lane.b32.xlu1 %v4707_v14, %s4290_s5  ;;  %1098 = vrot.lane.b32.xlu0 %v4775_v49, %s4290_s5 }
 0x130   : > { %v731_v53 = vpop.permute.xlu1 %730  ;;  %v729_v54 = vpop.permute.xlu0 %728 }
 0x131   : > { %v742_v55 = vsel %vm736_vm8, %v727_v50, %v729_v54  ;;  %v743_v1 = vsel %vm736_vm8, %v729_v54, %v731_v53  ;;  %v3260_v47 = vld [vmem:[#allocation2 + $0x128] sm:$0xff] }
 0x132   : > { %760 = vst [vmem:[#allocation2 + $0x148] sm:$0xf0] %v742_v55  ;;  %761 = vst [vmem:[#allocation2 + $0x150] sm:$0xf0] %v743_v1  ;;  %1104 = vrot.lane.b32.xlu1 %v4720_v16, %s4290_s5  ;;  %1102 = vrot.lane.b32.xlu0 %v4785_v52, %s4290_s5 }
 0x134   : > { %v735_v2 = vpop.permute.xlu1 %734  ;;  %v733_v57 = vpop.permute.xlu0 %732 }
 0x135   : > { %v744_v58 = vsel %vm736_vm8, %v731_v53, %v733_v57  ;;  %v745_v0 = vsel %vm736_vm8, %v733_v57, %v735_v2  ;;  %v3262_v2 = vld [vmem:[#allocation2 + $0x138] sm:$0xff]  ;;  %vm1744_vm8 = vcmask 105472  }
 0x136   : > { %762 = vst [vmem:[#allocation2 + $0x158] sm:$0xf0] %v744_v58  ;;  %763 = vst [vmem:[#allocation2 + $0x160] sm:$0xf0] %v745_v0  ;;  %1108 = vrot.lane.b32.xlu1 %v4733_v32, %s4290_s5  ;;  %1106 = vrot.lane.b32.xlu0 %v4795_v56, %s4290_s5  ;;  %v3261_v0 = vld [vmem:[#allocation2 + $0x130] sm:$0xff] }
 0x138   : > { %v782_v10 = vpop.permute.xlu1 %781  ;;  %v780_v60 = vpop.permute.xlu0 %779 }
 0x139   : > { %v800_v61 = vsel %vm799_vm9, %v780_v60, %v782_v10 }
 0x13a   : > { %818 = vst [vmem:[#allocation2 + $0x168] sm:$0xf] %v800_v61  ;;  %1112 = vrot.lane.b32.xlu1 %v4746_v38, %s4290_s5  ;;  %1110 = vrot.lane.b32.xlu0 %v4805_v59, %s4290_s5  ;;  %s4314_s5 = smov 67  }
 0x13c   : > { %v786_v62 = vpop.permute.xlu1 %785  ;;  %v784_v63 = vpop.permute.xlu0 %783 }
 0x13d   : > { %v801_v6 = vsel %vm799_vm9, %v782_v10, %v784_v63  ;;  %v802_v7 = vsel %vm799_vm9, %v784_v63, %v786_v62 }
 0x13e   : > { %819 = vst [vmem:[#allocation2 + $0x170] sm:$0xf] %v801_v6  ;;  %820 = vst [vmem:[#allocation2 + $0x178] sm:$0xf] %v802_v7  ;;  %1159 = vrot.lane.b32.xlu1 %v4704_v13, %s4291_s6  ;;  %1157 = vrot.lane.b32.xlu0 %v4695_v12, %s4291_s6 }
 0x140   : > { %v790_v8 = vpop.permute.xlu1 %789  ;;  %v788_v3 = vpop.permute.xlu0 %787 }
 0x141   : > { %v803_v11 = vsel %vm799_vm9, %v786_v62, %v788_v3  ;;  %v804_v9 = vsel %vm799_vm9, %v788_v3, %v790_v8 }
 0x142   : > { %821 = vst [vmem:[#allocation2 + $0x180] sm:$0xf] %v803_v11  ;;  %822 = vst [vmem:[#allocation2 + $0x188] sm:$0xf] %v804_v9  ;;  %1163 = vrot.lane.b32.xlu1 %v4717_v15, %s4291_s6  ;;  %1161 = vrot.lane.b32.xlu0 %v4707_v14, %s4291_s6 }
 0x144   : > { %v794_v20 = vpop.permute.xlu1 %793  ;;  %v792_v21 = vpop.permute.xlu0 %791 }
 0x145   : > { %v805_v22 = vsel %vm799_vm9, %v790_v8, %v792_v21  ;;  %v806_v23 = vsel %vm799_vm9, %v792_v21, %v794_v20 }
 0x146   : > { %823 = vst [vmem:[#allocation2 + $0x190] sm:$0xf] %v805_v22  ;;  %824 = vst [vmem:[#allocation2 + $0x198] sm:$0xf] %v806_v23  ;;  %1167 = vrot.lane.b32.xlu1 %v4730_v31, %s4291_s6  ;;  %1165 = vrot.lane.b32.xlu0 %v4720_v16, %s4291_s6 }
 0x148   : > { %v798_v24 = vpop.permute.xlu1 %797  ;;  %v796_v25 = vpop.permute.xlu0 %795 }
 0x149   : > { %v807_v26 = vsel %vm799_vm9, %v794_v20, %v796_v25  ;;  %v808_v27 = vsel %vm799_vm9, %v796_v25, %v798_v24  ;;  %vm1807_vm9 = vcmask 97280  }
 0x14a   : > { %825 = vst [vmem:[#allocation2 + $0x1a0] sm:$0xf] %v807_v26  ;;  %826 = vst [vmem:[#allocation2 + $0x1a8] sm:$0xf] %v808_v27  ;;  %1171 = vrot.lane.b32.xlu1 %v4743_v37, %s4291_s6  ;;  %1169 = vrot.lane.b32.xlu0 %v4733_v32, %s4291_s6 }
 0x14c   : > { %v845_v28 = vpop.permute.xlu1 %844  ;;  %v843_v29 = vpop.permute.xlu0 %842 }
 0x14d   : > { %v863_v30 = vsel %vm862_vm10, %v843_v29, %v845_v28 }
 0x14e   : > { %881 = vst [vmem:[#allocation2 + $0x168] sm:$0xf0] %v863_v30  ;;  %1175 = vrot.lane.b32.xlu1 %v4756_v42, %s4291_s6  ;;  %1173 = vrot.lane.b32.xlu0 %v4746_v38, %s4291_s6  ;;  %s4315_s6 = smov 66  }
 0x150   : > { %v849_v33 = vpop.permute.xlu1 %848  ;;  %v847_v34 = vpop.permute.xlu0 %846 }
 0x151   : > { %v864_v35 = vsel %vm862_vm10, %v845_v28, %v847_v34  ;;  %v865_v36 = vsel %vm862_vm10, %v847_v34, %v849_v33 }
 0x152   : > { %882 = vst [vmem:[#allocation2 + $0x170] sm:$0xf0] %v864_v35  ;;  %883 = vst [vmem:[#allocation2 + $0x178] sm:$0xf0] %v865_v36  ;;  %1222 = vrot.lane.b32.xlu1 %v4695_v12, %s4292_s7  ;;  %1220 = vrot.lane.b32.xlu0 %v4765_v45, %s4292_s7 }
 0x154   : > { %v853_v39 = vpop.permute.xlu1 %852  ;;  %v851_v40 = vpop.permute.xlu0 %850 }
 0x155   : > { %v866_v41 = vsel %vm862_vm10, %v849_v33, %v851_v40  ;;  %v867_v4 = vsel %vm862_vm10, %v851_v40, %v853_v39  ;;  %v3268_v5 = vld [vmem:[#allocation2 + $0x168] sm:$0xff] }
 0x156   : > { %884 = vst [vmem:[#allocation2 + $0x180] sm:$0xf0] %v866_v41  ;;  %885 = vst [vmem:[#allocation2 + $0x188] sm:$0xf0] %v867_v4  ;;  %1226 = vrot.lane.b32.xlu1 %v4707_v14, %s4292_s7  ;;  %1224 = vrot.lane.b32.xlu0 %v4775_v49, %s4292_s7  ;;  %v3936_v51 = vpack.c.bf16 %v3268_v5, %v3259_v18 }
 0x158   : > { %v857_v43 = vpop.permute.xlu1 %856  ;;  %v855_v44 = vpop.permute.xlu0 %854 }
 0x159   : > { %v868_v46 = vsel %vm862_vm10, %v853_v39, %v855_v44  ;;  %v869_v17 = vsel %vm862_vm10, %v855_v44, %v857_v43  ;;  %v3269_v48 = vld [vmem:[#allocation2 + $0x170] sm:$0xff]  ;;  %v3270_v54 = vld [vmem:[#allocation2 + $0x178] sm:$0xff] }
 0x15a   : > { %886 = vst [vmem:[#allocation2 + $0x190] sm:$0xf0] %v868_v46  ;;  %887 = vst [vmem:[#allocation2 + $0x198] sm:$0xf0] %v869_v17  ;;  %1230 = vrot.lane.b32.xlu1 %v4720_v16, %s4292_s7  ;;  %1228 = vrot.lane.b32.xlu0 %v4785_v52, %s4292_s7  ;;  %v3934_v50 = vpack.c.bf16 %v3269_v48, %v3260_v47  ;;  %v3984_v10 = vpack.c.bf16 %v3270_v54, %v3261_v0 }
 0x15c   : > { %v861_v19 = vpop.permute.xlu1 %860  ;;  %v859_v53 = vpop.permute.xlu0 %858  ;;  %3935 = vmatprep.subr.bf16.mxu0 %v3934_v50 }
 0x15d   : > { %v870_v55 = vsel %vm862_vm10, %v857_v43, %v859_v53  ;;  %v871_v1 = vsel %vm862_vm10, %v859_v53, %v861_v19  ;;  %3937 = vmatpush1.bf16.msra.mxu0 %v3936_v51  ;;  %v3271_v57 = vld [vmem:[#allocation2 + $0x180] sm:$0xff]  ;;  %vm1870_vm10 = vcmask 89088  }
 0x15e   : > { %888 = vst [vmem:[#allocation2 + $0x1a0] sm:$0xf0] %v870_v55  ;;  %889 = vst [vmem:[#allocation2 + $0x1a8] sm:$0xf0] %v871_v1  ;;  %1234 = vrot.lane.b32.xlu1 %v4733_v32, %s4292_s7  ;;  %1232 = vrot.lane.b32.xlu0 %v4795_v56, %s4292_s7  ;;  %v3982_v58 = vpack.c.bf16 %v3271_v57, %v3262_v2 }
 0x160   : > { %v908_v60 = vpop.permute.xlu1 %907  ;;  %v906_v61 = vpop.permute.xlu0 %905  ;;  %3983 = vmatprep.subr.bf16.mxu1 %v3982_v58 }
 0x161   : > { %v926_v62 = vsel %vm925_vm11, %v906_v61, %v908_v60  ;;  %3985 = vmatpush1.bf16.msra.mxu1 %v3984_v10 }
 0x162   : > { %944 = vst [vmem:[#allocation2 + $0x1b0] sm:$0xf] %v926_v62  ;;  %1238 = vrot.lane.b32.xlu1 %v4746_v38, %s4292_s7  ;;  %1236 = vrot.lane.b32.xlu0 %v4805_v59, %s4292_s7  ;;  %s4316_s7 = smov 65  }
 0x164   : > { %v912_v63 = vpop.permute.xlu1 %911  ;;  %v910_v6 = vpop.permute.xlu0 %909 }
 0x165   : > { %v927_v7 = vsel %vm925_vm11, %v908_v60, %v910_v6  ;;  %v928_v8 = vsel %vm925_vm11, %v910_v6, %v912_v63 }
 0x166   : > { %945 = vst [vmem:[#allocation2 + $0x1b8] sm:$0xf] %v927_v7  ;;  %946 = vst [vmem:[#allocation2 + $0x1c0] sm:$0xf] %v928_v8  ;;  %1285 = vrot.lane.b32.xlu1 %v4704_v13, %s4293_s8  ;;  %1283 = vrot.lane.b32.xlu0 %v4695_v12, %s4293_s8 }
 0x168   : > { %v916_v3 = vpop.permute.xlu1 %915  ;;  %v914_v11 = vpop.permute.xlu0 %913 }
 0x169   : > { %v929_v9 = vsel %vm925_vm11, %v912_v63, %v914_v11  ;;  %v930_v20 = vsel %vm925_vm11, %v914_v11, %v916_v3 }
 0x16a   : > { %947 = vst [vmem:[#allocation2 + $0x1c8] sm:$0xf] %v929_v9  ;;  %948 = vst [vmem:[#allocation2 + $0x1d0] sm:$0xf] %v930_v20  ;;  %1289 = vrot.lane.b32.xlu1 %v4717_v15, %s4293_s8  ;;  %1287 = vrot.lane.b32.xlu0 %v4707_v14, %s4293_s8 }
 0x16c   : > { %v920_v21 = vpop.permute.xlu1 %919  ;;  %v918_v22 = vpop.permute.xlu0 %917 }
 0x16d   : > { %v931_v23 = vsel %vm925_vm11, %v916_v3, %v918_v22  ;;  %v932_v24 = vsel %vm925_vm11, %v918_v22, %v920_v21 }
 0x16e   : > { %949 = vst [vmem:[#allocation2 + $0x1d8] sm:$0xf] %v931_v23  ;;  %950 = vst [vmem:[#allocation2 + $0x1e0] sm:$0xf] %v932_v24  ;;  %1293 = vrot.lane.b32.xlu1 %v4730_v31, %s4293_s8  ;;  %1291 = vrot.lane.b32.xlu0 %v4720_v16, %s4293_s8 }
 0x170   : > { %v924_v25 = vpop.permute.xlu1 %923  ;;  %v922_v26 = vpop.permute.xlu0 %921 }
 0x171   : > { %v933_v27 = vsel %vm925_vm11, %v920_v21, %v922_v26  ;;  %v934_v28 = vsel %vm925_vm11, %v922_v26, %v924_v25  ;;  %vm1933_vm11 = vcmask 883712  }
 0x172   : > { %951 = vst [vmem:[#allocation2 + $0x1e8] sm:$0xf] %v933_v27  ;;  %952 = vst [vmem:[#allocation2 + $0x1f0] sm:$0xf] %v934_v28  ;;  %1297 = vrot.lane.b32.xlu1 %v4743_v37, %s4293_s8  ;;  %1295 = vrot.lane.b32.xlu0 %v4733_v32, %s4293_s8 }
 0x174   : > { %v971_v29 = vpop.permute.xlu1 %970  ;;  %v969_v30 = vpop.permute.xlu0 %968 }
 0x175   : > { %v989_v33 = vsel %vm988_vm12, %v969_v30, %v971_v29 }
 0x176   : > { %1007 = vst [vmem:[#allocation2 + $0x1b0] sm:$0xf0] %v989_v33  ;;  %1301 = vrot.lane.b32.xlu1 %v4756_v42, %s4293_s8  ;;  %1299 = vrot.lane.b32.xlu0 %v4746_v38, %s4293_s8  ;;  %s4317_s8 = smov 34  }
 0x178   : > { %v975_v34 = vpop.permute.xlu1 %974  ;;  %v973_v35 = vpop.permute.xlu0 %972 }
 0x179   : > { %v990_v36 = vsel %vm988_vm12, %v971_v29, %v973_v35  ;;  %v991_v39 = vsel %vm988_vm12, %v973_v35, %v975_v34 }
 0x17a   : > { %1008 = vst [vmem:[#allocation2 + $0x1b8] sm:$0xf0] %v990_v36  ;;  %1009 = vst [vmem:[#allocation2 + $0x1c0] sm:$0xf0] %v991_v39  ;;  %1348 = vrot.lane.b32.xlu1 %v4695_v12, %s4294_s9  ;;  %1346 = vrot.lane.b32.xlu0 %v4765_v45, %s4294_s9 }
 0x17c   : > { %v979_v40 = vpop.permute.xlu1 %978  ;;  %v977_v41 = vpop.permute.xlu0 %976 }
 0x17d   : > { %v992_v4 = vsel %vm988_vm12, %v975_v34, %v977_v41  ;;  %v993_v43 = vsel %vm988_vm12, %v977_v41, %v979_v40  ;;  %v3277_v41 = vld [vmem:[#allocation2 + $0x1b0] sm:$0xff] }
 0x17e   : > { %1010 = vst [vmem:[#allocation2 + $0x1c8] sm:$0xf0] %v992_v4  ;;  %1011 = vst [vmem:[#allocation2 + $0x1d0] sm:$0xf0] %v993_v43  ;;  %1352 = vrot.lane.b32.xlu1 %v4707_v14, %s4294_s9  ;;  %1350 = vrot.lane.b32.xlu0 %v4775_v49, %s4294_s9 }
 0x180   : > { %v983_v44 = vpop.permute.xlu1 %982  ;;  %v981_v5 = vpop.permute.xlu0 %980 }
 0x181   : > { %v994_v46 = vsel %vm988_vm12, %v979_v40, %v981_v5  ;;  %v995_v17 = vsel %vm988_vm12, %v981_v5, %v983_v44  ;;  %v3278_v36 = vld [vmem:[#allocation2 + $0x1b8] sm:$0xff] }
 0x182   : > { %1012 = vst [vmem:[#allocation2 + $0x1d8] sm:$0xf0] %v994_v46  ;;  %1013 = vst [vmem:[#allocation2 + $0x1e0] sm:$0xf0] %v995_v17  ;;  %1356 = vrot.lane.b32.xlu1 %v4720_v16, %s4294_s9  ;;  %1354 = vrot.lane.b32.xlu0 %v4785_v52, %s4294_s9 }
 0x184   : > { %v987_v47 = vpop.permute.xlu1 %986  ;;  %v985_v48 = vpop.permute.xlu0 %984 }
 0x185   : > { %v996_v50 = vsel %vm988_vm12, %v983_v44, %v985_v48  ;;  %v997_v18 = vsel %vm988_vm12, %v985_v48, %v987_v47  ;;  %v3280_v47 = vld [vmem:[#allocation2 + $0x1c8] sm:$0xff]  ;;  %vm1996_vm12 = vcmask 875520  }
 0x186   : > { %1014 = vst [vmem:[#allocation2 + $0x1e8] sm:$0xf0] %v996_v50  ;;  %1015 = vst [vmem:[#allocation2 + $0x1f0] sm:$0xf0] %v997_v18  ;;  %1360 = vrot.lane.b32.xlu1 %v4733_v32, %s4294_s9  ;;  %1358 = vrot.lane.b32.xlu0 %v4795_v56, %s4294_s9  ;;  %v3279_v18 = vld [vmem:[#allocation2 + $0x1c0] sm:$0xff] }
 0x188   : > { %v1034_v51 = vpop.permute.xlu1 %1033  ;;  %v1032_v19 = vpop.permute.xlu0 %1031 }
 0x189   : > { %v1052_v53 = vsel %vm1051_vm13, %v1032_v19, %v1034_v51 }
 0x18a   : > { %1070 = vst [vmem:[#allocation2 + $0x1f8] sm:$0xf] %v1052_v53  ;;  %1364 = vrot.lane.b32.xlu1 %v4746_v38, %s4294_s9  ;;  %1362 = vrot.lane.b32.xlu0 %v4805_v59, %s4294_s9  ;;  %s4318_s9 = smov 33  }
 0x18c   : > { %v1038_v54 = vpop.permute.xlu1 %1037  ;;  %v1036_v55 = vpop.permute.xlu0 %1035 }
 0x18d   : > { %v1053_v1 = vsel %vm1051_vm13, %v1034_v51, %v1036_v55  ;;  %v1054_v2 = vsel %vm1051_vm13, %v1036_v55, %v1038_v54 }
 0x18e   : > { %1071 = vst [vmem:[#allocation2 + $0x200] sm:$0xf] %v1053_v1  ;;  %1072 = vst [vmem:[#allocation2 + $0x208] sm:$0xf] %v1054_v2  ;;  %1411 = vrot.lane.b32.xlu1 %v4704_v13, %s4295_s10  ;;  %1409 = vrot.lane.b32.xlu0 %v4695_v12, %s4295_s10 }
 0x190   : > { %v1042_v57 = vpop.permute.xlu1 %1041  ;;  %v1040_v58 = vpop.permute.xlu0 %1039 }
 0x191   : > { %v1055_v0 = vsel %vm1051_vm13, %v1038_v54, %v1040_v58  ;;  %v1056_v10 = vsel %vm1051_vm13, %v1040_v58, %v1042_v57 }
 0x192   : > { %1073 = vst [vmem:[#allocation2 + $0x210] sm:$0xf] %v1055_v0  ;;  %1074 = vst [vmem:[#allocation2 + $0x218] sm:$0xf] %v1056_v10  ;;  %1415 = vrot.lane.b32.xlu1 %v4717_v15, %s4295_s10  ;;  %1413 = vrot.lane.b32.xlu0 %v4707_v14, %s4295_s10 }
 0x194   : > { %v1046_v60 = vpop.permute.xlu1 %1045  ;;  %v1044_v61 = vpop.permute.xlu0 %1043 }
 0x195   : > { %v1057_v62 = vsel %vm1051_vm13, %v1042_v57, %v1044_v61  ;;  %v1058_v63 = vsel %vm1051_vm13, %v1044_v61, %v1046_v60 }
 0x196   : > { %1075 = vst [vmem:[#allocation2 + $0x220] sm:$0xf] %v1057_v62  ;;  %1076 = vst [vmem:[#allocation2 + $0x228] sm:$0xf] %v1058_v63  ;;  %1419 = vrot.lane.b32.xlu1 %v4730_v31, %s4295_s10  ;;  %1417 = vrot.lane.b32.xlu0 %v4720_v16, %s4295_s10 }
 0x198   : > { %v1050_v6 = vpop.permute.xlu1 %1049  ;;  %v1048_v7 = vpop.permute.xlu0 %1047 }
 0x199   : > { %v1059_v8 = vsel %vm1051_vm13, %v1046_v60, %v1048_v7  ;;  %v1060_v3 = vsel %vm1051_vm13, %v1048_v7, %v1050_v6  ;;  %vm2059_vm13 = vcmask 867328  }
 0x19a   : > { %1077 = vst [vmem:[#allocation2 + $0x230] sm:$0xf] %v1059_v8  ;;  %1078 = vst [vmem:[#allocation2 + $0x238] sm:$0xf] %v1060_v3  ;;  %1423 = vrot.lane.b32.xlu1 %v4743_v37, %s4295_s10  ;;  %1421 = vrot.lane.b32.xlu0 %v4733_v32, %s4295_s10 }
 0x19c   : > { %v1097_v11 = vpop.permute.xlu1 %1096  ;;  %v1095_v9 = vpop.permute.xlu0 %1094 }
 0x19d   : > { %v1115_v20 = vsel %vm1114_vm14, %v1095_v9, %v1097_v11 }
 0x19e   : > { %1133 = vst [vmem:[#allocation2 + $0x1f8] sm:$0xf0] %v1115_v20  ;;  %1427 = vrot.lane.b32.xlu1 %v4756_v42, %s4295_s10  ;;  %1425 = vrot.lane.b32.xlu0 %v4746_v38, %s4295_s10  ;;  %s4319_s10 = smov 32  }
 0x1a0   : > { %v1101_v21 = vpop.permute.xlu1 %1100  ;;  %v1099_v22 = vpop.permute.xlu0 %1098 }
 0x1a1   : > { %v1116_v23 = vsel %vm1114_vm14, %v1097_v11, %v1099_v22  ;;  %v1117_v24 = vsel %vm1114_vm14, %v1099_v22, %v1101_v21 }
 0x1a2   : > { %1134 = vst [vmem:[#allocation2 + $0x200] sm:$0xf0] %v1116_v23  ;;  %1135 = vst [vmem:[#allocation2 + $0x208] sm:$0xf0] %v1117_v24  ;;  %1474 = vrot.lane.b32.xlu1 %v4695_v12, %s4296_s11  ;;  %1472 = vrot.lane.b32.xlu0 %v4765_v45, %s4296_s11 }
 0x1a4   : > { %v1105_v25 = vpop.permute.xlu1 %1104  ;;  %v1103_v26 = vpop.permute.xlu0 %1102 }
 0x1a5   : > { %v1118_v27 = vsel %vm1114_vm14, %v1101_v21, %v1103_v26  ;;  %v1119_v28 = vsel %vm1114_vm14, %v1103_v26, %v1105_v25  ;;  %v3286_v33 = vld [vmem:[#allocation2 + $0x1f8] sm:$0xff] }
 0x1a6   : > { %1136 = vst [vmem:[#allocation2 + $0x210] sm:$0xf0] %v1118_v27  ;;  %1137 = vst [vmem:[#allocation2 + $0x218] sm:$0xf0] %v1119_v28  ;;  %1478 = vrot.lane.b32.xlu1 %v4707_v14, %s4296_s11  ;;  %1476 = vrot.lane.b32.xlu0 %v4775_v49, %s4296_s11  ;;  %v3940_v4 = vpack.c.bf16 %v3286_v33, %v3277_v41 }
 0x1a8   : > { %v1109_v29 = vpop.permute.xlu1 %1108  ;;  %v1107_v30 = vpop.permute.xlu0 %1106 }
 0x1a9   : > { %v1120_v34 = vsel %vm1114_vm14, %v1105_v25, %v1107_v30  ;;  %v1121_v35 = vsel %vm1114_vm14, %v1107_v30, %v1109_v29  ;;  %v3287_v39 = vld [vmem:[#allocation2 + $0x200] sm:$0xff]  ;;  %v3288_v5 = vld [vmem:[#allocation2 + $0x208] sm:$0xff] }
 0x1aa   : > { %1138 = vst [vmem:[#allocation2 + $0x220] sm:$0xf0] %v1120_v34  ;;  %1139 = vst [vmem:[#allocation2 + $0x228] sm:$0xf0] %v1121_v35  ;;  %1482 = vrot.lane.b32.xlu1 %v4720_v16, %s4296_s11  ;;  %1480 = vrot.lane.b32.xlu0 %v4785_v52, %s4296_s11  ;;  %v3938_v40 = vpack.c.bf16 %v3287_v39, %v3278_v36  ;;  %v3988_v51 = vpack.c.bf16 %v3288_v5, %v3279_v18 }
 0x1ac   : > { %v1113_v43 = vpop.permute.xlu1 %1112  ;;  %v1111_v44 = vpop.permute.xlu0 %1110  ;;  %3939 = vmatprep.subr.bf16.mxu0 %v3938_v40 }
 0x1ad   : > { %v1122_v46 = vsel %vm1114_vm14, %v1109_v29, %v1111_v44  ;;  %v1123_v17 = vsel %vm1114_vm14, %v1111_v44, %v1113_v43  ;;  %3941 = vmatpush1.bf16.msra.mxu0 %v3940_v4  ;;  %v3289_v48 = vld [vmem:[#allocation2 + $0x210] sm:$0xff]  ;;  %v5078_v44 = vld [vmem:[%s4361_s17 + $0x18] sm:$0xff]  ;;  %vm2563_vm14 = vcmask 556032  }
 0x1ae   : > { %1140 = vst [vmem:[#allocation2 + $0x230] sm:$0xf0] %v1122_v46  ;;  %1141 = vst [vmem:[#allocation2 + $0x238] sm:$0xf0] %v1123_v17  ;;  %1486 = vrot.lane.b32.xlu1 %v4733_v32, %s4296_s11  ;;  %1484 = vrot.lane.b32.xlu0 %v4795_v56, %s4296_s11  ;;  %v3986_v50 = vpack.c.bf16 %v3289_v48, %v3280_v47  ;;  %v5088_v48 = vcombine.high %v5078_v44, %v5078_v44 }
 0x1b0   : > { %v1160_v19 = vpop.permute.xlu1 %1159  ;;  %v1158_v53 = vpop.permute.xlu0 %1157  ;;  %3987 = vmatprep.subr.bf16.mxu1 %v3986_v50  ;;  %v5091_v50 = vld [vmem:[%s4361_s17 + $0x20] sm:$0xff] }
 0x1b1   : > { %v1178_v54 = vsel %vm1177_vm15, %v1158_v53, %v1160_v19  ;;  %3989 = vmatpush1.bf16.msra.mxu1 %v3988_v51 }
 0x1b2   : > { %1196 = vst [vmem:[#allocation2 + $0x240] sm:$0xf] %v1178_v54  ;;  %1490 = vrot.lane.b32.xlu1 %v4746_v38, %s4296_s11  ;;  %1488 = vrot.lane.b32.xlu0 %v4805_v59, %s4296_s11  ;;  %v5101_v54 = vcombine.high %v5091_v50, %v5091_v50  ;;  %s4320_s11 = smov 31  }
 0x1b4   : > { %v1164_v55 = vpop.permute.xlu1 %1163  ;;  %v1162_v1 = vpop.permute.xlu0 %1161 }
 0x1b5   : > { %v1179_v2 = vsel %vm1177_vm15, %v1160_v19, %v1162_v1  ;;  %v1180_v57 = vsel %vm1177_vm15, %v1162_v1, %v1164_v55 }
 0x1b6   : > { %1197 = vst [vmem:[#allocation2 + $0x248] sm:$0xf] %v1179_v2  ;;  %1198 = vst [vmem:[#allocation2 + $0x250] sm:$0xf] %v1180_v57  ;;  %1537 = vrot.lane.b32.xlu1 %v4704_v13, %s4297_s14  ;;  %1535 = vrot.lane.b32.xlu0 %v4695_v12, %s4297_s14 }
 0x1b8   : > { %v1168_v58 = vpop.permute.xlu1 %1167  ;;  %v1166_v0 = vpop.permute.xlu0 %1165 }
 0x1b9   : > { %v1181_v10 = vsel %vm1177_vm15, %v1164_v55, %v1166_v0  ;;  %v1182_v60 = vsel %vm1177_vm15, %v1166_v0, %v1168_v58 }
 0x1ba   : > { %1199 = vst [vmem:[#allocation2 + $0x258] sm:$0xf] %v1181_v10  ;;  %1200 = vst [vmem:[#allocation2 + $0x260] sm:$0xf] %v1182_v60  ;;  %1541 = vrot.lane.b32.xlu1 %v4717_v15, %s4297_s14  ;;  %1539 = vrot.lane.b32.xlu0 %v4707_v14, %s4297_s14 }
 0x1bc   : > { %v1172_v61 = vpop.permute.xlu1 %1171  ;;  %v1170_v62 = vpop.permute.xlu0 %1169 }
 0x1bd   : > { %v1183_v13 = vsel %vm1177_vm15, %v1168_v58, %v1170_v62  ;;  %v1184_v63 = vsel %vm1177_vm15, %v1170_v62, %v1172_v61 }
 0x1be   : > { %1201 = vst [vmem:[#allocation2 + $0x268] sm:$0xf] %v1183_v13  ;;  %1202 = vst [vmem:[#allocation2 + $0x270] sm:$0xf] %v1184_v63  ;;  %1545 = vrot.lane.b32.xlu1 %v4730_v31, %s4297_s14  ;;  %1543 = vrot.lane.b32.xlu0 %v4720_v16, %s4297_s14 }
 0x1c0   : > { %v1176_v6 = vpop.permute.xlu1 %1175  ;;  %v1174_v7 = vpop.permute.xlu0 %1173 }
 0x1c1   : > { %v1185_v15 = vsel %vm1177_vm15, %v1172_v61, %v1174_v7  ;;  %v1186_v8 = vsel %vm1177_vm15, %v1174_v7, %v1176_v6  ;;  %vm2122_vm15 = vcmask 859136  }
 0x1c2   : > { %1203 = vst [vmem:[#allocation2 + $0x278] sm:$0xf] %v1185_v15  ;;  %1204 = vst [vmem:[#allocation2 + $0x280] sm:$0xf] %v1186_v8  ;;  %1549 = vrot.lane.b32.xlu1 %v4743_v37, %s4297_s14  ;;  %1547 = vrot.lane.b32.xlu0 %v4733_v32, %s4297_s14 }
 0x1c4   : > { %v1223_v3 = vpop.permute.xlu1 %1222  ;;  %v1221_v31 = vpop.permute.xlu0 %1220 }
 0x1c5   : > { %v1241_v11 = vsel %vm1240_vm0, %v1221_v31, %v1223_v3 }
 0x1c6   : > { %1259 = vst [vmem:[#allocation2 + $0x240] sm:$0xf0] %v1241_v11  ;;  %1553 = vrot.lane.b32.xlu1 %v4756_v42, %s4297_s14  ;;  %1551 = vrot.lane.b32.xlu0 %v4746_v38, %s4297_s14  ;;  %s4321_s14 = smov 30  }
 0x1c8   : > { %v1227_v9 = vpop.permute.xlu1 %1226  ;;  %v1225_v20 = vpop.permute.xlu0 %1224 }
 0x1c9   : > { %v1242_v21 = vsel %vm1240_vm0, %v1223_v3, %v1225_v20  ;;  %v1243_v37 = vsel %vm1240_vm0, %v1225_v20, %v1227_v9 }
 0x1ca   : > { %1260 = vst [vmem:[#allocation2 + $0x248] sm:$0xf0] %v1242_v21  ;;  %1261 = vst [vmem:[#allocation2 + $0x250] sm:$0xf0] %v1243_v37  ;;  %1600 = vrot.lane.b32.xlu1 %v4695_v12, %s4298_s15  ;;  %1598 = vrot.lane.b32.xlu0 %v4765_v45, %s4298_s15 }
 0x1cc   : > { %v1231_v22 = vpop.permute.xlu1 %1230  ;;  %v1229_v42 = vpop.permute.xlu0 %1228 }
 0x1cd   : > { %v1244_v23 = vsel %vm1240_vm0, %v1227_v9, %v1229_v42  ;;  %v1245_v24 = vsel %vm1240_vm0, %v1229_v42, %v1231_v22  ;;  %v3295_v37 = vld [vmem:[#allocation2 + $0x240] sm:$0xff] }
 0x1ce   : > { %1262 = vst [vmem:[#allocation2 + $0x258] sm:$0xf0] %v1244_v23  ;;  %1263 = vst [vmem:[#allocation2 + $0x260] sm:$0xf0] %v1245_v24  ;;  %1604 = vrot.lane.b32.xlu1 %v4707_v14, %s4298_s15  ;;  %1602 = vrot.lane.b32.xlu0 %v4775_v49, %s4298_s15 }
 0x1d0   : > { %v1235_v25 = vpop.permute.xlu1 %1234  ;;  %v1233_v26 = vpop.permute.xlu0 %1232 }
 0x1d1   : > { %v1246_v12 = vsel %vm1240_vm0, %v1231_v22, %v1233_v26  ;;  %v1247_v45 = vsel %vm1240_vm0, %v1233_v26, %v1235_v25  ;;  %v3296_v9 = vld [vmem:[#allocation2 + $0x248] sm:$0xff]  ;;  %v5140_v22 = vcombine.low %v5078_v44, %v5078_v44 }
 0x1d2   : > { %1264 = vst [vmem:[#allocation2 + $0x268] sm:$0xf0] %v1246_v12  ;;  %1265 = vst [vmem:[#allocation2 + $0x270] sm:$0xf0] %v1247_v45  ;;  %1608 = vrot.lane.b32.xlu1 %v4720_v16, %s4298_s15  ;;  %1606 = vrot.lane.b32.xlu0 %v4785_v52, %s4298_s15  ;;  %v5040_v16 = vld [vmem:[%s4361_s17] sm:$0xff] }
 0x1d3   : > { %v5110_v57 = vcombine.low %v5040_v16, %v5040_v16 }
 0x1d4   : > { %v1239_v27 = vpop.permute.xlu1 %1238  ;;  %v1237_v14 = vpop.permute.xlu0 %1236 }
 0x1d5   : > { %v1248_v49 = vsel %vm1240_vm0, %v1235_v25, %v1237_v14  ;;  %v1249_v28 = vsel %vm1240_vm0, %v1237_v14, %v1239_v27  ;;  %v3298_v45 = vld [vmem:[#allocation2 + $0x258] sm:$0xff]  ;;  %vm2185_vm0 = vcmask 850944  }
 0x1d6   : > { %1266 = vst [vmem:[#allocation2 + $0x278] sm:$0xf0] %v1248_v49  ;;  %1267 = vst [vmem:[#allocation2 + $0x280] sm:$0xf0] %v1249_v28  ;;  %1612 = vrot.lane.b32.xlu1 %v4733_v32, %s4298_s15  ;;  %1610 = vrot.lane.b32.xlu0 %v4795_v56, %s4298_s15  ;;  %v5049_v32 = vcombine.high %v5040_v16, %v5040_v16  ;;  %v5052_v56 = vld [vmem:[%s4361_s17 + $0x8] sm:$0xff]  ;;  %v3297_v49 = vld [vmem:[#allocation2 + $0x250] sm:$0xff]  ;;  %v5150_v28 = vcombine.low %v5091_v50, %v5091_v50 }
 0x1d7   : > { %v5120_v61 = vcombine.low %v5052_v56, %v5052_v56 }
 0x1d8   : > { %v1286_v29 = vpop.permute.xlu1 %1285  ;;  %v1284_v52 = vpop.permute.xlu0 %1283 }
 0x1d9   : > { %v1304_v30 = vsel %vm1303_vm1, %v1284_v52, %v1286_v29 }
 0x1da   : > { %1322 = vst [vmem:[#allocation2 + $0x288] sm:$0xf] %v1304_v30  ;;  %1616 = vrot.lane.b32.xlu1 %v4746_v38, %s4298_s15  ;;  %1614 = vrot.lane.b32.xlu0 %v4805_v59, %s4298_s15  ;;  %v5062_v38 = vcombine.high %v5052_v56, %v5052_v56  ;;  %v5065_v59 = vld [vmem:[%s4361_s17 + $0x10] sm:$0xff]  ;;  %s4322_s15 = smov 29  }
 0x1db   : > { %v5075_v43 = vcombine.high %v5065_v59, %v5065_v59  ;;  %v5130_v7 = vcombine.low %v5065_v59, %v5065_v59 }
 0x1dc   : > { %v1290_v33 = vpop.permute.xlu1 %1289  ;;  %v1288_v34 = vpop.permute.xlu0 %1287 }
 0x1dd   : > { %v1305_v35 = vsel %vm1303_vm1, %v1286_v29, %v1288_v34  ;;  %v1306_v36 = vsel %vm1303_vm1, %v1288_v34, %v1290_v33 }
 0x1de   : > { %1323 = vst [vmem:[#allocation2 + $0x290] sm:$0xf] %v1305_v35  ;;  %1324 = vst [vmem:[#allocation2 + $0x298] sm:$0xf] %v1306_v36  ;;  %1663 = vrot.lane.b32.xlu1 %v5049_v32, %s4299_s16  ;;  %1661 = vrot.lane.b32.xlu0 %v5040_v16, %s4299_s16 }
 0x1e0   : > { %v1294_v39 = vpop.permute.xlu1 %1293  ;;  %v1292_v40 = vpop.permute.xlu0 %1291 }
 0x1e1   : > { %v1307_v41 = vsel %vm1303_vm1, %v1290_v33, %v1292_v40  ;;  %v1308_v4 = vsel %vm1303_vm1, %v1292_v40, %v1294_v39 }
 0x1e2   : > { %1325 = vst [vmem:[#allocation2 + $0x2a0] sm:$0xf] %v1307_v41  ;;  %1326 = vst [vmem:[#allocation2 + $0x2a8] sm:$0xf] %v1308_v4  ;;  %1667 = vrot.lane.b32.xlu1 %v5062_v38, %s4299_s16  ;;  %1665 = vrot.lane.b32.xlu0 %v5052_v56, %s4299_s16 }
 0x1e4   : > { %v1298_v5 = vpop.permute.xlu1 %1297  ;;  %v1296_v46 = vpop.permute.xlu0 %1295 }
 0x1e5   : > { %v1309_v17 = vsel %vm1303_vm1, %v1294_v39, %v1296_v46  ;;  %v1310_v47 = vsel %vm1303_vm1, %v1296_v46, %v1298_v5 }
 0x1e6   : > { %1327 = vst [vmem:[#allocation2 + $0x2b0] sm:$0xf] %v1309_v17  ;;  %1328 = vst [vmem:[#allocation2 + $0x2b8] sm:$0xf] %v1310_v47  ;;  %1671 = vrot.lane.b32.xlu1 %v5075_v43, %s4299_s16  ;;  %1669 = vrot.lane.b32.xlu0 %v5065_v59, %s4299_s16 }
 0x1e8   : > { %v1302_v18 = vpop.permute.xlu1 %1301  ;;  %v1300_v51 = vpop.permute.xlu0 %1299 }
 0x1e9   : > { %v1311_v19 = vsel %vm1303_vm1, %v1298_v5, %v1300_v51  ;;  %v1312_v53 = vsel %vm1303_vm1, %v1300_v51, %v1302_v18  ;;  %vm2248_vm1 = vcmask 842752  }
 0x1ea   : > { %1329 = vst [vmem:[#allocation2 + $0x2c0] sm:$0xf] %v1311_v19  ;;  %1330 = vst [vmem:[#allocation2 + $0x2c8] sm:$0xf] %v1312_v53  ;;  %1675 = vrot.lane.b32.xlu1 %v5088_v48, %s4299_s16  ;;  %1673 = vrot.lane.b32.xlu0 %v5078_v44, %s4299_s16 }
 0x1ec   : > { %v1349_v55 = vpop.permute.xlu1 %1348  ;;  %v1347_v1 = vpop.permute.xlu0 %1346 }
 0x1ed   : > { %v1367_v2 = vsel %vm1366_vm2, %v1347_v1, %v1349_v55 }
 0x1ee   : > { %1385 = vst [vmem:[#allocation2 + $0x288] sm:$0xf0] %v1367_v2  ;;  %1679 = vrot.lane.b32.xlu1 %v5101_v54, %s4299_s16  ;;  %1677 = vrot.lane.b32.xlu0 %v5091_v50, %s4299_s16  ;;  %s4323_s16 = smov 28  }
 0x1f0   : > { %v1353_v58 = vpop.permute.xlu1 %1352  ;;  %v1351_v0 = vpop.permute.xlu0 %1350 }
 0x1f1   : > { %v1368_v10 = vsel %vm1366_vm2, %v1349_v55, %v1351_v0  ;;  %v1369_v60 = vsel %vm1366_vm2, %v1351_v0, %v1353_v58 }
 0x1f2   : > { %1386 = vst [vmem:[#allocation2 + $0x290] sm:$0xf0] %v1368_v10  ;;  %1387 = vst [vmem:[#allocation2 + $0x298] sm:$0xf0] %v1369_v60  ;;  %1726 = vrot.lane.b32.xlu1 %v5040_v16, %s4300_s18  ;;  %1724 = vrot.lane.b32.xlu0 %v5110_v57, %s4300_s18 }
 0x1f4   : > { %v1357_v62 = vpop.permute.xlu1 %1356  ;;  %v1355_v13 = vpop.permute.xlu0 %1354 }
 0x1f5   : > { %v1370_v63 = vsel %vm1366_vm2, %v1353_v58, %v1355_v13  ;;  %v1371_v6 = vsel %vm1366_vm2, %v1355_v13, %v1357_v62  ;;  %v3304_v3 = vld [vmem:[#allocation2 + $0x288] sm:$0xff] }
 0x1f6   : > { %1388 = vst [vmem:[#allocation2 + $0x2a0] sm:$0xf0] %v1370_v63  ;;  %1389 = vst [vmem:[#allocation2 + $0x2a8] sm:$0xf0] %v1371_v6  ;;  %1730 = vrot.lane.b32.xlu1 %v5052_v56, %s4300_s18  ;;  %1728 = vrot.lane.b32.xlu0 %v5120_v61, %s4300_s18  ;;  %v3944_v42 = vpack.c.bf16 %v3304_v3, %v3295_v37  ;;  %v5223_v3 = vld [vmem:[%s4361_s17 + $0xc] sm:$0xff] }
 0x1f8   : > { %v1361_v15 = vpop.permute.xlu1 %1360  ;;  %v1359_v8 = vpop.permute.xlu0 %1358 }
 0x1f9   : > { %v1372_v31 = vsel %vm1366_vm2, %v1357_v62, %v1359_v8  ;;  %v1373_v11 = vsel %vm1366_vm2, %v1359_v8, %v1361_v15  ;;  %v3305_v20 = vld [vmem:[#allocation2 + $0x290] sm:$0xff]  ;;  %v3306_v25 = vld [vmem:[#allocation2 + $0x298] sm:$0xff] }
 0x1fa   : > { %1390 = vst [vmem:[#allocation2 + $0x2b0] sm:$0xf0] %v1372_v31  ;;  %1391 = vst [vmem:[#allocation2 + $0x2b8] sm:$0xf0] %v1373_v11  ;;  %1734 = vrot.lane.b32.xlu1 %v5065_v59, %s4300_s18  ;;  %1732 = vrot.lane.b32.xlu0 %v5130_v7, %s4300_s18  ;;  %v3942_v21 = vpack.c.bf16 %v3305_v20, %v3296_v9  ;;  %v3992_v29 = vpack.c.bf16 %v3306_v25, %v3297_v49  ;;  %v5249_v25 = vld [vmem:[%s4361_s17 + $0x1c] sm:$0xff]  ;;  %v1902_v49 = vld [vmem:[%s4361_s17 + $0x24] sm:$0xff] }
 0x1fc   : > { %v1365_v23 = vpop.permute.xlu1 %1364  ;;  %v1363_v24 = vpop.permute.xlu0 %1362  ;;  %3943 = vmatprep.subr.bf16.mxu0 %v3942_v21  ;;  %v5236_v21 = vld [vmem:[%s4361_s17 + $0x14] sm:$0xff] }
 0x1fd   : > { %v1374_v26 = vsel %vm1366_vm2, %v1361_v15, %v1363_v24  ;;  %v1375_v12 = vsel %vm1366_vm2, %v1363_v24, %v1365_v23  ;;  %3945 = vmatpush1.bf16.msra.mxu0 %v3944_v42  ;;  %v3307_v27 = vld [vmem:[#allocation2 + $0x2a0] sm:$0xff]  ;;  %v5246_v24 = vcombine.high %v5236_v21, %v5236_v21  ;;  %vm2311_vm2 = vcmask 834560  }
 0x1fe   : > { %1392 = vst [vmem:[#allocation2 + $0x2c0] sm:$0xf0] %v1374_v26  ;;  %1393 = vst [vmem:[#allocation2 + $0x2c8] sm:$0xf0] %v1375_v12  ;;  %1738 = vrot.lane.b32.xlu1 %v5078_v44, %s4300_s18  ;;  %1736 = vrot.lane.b32.xlu0 %v5140_v22, %s4300_s18  ;;  %v3990_v14 = vpack.c.bf16 %v3307_v27, %v3298_v45 }
 0x200   : > { %v1412_v52 = vpop.permute.xlu1 %1411  ;;  %v1410_v30 = vpop.permute.xlu0 %1409  ;;  %3991 = vmatprep.subr.bf16.mxu1 %v3990_v14  ;;  %v5259_v14 = vcombine.high %v5249_v25, %v5249_v25 }
 0x201   : > { %v1430_v33 = vsel %vm1429_vm3, %v1410_v30, %v1412_v52  ;;  %3993 = vmatpush1.bf16.msra.mxu1 %v3992_v29 }
 0x202   : > { %1448 = vst [vmem:[#allocation2 + $0x2d0] sm:$0xf] %v1430_v33  ;;  %1742 = vrot.lane.b32.xlu1 %v5091_v50, %s4300_s18  ;;  %1740 = vrot.lane.b32.xlu0 %v5150_v28, %s4300_s18  ;;  %v1912_v33 = vcombine.high %v1902_v49, %v1902_v49 }
 0x204   : > { %v1416_v34 = vpop.permute.xlu1 %1415  ;;  %v1414_v35 = vpop.permute.xlu0 %1413 }
 0x205   : > { %v1431_v36 = vsel %vm1429_vm3, %v1412_v52, %v1414_v35  ;;  %v1432_v39 = vsel %vm1429_vm3, %v1414_v35, %v1416_v34 }
 0x206   : > { %1449 = vst [vmem:[#allocation2 + $0x2d8] sm:$0xf] %v1431_v36  ;;  %1450 = vst [vmem:[#allocation2 + $0x2e0] sm:$0xf] %v1432_v39  ;;  %1789 = vrot.lane.b32.xlu1 %v5049_v32, %s4301_s19  ;;  %1787 = vrot.lane.b32.xlu0 %v5040_v16, %s4301_s19  ;;  %v5273_v39 = vcombine.low %v5223_v3, %v5223_v3 }
 0x208   : > { %v1420_v40 = vpop.permute.xlu1 %1419  ;;  %v1418_v41 = vpop.permute.xlu0 %1417 }
 0x209   : > { %v1433_v4 = vsel %vm1429_vm3, %v1416_v34, %v1418_v41  ;;  %v1434_v5 = vsel %vm1429_vm3, %v1418_v41, %v1420_v40 }
 0x20a   : > { %1451 = vst [vmem:[#allocation2 + $0x2e8] sm:$0xf] %v1433_v4  ;;  %1452 = vst [vmem:[#allocation2 + $0x2f0] sm:$0xf] %v1434_v5  ;;  %1793 = vrot.lane.b32.xlu1 %v5062_v38, %s4301_s19  ;;  %1791 = vrot.lane.b32.xlu0 %v5052_v56, %s4301_s19 }
 0x20c   : > { %v1424_v46 = vpop.permute.xlu1 %1423  ;;  %v1422_v17 = vpop.permute.xlu0 %1421 }
 0x20d   : > { %v1435_v32 = vsel %vm1429_vm3, %v1420_v40, %v1422_v17  ;;  %v1436_v47 = vsel %vm1429_vm3, %v1422_v17, %v1424_v46 }
 0x20e   : > { %1453 = vst [vmem:[#allocation2 + $0x2f8] sm:$0xf] %v1435_v32  ;;  %1454 = vst [vmem:[#allocation2 + $0x300] sm:$0xf] %v1436_v47  ;;  %1797 = vrot.lane.b32.xlu1 %v5075_v43, %s4301_s19  ;;  %1795 = vrot.lane.b32.xlu0 %v5065_v59, %s4301_s19 }
 0x210   : > { %v1428_v18 = vpop.permute.xlu1 %1427  ;;  %v1426_v51 = vpop.permute.xlu0 %1425 }
 0x211   : > { %v1437_v38 = vsel %vm1429_vm3, %v1424_v46, %v1426_v51  ;;  %v1438_v19 = vsel %vm1429_vm3, %v1426_v51, %v1428_v18  ;;  %vm6201_vm3 = vcmask 580608  }
 0x212   : > { %1455 = vst [vmem:[#allocation2 + $0x308] sm:$0xf] %v1437_v38  ;;  %1456 = vst [vmem:[#allocation2 + $0x310] sm:$0xf] %v1438_v19  ;;  %1801 = vrot.lane.b32.xlu1 %v5088_v48, %s4301_s19  ;;  %1799 = vrot.lane.b32.xlu0 %v5078_v44, %s4301_s19 }
 0x214   : > { %v1475_v53 = vpop.permute.xlu1 %1474  ;;  %v1473_v43 = vpop.permute.xlu0 %1472 }
 0x215   : > { %v1493_v55 = vsel %vm1492_vm4, %v1473_v43, %v1475_v53 }
 0x216   : > { %1511 = vst [vmem:[#allocation2 + $0x2d0] sm:$0xf0] %v1493_v55  ;;  %1805 = vrot.lane.b32.xlu1 %v5101_v54, %s4301_s19  ;;  %1803 = vrot.lane.b32.xlu0 %v5091_v50, %s4301_s19 }
 0x218   : > { %v1479_v1 = vpop.permute.xlu1 %1478  ;;  %v1477_v2 = vpop.permute.xlu0 %1476 }
 0x219   : > { %v1494_v58 = vsel %vm1492_vm4, %v1475_v53, %v1477_v2  ;;  %v1495_v48 = vsel %vm1492_vm4, %v1477_v2, %v1479_v1 }
 0x21a   : > { %1512 = vst [vmem:[#allocation2 + $0x2d8] sm:$0xf0] %v1494_v58  ;;  %1513 = vst [vmem:[#allocation2 + $0x2e0] sm:$0xf0] %v1495_v48  ;;  %1852 = vrot.lane.b32.xlu1 %v5040_v16, %s4302_s20  ;;  %1850 = vrot.lane.b32.xlu0 %v5110_v57, %s4302_s20 }
 0x21c   : > { %v1483_v0 = vpop.permute.xlu1 %1482  ;;  %v1481_v54 = vpop.permute.xlu0 %1480 }
 0x21d   : > { %v1496_v10 = vsel %vm1492_vm4, %v1479_v1, %v1481_v54  ;;  %v1497_v60 = vsel %vm1492_vm4, %v1481_v54, %v1483_v0  ;;  %v3313_v58 = vld [vmem:[#allocation2 + $0x2d0] sm:$0xff] }
 0x21e   : > { %1514 = vst [vmem:[#allocation2 + $0x2e8] sm:$0xf0] %v1496_v10  ;;  %1515 = vst [vmem:[#allocation2 + $0x2f0] sm:$0xf0] %v1497_v60  ;;  %1856 = vrot.lane.b32.xlu1 %v5052_v56, %s4302_s20  ;;  %1854 = vrot.lane.b32.xlu0 %v5120_v61, %s4302_s20 }
 0x220   : > { %v1487_v62 = vpop.permute.xlu1 %1486  ;;  %v1485_v13 = vpop.permute.xlu0 %1484 }
 0x221   : > { %v1498_v16 = vsel %vm1492_vm4, %v1483_v0, %v1485_v13  ;;  %v1499_v57 = vsel %vm1492_vm4, %v1485_v13, %v1487_v62  ;;  %v3314_v43 = vld [vmem:[#allocation2 + $0x2d8] sm:$0xff] }
 0x222   : > { %1516 = vst [vmem:[#allocation2 + $0x2f8] sm:$0xf0] %v1498_v16  ;;  %1517 = vst [vmem:[#allocation2 + $0x300] sm:$0xf0] %v1499_v57  ;;  %1860 = vrot.lane.b32.xlu1 %v5065_v59, %s4302_s20  ;;  %1858 = vrot.lane.b32.xlu0 %v5130_v7, %s4302_s20  ;;  %v5211_v59 = vld [vmem:[%s4361_s17 + $0x4] sm:$0xff] }
 0x223   : > { %v5291_v1 = vcombine.low %v5211_v59, %v5211_v59 }
 0x224   : > { %v1491_v63 = vpop.permute.xlu1 %1490  ;;  %v1489_v56 = vpop.permute.xlu0 %1488 }
 0x225   : > { %v1500_v61 = vsel %vm1492_vm4, %v1487_v62, %v1489_v56  ;;  %v1501_v6 = vsel %vm1492_vm4, %v1489_v56, %v1491_v63  ;;  %v3316_v13 = vld [vmem:[#allocation2 + $0x2e8] sm:$0xff]  ;;  %v3315_v63 = vld [vmem:[#allocation2 + $0x2e0] sm:$0xff]  ;;  %vm6200_vm4 = vcmask 572416  }
 0x226   : > { %1518 = vst [vmem:[#allocation2 + $0x308] sm:$0xf0] %v1500_v61  ;;  %1519 = vst [vmem:[#allocation2 + $0x310] sm:$0xf0] %v1501_v6  ;;  %1864 = vrot.lane.b32.xlu1 %v5078_v44, %s4302_s20  ;;  %1862 = vrot.lane.b32.xlu0 %v5140_v22, %s4302_s20  ;;  %v5220_v44 = vcombine.high %v5211_v59, %v5211_v59 }
 0x228   : > { %v1538_v15 = vpop.permute.xlu1 %1537  ;;  %v1536_v7 = vpop.permute.xlu0 %1535 }
 0x229   : > { %v1556_v8 = vsel %vm1555_vm5, %v1536_v7, %v1538_v15 }
 0x22a   : > { %1574 = vst [vmem:[#allocation2 + $0x318] sm:$0xf] %v1556_v8  ;;  %1868 = vrot.lane.b32.xlu1 %v5091_v50, %s4302_s20  ;;  %1866 = vrot.lane.b32.xlu0 %v5150_v28, %s4302_s20  ;;  %v5233_v50 = vcombine.high %v5223_v3, %v5223_v3 }
 0x22c   : > { %v1542_v31 = vpop.permute.xlu1 %1541  ;;  %v1540_v11 = vpop.permute.xlu0 %1539 }
 0x22d   : > { %v1557_v9 = vsel %vm1555_vm5, %v1538_v15, %v1540_v11  ;;  %v1558_v20 = vsel %vm1555_vm5, %v1540_v11, %v1542_v31 }
 0x22e   : > { %1575 = vst [vmem:[#allocation2 + $0x320] sm:$0xf] %v1557_v9  ;;  %1576 = vst [vmem:[#allocation2 + $0x328] sm:$0xf] %v1558_v20  ;;  %1915 = vrot.lane.b32.xlu1 %v5220_v44, %s4303_s21  ;;  %1913 = vrot.lane.b32.xlu0 %v5211_v59, %s4303_s21 }
 0x230   : > { %v1546_v37 = vpop.permute.xlu1 %1545  ;;  %v1544_v22 = vpop.permute.xlu0 %1543 }
 0x231   : > { %v1559_v42 = vsel %vm1555_vm5, %v1542_v31, %v1544_v22  ;;  %v1560_v23 = vsel %vm1555_vm5, %v1544_v22, %v1546_v37 }
 0x232   : > { %1577 = vst [vmem:[#allocation2 + $0x330] sm:$0xf] %v1559_v42  ;;  %1578 = vst [vmem:[#allocation2 + $0x338] sm:$0xf] %v1560_v23  ;;  %1919 = vrot.lane.b32.xlu1 %v5233_v50, %s4303_s21  ;;  %1917 = vrot.lane.b32.xlu0 %v5223_v3, %s4303_s21 }
 0x234   : > { %v1550_v26 = vpop.permute.xlu1 %1549  ;;  %v1548_v12 = vpop.permute.xlu0 %1547 }
 0x235   : > { %v1561_v45 = vsel %vm1555_vm5, %v1546_v37, %v1548_v12  ;;  %v1562_v27 = vsel %vm1555_vm5, %v1548_v12, %v1550_v26 }
 0x236   : > { %1579 = vst [vmem:[#allocation2 + $0x340] sm:$0xf] %v1561_v45  ;;  %1580 = vst [vmem:[#allocation2 + $0x348] sm:$0xf] %v1562_v27  ;;  %1923 = vrot.lane.b32.xlu1 %v5246_v24, %s4303_s21  ;;  %1921 = vrot.lane.b32.xlu0 %v5236_v21, %s4303_s21 }
 0x238   : > { %v1554_v28 = vpop.permute.xlu1 %1553  ;;  %v1552_v29 = vpop.permute.xlu0 %1551 }
 0x239   : > { %v1563_v52 = vsel %vm1555_vm5, %v1550_v26, %v1552_v29  ;;  %v1564_v30 = vsel %vm1555_vm5, %v1552_v29, %v1554_v28  ;;  %vm6199_vm5 = vcmask 564224  }
 0x23a   : > { %1581 = vst [vmem:[#allocation2 + $0x350] sm:$0xf] %v1563_v52  ;;  %1582 = vst [vmem:[#allocation2 + $0x358] sm:$0xf] %v1564_v30  ;;  %1927 = vrot.lane.b32.xlu1 %v5259_v14, %s4303_s21  ;;  %1925 = vrot.lane.b32.xlu0 %v5249_v25, %s4303_s21 }
 0x23c   : > { %v1601_v34 = vpop.permute.xlu1 %1600  ;;  %v1599_v35 = vpop.permute.xlu0 %1598 }
 0x23d   : > { %v1619_v36 = vsel %vm1618_vm6, %v1599_v35, %v1601_v34 }
 0x23e   : > { %1637 = vst [vmem:[#allocation2 + $0x318] sm:$0xf0] %v1619_v36  ;;  %1931 = vrot.lane.b32.xlu1 %v1912_v33, %s4303_s21  ;;  %1929 = vrot.lane.b32.xlu0 %v1902_v49, %s4303_s21 }
 0x240   : > { %v1605_v40 = vpop.permute.xlu1 %1604  ;;  %v1603_v41 = vpop.permute.xlu0 %1602 }
 0x241   : > { %v1620_v4 = vsel %vm1618_vm6, %v1601_v34, %v1603_v41  ;;  %v1621_v5 = vsel %vm1618_vm6, %v1603_v41, %v1605_v40 }
 0x242   : > { %1638 = vst [vmem:[#allocation2 + $0x320] sm:$0xf0] %v1620_v4  ;;  %1639 = vst [vmem:[#allocation2 + $0x328] sm:$0xf0] %v1621_v5  ;;  %1980 = vrot.lane.b32.xlu1 %v5273_v39, %s4304_s22  ;;  %1978 = vrot.lane.b32.xlu0 %v5211_v59, %s4304_s22 }
 0x244   : > { %v1609_v46 = vpop.permute.xlu1 %1608  ;;  %v1607_v17 = vpop.permute.xlu0 %1606 }
 0x245   : > { %v1622_v32 = vsel %vm1618_vm6, %v1605_v40, %v1607_v17  ;;  %v1623_v47 = vsel %vm1618_vm6, %v1607_v17, %v1609_v46  ;;  %v3322_v38 = vld [vmem:[#allocation2 + $0x318] sm:$0xff] }
 0x246   : > { %1640 = vst [vmem:[#allocation2 + $0x330] sm:$0xf0] %v1622_v32  ;;  %1641 = vst [vmem:[#allocation2 + $0x338] sm:$0xf0] %v1623_v47  ;;  %2043 = vrot.lane.b32.xlu1 %v5223_v3, %s4305_s23  ;;  %2041 = vrot.lane.b32.xlu0 %v5220_v44, %s4305_s23  ;;  %v3948_v48 = vpack.c.bf16 %v3322_v38, %v3313_v58 }
 0x248   : > { %v1613_v18 = vpop.permute.xlu1 %1612  ;;  %v1611_v51 = vpop.permute.xlu0 %1610 }
 0x249   : > { %v1624_v19 = vsel %vm1618_vm6, %v1609_v46, %v1611_v51  ;;  %v1625_v53 = vsel %vm1618_vm6, %v1611_v51, %v1613_v18  ;;  %v3323_v55 = vld [vmem:[#allocation2 + $0x320] sm:$0xff]  ;;  %v3324_v10 = vld [vmem:[#allocation2 + $0x328] sm:$0xff] }
 0x24a   : > { %1642 = vst [vmem:[#allocation2 + $0x340] sm:$0xf0] %v1624_v19  ;;  %1643 = vst [vmem:[#allocation2 + $0x348] sm:$0xf0] %v1625_v53  ;;  %2106 = vrot.lane.b32.xlu1 %v5273_v39, %s4306_s24  ;;  %2104 = vrot.lane.b32.xlu0 %v5211_v59, %s4306_s24  ;;  %v3946_v2 = vpack.c.bf16 %v3323_v55, %v3314_v43  ;;  %v3996_v56 = vpack.c.bf16 %v3324_v10, %v3315_v63 }
 0x24c   : > { %v1617_v0 = vpop.permute.xlu1 %1616  ;;  %v1615_v54 = vpop.permute.xlu0 %1614  ;;  %3947 = vmatprep.subr.bf16.mxu0 %v3946_v2 }
 0x24d   : > { %v1626_v60 = vsel %vm1618_vm6, %v1613_v18, %v1615_v54  ;;  %v1627_v62 = vsel %vm1618_vm6, %v1615_v54, %v1617_v0  ;;  %3949 = vmatpush1.bf16.msra.mxu0 %v3948_v48  ;;  %v3325_v16 = vld [vmem:[#allocation2 + $0x330] sm:$0xff]  ;;  %vm6198_vm6 = vcmask 547840  }
 0x24e   : > { %1644 = vst [vmem:[#allocation2 + $0x350] sm:$0xf0] %v1626_v60  ;;  %1645 = vst [vmem:[#allocation2 + $0x358] sm:$0xf0] %v1627_v62  ;;  %2039 = vrot.lane.b32.xlu1 %v5211_v59, %s4305_s23  ;;  %1976 = vrot.lane.b32.xlu0 %v5291_v1, %s4304_s22  ;;  %v3994_v57 = vpack.c.bf16 %v3325_v16, %v3316_v13 }
 0x250   : > { %v1664_v61 = vpop.permute.xlu1 %1663  ;;  %v1662_v6 = vpop.permute.xlu0 %1661  ;;  %3995 = vmatprep.subr.bf16.mxu1 %v3994_v57 }
 0x251   : > { %v1682_v15 = vsel %vm1681_vm7, %v1662_v6, %v1664_v61  ;;  %3997 = vmatpush1.bf16.msra.mxu1 %v3996_v56 }
 0x252   : > { %1700 = vst [vmem:[#allocation2 + $0x360] sm:$0xf] %v1682_v15  ;;  %2167 = vrot.lane.b32.xlu1 %v5220_v44, %s4307_s25  ;;  %2102 = vrot.lane.b32.xlu0 %v5291_v1, %s4306_s24 }
 0x254   : > { %v1668_v7 = vpop.permute.xlu1 %1667  ;;  %v1666_v8 = vpop.permute.xlu0 %1665 }
 0x255   : > { %v1683_v31 = vsel %vm1681_vm7, %v1664_v61, %v1666_v8  ;;  %v1684_v11 = vsel %vm1681_vm7, %v1666_v8, %v1668_v7 }
 0x256   : > { %1701 = vst [vmem:[#allocation2 + $0x368] sm:$0xf] %v1683_v31  ;;  %1702 = vst [vmem:[#allocation2 + $0x370] sm:$0xf] %v1684_v11  ;;  %2230 = vrot.lane.b32.xlu1 %v5211_v59, %s4308_s26  ;;  %2169 = vrot.lane.b32.xlu0 %v5223_v3, %s4307_s25 }
 0x258   : > { %v1672_v9 = vpop.permute.xlu1 %1671  ;;  %v1670_v20 = vpop.permute.xlu0 %1669 }
 0x259   : > { %v1685_v37 = vsel %vm1681_vm7, %v1668_v7, %v1670_v20  ;;  %v1686_v22 = vsel %vm1681_vm7, %v1670_v20, %v1672_v9 }
 0x25a   : > { %1703 = vst [vmem:[#allocation2 + $0x378] sm:$0xf] %v1685_v37  ;;  %1704 = vst [vmem:[#allocation2 + $0x380] sm:$0xf] %v1686_v22  ;;  %2293 = vrot.lane.b32.xlu1 %v5220_v44, %s4309_s27  ;;  %2232 = vrot.lane.b32.xlu0 %v5273_v39, %s4308_s26 }
 0x25c   : > { %v1676_v42 = vpop.permute.xlu1 %1675  ;;  %v1674_v23 = vpop.permute.xlu0 %1673 }
 0x25d   : > { %v1687_v26 = vsel %vm1681_vm7, %v1672_v9, %v1674_v23  ;;  %v1688_v12 = vsel %vm1681_vm7, %v1674_v23, %v1676_v42 }
 0x25e   : > { %1705 = vst [vmem:[#allocation2 + $0x388] sm:$0xf] %v1687_v26  ;;  %1706 = vst [vmem:[#allocation2 + $0x390] sm:$0xf] %v1688_v12  ;;  %2356 = vrot.lane.b32.xlu1 %v5211_v59, %s4310_s28  ;;  %2295 = vrot.lane.b32.xlu0 %v5223_v3, %s4309_s27 }
 0x260   : > { %v1680_v45 = vpop.permute.xlu1 %1679  ;;  %v1678_v27 = vpop.permute.xlu0 %1677 }
 0x261   : > { %v1689_v49 = vsel %vm1681_vm7, %v1676_v42, %v1678_v27  ;;  %v1690_v28 = vsel %vm1681_vm7, %v1678_v27, %v1680_v45  ;;  %vm2689_vm7 = vcmask 539648  }
 0x262   : > { %1707 = vst [vmem:[#allocation2 + $0x398] sm:$0xf] %v1689_v49  ;;  %1708 = vst [vmem:[#allocation2 + $0x3a0] sm:$0xf] %v1690_v28  ;;  %2165 = vrot.lane.b32.xlu1 %v5211_v59, %s4307_s25  ;;  %2358 = vrot.lane.b32.xlu0 %v5273_v39, %s4310_s28 }
 0x264   : > { %v1727_v29 = vpop.permute.xlu1 %1726  ;;  %v1725_v52 = vpop.permute.xlu0 %1724 }
 0x265   : > { %v1745_v30 = vsel %vm1744_vm8, %v1725_v52, %v1727_v29 }
 0x266   : > { %1763 = vst [vmem:[#allocation2 + $0x360] sm:$0xf0] %v1745_v30  ;;  %2291 = vrot.lane.b32.xlu1 %v5211_v59, %s4309_s27  ;;  %2228 = vrot.lane.b32.xlu0 %v5291_v1, %s4308_s26 }
 0x268   : > { %v1731_v33 = vpop.permute.xlu1 %1730  ;;  %v1729_v34 = vpop.permute.xlu0 %1728 }
 0x269   : > { %v1746_v35 = vsel %vm1744_vm8, %v1727_v29, %v1729_v34  ;;  %v1747_v36 = vsel %vm1744_vm8, %v1729_v34, %v1731_v33 }
 0x26a   : > { %1764 = vst [vmem:[#allocation2 + $0x368] sm:$0xf0] %v1746_v35  ;;  %1765 = vst [vmem:[#allocation2 + $0x370] sm:$0xf0] %v1747_v36  ;;  %2419 = vrot.lane.b32.xlu1 %v5220_v44, %s4311_s29  ;;  %2354 = vrot.lane.b32.xlu0 %v5291_v1, %s4310_s28 }
 0x26c   : > { %v1735_v40 = vpop.permute.xlu1 %1734  ;;  %v1733_v41 = vpop.permute.xlu0 %1732 }
 0x26d   : > { %v1748_v4 = vsel %vm1744_vm8, %v1731_v33, %v1733_v41  ;;  %v1749_v5 = vsel %vm1744_vm8, %v1733_v41, %v1735_v40  ;;  %v3331_v33 = vld [vmem:[#allocation2 + $0x360] sm:$0xff] }
 0x26e   : > { %1766 = vst [vmem:[#allocation2 + $0x378] sm:$0xf0] %v1748_v4  ;;  %1767 = vst [vmem:[#allocation2 + $0x380] sm:$0xf0] %v1749_v5  ;;  %2482 = vrot.lane.b32.xlu1 %v5211_v59, %s4312_s30  ;;  %2421 = vrot.lane.b32.xlu0 %v5223_v3, %s4311_s29 }
 0x270   : > { %v1739_v46 = vpop.permute.xlu1 %1738  ;;  %v1737_v17 = vpop.permute.xlu0 %1736 }
 0x271   : > { %v1750_v32 = vsel %vm1744_vm8, %v1735_v40, %v1737_v17  ;;  %v1751_v47 = vsel %vm1744_vm8, %v1737_v17, %v1739_v46  ;;  %v3332_v29 = vld [vmem:[#allocation2 + $0x368] sm:$0xff] }
 0x272   : > { %1768 = vst [vmem:[#allocation2 + $0x388] sm:$0xf0] %v1750_v32  ;;  %1769 = vst [vmem:[#allocation2 + $0x390] sm:$0xf0] %v1751_v47  ;;  %2545 = vrot.lane.b32.xlu1 %v5220_v44, %s4313_s4  ;;  %2484 = vrot.lane.b32.xlu0 %v5273_v39, %s4312_s30  ;;  %v3333_v32 = vld [vmem:[#allocation2 + $0x370] sm:$0xff] }
 0x274   : > { %v1743_v18 = vpop.permute.xlu1 %1742  ;;  %v1741_v51 = vpop.permute.xlu0 %1740 }
 0x275   : > { %v1752_v38 = vsel %vm1744_vm8, %v1739_v46, %v1741_v51  ;;  %v1753_v19 = vsel %vm1744_vm8, %v1741_v51, %v1743_v18  ;;  %v3334_v5 = vld [vmem:[#allocation2 + $0x378] sm:$0xff]  ;;  %vm6195_vm8 = vcmask 531456  }
 0x276   : > { %1770 = vst [vmem:[#allocation2 + $0x398] sm:$0xf0] %v1752_v38  ;;  %1771 = vst [vmem:[#allocation2 + $0x3a0] sm:$0xf0] %v1753_v19  ;;  %2608 = vrot.lane.b32.xlu1 %v5211_v59, %s4314_s5  ;;  %2547 = vrot.lane.b32.xlu0 %v5223_v3, %s4313_s4 }
 0x278   : > { %v1790_v53 = vpop.permute.xlu1 %1789  ;;  %v1788_v43 = vpop.permute.xlu0 %1787 }
 0x279   : > { %v1808_v55 = vsel %vm1807_vm9, %v1788_v43, %v1790_v53 }
 0x27a   : > { %1826 = vst [vmem:[#allocation2 + $0x3a8] sm:$0xf] %v1808_v55  ;;  %2417 = vrot.lane.b32.xlu1 %v5211_v59, %s4311_s29  ;;  %2610 = vrot.lane.b32.xlu0 %v5273_v39, %s4314_s5 }
 0x27c   : > { %v1794_v2 = vpop.permute.xlu1 %1793  ;;  %v1792_v58 = vpop.permute.xlu0 %1791 }
 0x27d   : > { %v1809_v48 = vsel %vm1807_vm9, %v1790_v53, %v1792_v58  ;;  %v1810_v0 = vsel %vm1807_vm9, %v1792_v58, %v1794_v2 }
 0x27e   : > { %1827 = vst [vmem:[#allocation2 + $0x3b0] sm:$0xf] %v1809_v48  ;;  %1828 = vst [vmem:[#allocation2 + $0x3b8] sm:$0xf] %v1810_v0  ;;  %2543 = vrot.lane.b32.xlu1 %v5211_v59, %s4313_s4  ;;  %2480 = vrot.lane.b32.xlu0 %v5291_v1, %s4312_s30 }
 0x280   : > { %v1798_v54 = vpop.permute.xlu1 %1797  ;;  %v1796_v10 = vpop.permute.xlu0 %1795 }
 0x281   : > { %v1811_v60 = vsel %vm1807_vm9, %v1794_v2, %v1796_v10  ;;  %v1812_v62 = vsel %vm1807_vm9, %v1796_v10, %v1798_v54 }
 0x282   : > { %1829 = vst [vmem:[#allocation2 + $0x3c0] sm:$0xf] %v1811_v60  ;;  %1830 = vst [vmem:[#allocation2 + $0x3c8] sm:$0xf] %v1812_v62  ;;  %2671 = vrot.lane.b32.xlu1 %v5220_v44, %s4315_s6  ;;  %2606 = vrot.lane.b32.xlu0 %v5291_v1, %s4314_s5 }
 0x284   : > { %v1802_v13 = vpop.permute.xlu1 %1801  ;;  %v1800_v16 = vpop.permute.xlu0 %1799 }
 0x285   : > { %v1813_v57 = vsel %vm1807_vm9, %v1798_v54, %v1800_v16  ;;  %v1814_v63 = vsel %vm1807_vm9, %v1800_v16, %v1802_v13 }
 0x286   : > { %1831 = vst [vmem:[#allocation2 + $0x3d0] sm:$0xf] %v1813_v57  ;;  %1832 = vst [vmem:[#allocation2 + $0x3d8] sm:$0xf] %v1814_v63  ;;  %2734 = vrot.lane.b32.xlu1 %v5211_v59, %s4316_s7  ;;  %2673 = vrot.lane.b32.xlu0 %v5223_v3, %s4315_s6 }
 0x288   : > { %v1806_v56 = vpop.permute.xlu1 %1805  ;;  %v1804_v61 = vpop.permute.xlu0 %1803 }
 0x289   : > { %v1815_v6 = vsel %vm1807_vm9, %v1802_v13, %v1804_v61  ;;  %v1816_v15 = vsel %vm1807_vm9, %v1804_v61, %v1806_v56  ;;  %vm6194_vm9 = vcmask 277504  }
 0x28a   : > { %1833 = vst [vmem:[#allocation2 + $0x3e0] sm:$0xf] %v1815_v6  ;;  %1834 = vst [vmem:[#allocation2 + $0x3e8] sm:$0xf] %v1816_v15  ;;  %2797 = vrot.lane.b32.xlu1 %v5220_v44, %s4317_s8  ;;  %2736 = vrot.lane.b32.xlu0 %v5273_v39, %s4316_s7  ;;  %v5455_v6 = vld [vmem:[%s6190_s1 + $0x8] sm:$0xff] }
 0x28b   : > { %3912 = vmatprep.mubr.msk.f32.mxu0 %vm2563_vm14, %v5455_v6  ;;  %3915 = vmatprep.mubr.msk.f32.mxu1 %vm2563_vm14, %v5455_v6 }
 0x28c   : > { %v1853_v7 = vpop.permute.xlu1 %1852  ;;  %v1851_v8 = vpop.permute.xlu0 %1850 }
 0x28d   : > { %v1871_v31 = vsel %vm1870_vm10, %v1851_v8, %v1853_v7 }
 0x28e   : > { %1889 = vst [vmem:[#allocation2 + $0x3a8] sm:$0xf0] %v1871_v31  ;;  %2860 = vrot.lane.b32.xlu1 %v5211_v59, %s4318_s9  ;;  %2799 = vrot.lane.b32.xlu0 %v5223_v3, %s4317_s8 }
 0x290   : > { %v1857_v11 = vpop.permute.xlu1 %1856  ;;  %v1855_v9 = vpop.permute.xlu0 %1854 }
 0x291   : > { %v1872_v20 = vsel %vm1870_vm10, %v1853_v7, %v1855_v9  ;;  %v1873_v37 = vsel %vm1870_vm10, %v1855_v9, %v1857_v11 }
 0x292   : > { %1890 = vst [vmem:[#allocation2 + $0x3b0] sm:$0xf0] %v1872_v20  ;;  %1891 = vst [vmem:[#allocation2 + $0x3b8] sm:$0xf0] %v1873_v37  ;;  %2669 = vrot.lane.b32.xlu1 %v5211_v59, %s4315_s6  ;;  %2862 = vrot.lane.b32.xlu0 %v5273_v39, %s4318_s9 }
 0x294   : > { %v1861_v22 = vpop.permute.xlu1 %1860  ;;  %v1859_v42 = vpop.permute.xlu0 %1858 }
 0x295   : > { %v1874_v23 = vsel %vm1870_vm10, %v1857_v11, %v1859_v42  ;;  %v1875_v26 = vsel %vm1870_vm10, %v1859_v42, %v1861_v22  ;;  %v3340_v27 = vld [vmem:[#allocation2 + $0x3a8] sm:$0xff] }
 0x296   : > { %1892 = vst [vmem:[#allocation2 + $0x3c0] sm:$0xf0] %v1874_v23  ;;  %1893 = vst [vmem:[#allocation2 + $0x3c8] sm:$0xf0] %v1875_v26  ;;  %2795 = vrot.lane.b32.xlu1 %v5211_v59, %s4317_s8  ;;  %2732 = vrot.lane.b32.xlu0 %v5291_v1, %s4316_s7  ;;  %v3952_v34 = vpack.c.bf16 %v3340_v27, %v3331_v33 }
 0x298   : > { %v1865_v12 = vpop.permute.xlu1 %1864  ;;  %v1863_v45 = vpop.permute.xlu0 %1862 }
 0x299   : > { %v1876_v49 = vsel %vm1870_vm10, %v1861_v22, %v1863_v45  ;;  %v1877_v28 = vsel %vm1870_vm10, %v1863_v45, %v1865_v12  ;;  %v3341_v52 = vld [vmem:[#allocation2 + $0x3b0] sm:$0xff]  ;;  %v3342_v40 = vld [vmem:[#allocation2 + $0x3b8] sm:$0xff]  ;;  %v5493_v22 = vcombine.low %v5249_v25, %v5249_v25 }
 0x29a   : > { %1894 = vst [vmem:[#allocation2 + $0x3d0] sm:$0xf0] %v1876_v49  ;;  %1895 = vst [vmem:[#allocation2 + $0x3d8] sm:$0xf0] %v1877_v28  ;;  %2923 = vrot.lane.b32.xlu1 %v5220_v44, %s4319_s10  ;;  %2858 = vrot.lane.b32.xlu0 %v5291_v1, %s4318_s9  ;;  %v3950_v30 = vpack.c.bf16 %v3341_v52, %v3332_v29  ;;  %v4000_v47 = vpack.c.bf16 %v3342_v40, %v3333_v32 }
 0x29c   : > { %v1869_v35 = vpop.permute.xlu1 %1868  ;;  %v1867_v36 = vpop.permute.xlu0 %1866  ;;  %3951 = vmatprep.subr.bf16.mxu0 %v3950_v30 }
 0x29d   : > { %v1878_v41 = vsel %vm1870_vm10, %v1865_v12, %v1867_v36  ;;  %v1879_v4 = vsel %vm1870_vm10, %v1867_v36, %v1869_v35  ;;  %3953 = vmatpush1.bf16.msra.mxu0 %v3952_v34  ;;  %v3343_v46 = vld [vmem:[#allocation2 + $0x3c0] sm:$0xff]  ;;  %vm6193_vm10 = vcmask 269312  }
 0x29e   : > { %1896 = vst [vmem:[#allocation2 + $0x3e0] sm:$0xf0] %v1878_v41  ;;  %1897 = vst [vmem:[#allocation2 + $0x3e8] sm:$0xf0] %v1879_v4  ;;  %2986 = vrot.lane.b32.xlu1 %v5211_v59, %s4320_s11  ;;  %2925 = vrot.lane.b32.xlu0 %v5223_v3, %s4319_s10  ;;  %v3998_v17 = vpack.c.bf16 %v3343_v46, %v3334_v5 }
 0x2a0   : > { %v1916_v18 = vpop.permute.xlu1 %1915  ;;  %v1914_v51 = vpop.permute.xlu0 %1913  ;;  %3999 = vmatprep.subr.bf16.mxu1 %v3998_v17 }
 0x2a1   : > { %v1934_v38 = vsel %vm1933_vm11, %v1914_v51, %v1916_v18  ;;  %4001 = vmatpush1.bf16.msra.mxu1 %v4000_v47 }
 0x2a2   : > { %1952 = vst [vmem:[#allocation2 + $0x3f0] sm:$0xf] %v1934_v38  ;;  %3049 = vrot.lane.b32.xlu1 %v5220_v44, %s4321_s14  ;;  %2988 = vrot.lane.b32.xlu0 %v5273_v39, %s4320_s11 }
 0x2a4   : > { %v1920_v19 = vpop.permute.xlu1 %1919  ;;  %v1918_v53 = vpop.permute.xlu0 %1917 }
 0x2a5   : > { %v1935_v43 = vsel %vm1933_vm11, %v1916_v18, %v1918_v53  ;;  %v1936_v55 = vsel %vm1933_vm11, %v1918_v53, %v1920_v19 }
 0x2a6   : > { %1953 = vst [vmem:[#allocation2 + $0x3f8] sm:$0xf] %v1935_v43  ;;  %1954 = vst [vmem:[#allocation2 + $0x400] sm:$0xf] %v1936_v55  ;;  %3112 = vrot.lane.b32.xlu1 %v5211_v59, %s4322_s15  ;;  %3051 = vrot.lane.b32.xlu0 %v5223_v3, %s4321_s14 }
 0x2a8   : > { %v1924_v2 = vpop.permute.xlu1 %1923  ;;  %v1922_v58 = vpop.permute.xlu0 %1921 }
 0x2a9   : > { %v1937_v48 = vsel %vm1933_vm11, %v1920_v19, %v1922_v58  ;;  %v1938_v0 = vsel %vm1933_vm11, %v1922_v58, %v1924_v2 }
 0x2aa   : > { %1955 = vst [vmem:[#allocation2 + $0x408] sm:$0xf] %v1937_v48  ;;  %1956 = vst [vmem:[#allocation2 + $0x410] sm:$0xf] %v1938_v0  ;;  %2921 = vrot.lane.b32.xlu1 %v5211_v59, %s4319_s10  ;;  %3114 = vrot.lane.b32.xlu0 %v5273_v39, %s4322_s15 }
 0x2ac   : > { %v1928_v54 = vpop.permute.xlu1 %1927  ;;  %v1926_v10 = vpop.permute.xlu0 %1925 }
 0x2ad   : > { %v1939_v60 = vsel %vm1933_vm11, %v1924_v2, %v1926_v10  ;;  %v1940_v62 = vsel %vm1933_vm11, %v1926_v10, %v1928_v54 }
 0x2ae   : > { %1957 = vst [vmem:[#allocation2 + $0x418] sm:$0xf] %v1939_v60  ;;  %1958 = vst [vmem:[#allocation2 + $0x420] sm:$0xf] %v1940_v62  ;;  %3047 = vrot.lane.b32.xlu1 %v5211_v59, %s4321_s14  ;;  %2984 = vrot.lane.b32.xlu0 %v5291_v1, %s4320_s11 }
 0x2b0   : > { %v1932_v13 = vpop.permute.xlu1 %1931  ;;  %v1930_v16 = vpop.permute.xlu0 %1929 }
 0x2b1   : > { %v1941_v57 = vsel %vm1933_vm11, %v1928_v54, %v1930_v16  ;;  %v1942_v39 = vsel %vm1933_vm11, %v1930_v16, %v1932_v13  ;;  %vm2941_vm11 = vcmask 261120  }
 0x2b2   : > { %1959 = vst [vmem:[#allocation2 + $0x428] sm:$0xf] %v1941_v57  ;;  %1960 = vst [vmem:[#allocation2 + $0x430] sm:$0xf] %v1942_v39  ;;  %3175 = vrot.lane.b32.xlu1 %v5220_v44, %s4323_s16  ;;  %3110 = vrot.lane.b32.xlu0 %v5291_v1, %s4322_s15  ;;  %v5463_v44 = vcombine.low %v5236_v21, %v5236_v21  ;;  %v5561_v39 = vld [vmem:[%s4361_s17 + $0x1c] sm:$0xff] }
 0x2b4   : > { %v5448_v63 = vpop.permute.xlu1 %1980  ;;  %v1979_v56 = vpop.permute.xlu0 %1978 }
 0x2b5   : > { %v1998_v61 = vsel %vm1996_vm12, %v1979_v56, %v5448_v63 }
 0x2b6   : > { %2016 = vst [vmem:[#allocation2 + $0x3f8] sm:$0xf0] %v1998_v61  ;;  %3173 = vrot.lane.b32.xlu1 %v5211_v59, %s4323_s16  ;;  %3177 = vrot.lane.b32.xlu0 %v5223_v3, %s4323_s16 }
 0x2b8   : > { %v5469_v1 = vpop.permute.xlu1 %2043  ;;  %v2042_v15 = vpop.permute.xlu0 %2041 }
 0x2b9   : > { %v2061_v59 = vsel %vm2059_vm13, %v2042_v15, %v5469_v1 }
 0x2ba   : > { %2079 = vst [vmem:[#allocation2 + $0x440] sm:$0xf] %v2061_v59  ;;  %1984 = vrot.lane.b32.xlu1 %v5463_v44, %s4304_s22  ;;  %1982 = vrot.lane.b32.xlu0 %v5223_v3, %s4304_s22 }
 0x2bc   : > { %v5477_v7 = vpop.permute.xlu1 %2106  ;;  %v2105_v8 = vpop.permute.xlu0 %2104 }
 0x2bd   : > { %v2124_v31 = vsel %vm2122_vm15, %v2105_v8, %v5477_v7  ;;  %v3350_v12 = vld [vmem:[#allocation2 + $0x3f8] sm:$0xff] }
 0x2be   : > { %2142 = vst [vmem:[#allocation2 + $0x440] sm:$0xf0] %v2124_v31  ;;  %2047 = vrot.lane.b32.xlu1 %v5236_v21, %s4305_s23  ;;  %2045 = vrot.lane.b32.xlu0 %v5233_v50, %s4305_s23 }
 0x2c0   : > { %v2040_v11 = vpop.permute.xlu1 %2039  ;;  %v1977_v9 = vpop.permute.xlu0 %1976 }
 0x2c1   : > { %v2060_v20 = vsel %vm2059_vm13, %v2040_v11, %v2042_v15  ;;  %v1997_v37 = vsel %vm1996_vm12, %v1977_v9, %v1979_v56  ;;  %v5573_v15 = vcombine.low %v5561_v39, %v5561_v39 }
 0x2c2   : > { %2078 = vst [vmem:[#allocation2 + $0x438] sm:$0xf] %v2060_v20  ;;  %2015 = vst [vmem:[#allocation2 + $0x3f0] sm:$0xf0] %v1997_v37  ;;  %2110 = vrot.lane.b32.xlu1 %v5463_v44, %s4306_s24  ;;  %2108 = vrot.lane.b32.xlu0 %v5223_v3, %s4306_s24 }
 0x2c4   : > { %v2168_v42 = vpop.permute.xlu1 %2167  ;;  %v2103_v23 = vpop.permute.xlu0 %2102 }
 0x2c5   : > { %v2123_v26 = vsel %vm2122_vm15, %v2103_v23, %v2105_v8  ;;  %v3359_v45 = vld [vmem:[#allocation2 + $0x440] sm:$0xff] }
 0x2c6   : > { %2141 = vst [vmem:[#allocation2 + $0x438] sm:$0xf0] %v2123_v26  ;;  %1988 = vrot.lane.b32.xlu1 %v5493_v22, %s4304_s22  ;;  %1986 = vrot.lane.b32.xlu0 %v5236_v21, %s4304_s22  ;;  %v3954_v27 = vpack.c.bf16 %v3359_v45, %v3350_v12 }
 0x2c8   : > { %v2231_v49 = vpop.permute.xlu1 %2230  ;;  %v5500_v28 = vpop.permute.xlu0 %2169  ;;  %3955 = vmatprep.subr.bf16.mxu0 %v3954_v27 }
 0x2c9   : > { %v2187_v29 = vsel %vm2185_vm0, %v2168_v42, %v5500_v28  ;;  %v3349_v34 = vld [vmem:[#allocation2 + $0x3f0] sm:$0xff] }
 0x2ca   : > { %2205 = vst [vmem:[#allocation2 + $0x488] sm:$0xf] %v2187_v29  ;;  %2051 = vrot.lane.b32.xlu1 %v5249_v25, %s4305_s23  ;;  %2049 = vrot.lane.b32.xlu0 %v5246_v24, %s4305_s23 }
 0x2cc   : > { %v2294_v52 = vpop.permute.xlu1 %2293  ;;  %v5508_v30 = vpop.permute.xlu0 %2232 }
 0x2cd   : > { %v2250_v33 = vsel %vm2248_vm1, %v2231_v49, %v5508_v30  ;;  %v3358_v35 = vld [vmem:[#allocation2 + $0x438] sm:$0xff] }
 0x2ce   : > { %2268 = vst [vmem:[#allocation2 + $0x488] sm:$0xf0] %v2250_v33  ;;  %2114 = vrot.lane.b32.xlu1 %v5493_v22, %s4306_s24  ;;  %2112 = vrot.lane.b32.xlu0 %v5236_v21, %s4306_s24  ;;  %v3956_v36 = vpack.c.bf16 %v3358_v35, %v3349_v34 }
 0x2d0   : > { %v2357_v40 = vpop.permute.xlu1 %2356  ;;  %v5516_v41 = vpop.permute.xlu0 %2295  ;;  %3957 = vmatpush1.bf16.msra.mxu0 %v3956_v36 }
 0x2d1   : > { %v2313_v4 = vsel %vm2311_vm2, %v2294_v52, %v5516_v41 }
 0x2d2   : > { %2331 = vst [vmem:[#allocation2 + $0x4d0] sm:$0xf] %v2313_v4  ;;  %2173 = vrot.lane.b32.xlu1 %v5236_v21, %s4307_s25  ;;  %2171 = vrot.lane.b32.xlu0 %v5233_v50, %s4307_s25 }
 0x2d4   : > { %v2166_v5 = vpop.permute.xlu1 %2165  ;;  %v5524_v46 = vpop.permute.xlu0 %2358 }
 0x2d5   : > { %v2186_v17 = vsel %vm2185_vm0, %v2166_v5, %v2168_v42  ;;  %v2376_v32 = vsel %vm6201_vm3, %v2357_v40, %v5524_v46  ;;  %v3368_v55 = vld [vmem:[#allocation2 + $0x488] sm:$0xff] }
 0x2d6   : > { %2204 = vst [vmem:[#allocation2 + $0x480] sm:$0xf] %v2186_v17  ;;  %2394 = vst [vmem:[#allocation2 + $0x4d0] sm:$0xf0] %v2376_v32  ;;  %2236 = vrot.lane.b32.xlu1 %v5463_v44, %s4308_s26  ;;  %2234 = vrot.lane.b32.xlu0 %v5223_v3, %s4308_s26 }
 0x2d8   : > { %v2292_v47 = vpop.permute.xlu1 %2291  ;;  %v2229_v18 = vpop.permute.xlu0 %2228 }
 0x2d9   : > { %v2312_v51 = vsel %vm2311_vm2, %v2292_v47, %v2294_v52  ;;  %v2249_v38 = vsel %vm2248_vm1, %v2229_v18, %v2231_v49 }
 0x2da   : > { %2330 = vst [vmem:[#allocation2 + $0x4c8] sm:$0xf] %v2312_v51  ;;  %2267 = vst [vmem:[#allocation2 + $0x480] sm:$0xf0] %v2249_v38  ;;  %2299 = vrot.lane.b32.xlu1 %v5236_v21, %s4309_s27  ;;  %2297 = vrot.lane.b32.xlu0 %v5233_v50, %s4309_s27 }
 0x2dc   : > { %v2420_v19 = vpop.permute.xlu1 %2419  ;;  %v2355_v53 = vpop.permute.xlu0 %2354 }
 0x2dd   : > { %v2375_v43 = vsel %vm6201_vm3, %v2355_v53, %v2357_v40  ;;  %v3377_v2 = vld [vmem:[#allocation2 + $0x4d0] sm:$0xff] }
 0x2de   : > { %2393 = vst [vmem:[#allocation2 + $0x4c8] sm:$0xf0] %v2375_v43  ;;  %2362 = vrot.lane.b32.xlu1 %v5463_v44, %s4310_s28  ;;  %2360 = vrot.lane.b32.xlu0 %v5223_v3, %s4310_s28  ;;  %v3958_v58 = vpack.c.bf16 %v3377_v2, %v3368_v55 }
 0x2e0   : > { %v2483_v48 = vpop.permute.xlu1 %2482  ;;  %v5544_v0 = vpop.permute.xlu0 %2421  ;;  %3959 = vmatprep.subr.bf16.mxu0 %v3958_v58 }
 0x2e1   : > { %v2439_v54 = vsel %vm6200_vm4, %v2420_v19, %v5544_v0  ;;  %v3367_v13 = vld [vmem:[#allocation2 + $0x480] sm:$0xff] }
 0x2e2   : > { %2457 = vst [vmem:[#allocation2 + $0x518] sm:$0xf] %v2439_v54  ;;  %2177 = vrot.lane.b32.xlu1 %v5249_v25, %s4307_s25  ;;  %2175 = vrot.lane.b32.xlu0 %v5246_v24, %s4307_s25 }
 0x2e4   : > { %v2546_v10 = vpop.permute.xlu1 %2545  ;;  %v5552_v60 = vpop.permute.xlu0 %2484 }
 0x2e5   : > { %v2502_v62 = vsel %vm6199_vm5, %v2483_v48, %v5552_v60  ;;  %v3376_v16 = vld [vmem:[#allocation2 + $0x4c8] sm:$0xff] }
 0x2e6   : > { %2520 = vst [vmem:[#allocation2 + $0x518] sm:$0xf0] %v2502_v62  ;;  %2240 = vrot.lane.b32.xlu1 %v5493_v22, %s4308_s26  ;;  %2238 = vrot.lane.b32.xlu0 %v5236_v21, %s4308_s26  ;;  %v3960_v57 = vpack.c.bf16 %v3376_v16, %v3367_v13 }
 0x2e8   : > { %v2609_v56 = vpop.permute.xlu1 %2608  ;;  %v5563_v61 = vpop.permute.xlu0 %2547  ;;  %3961 = vmatpush1.bf16.msra.mxu0 %v3960_v57 }
 0x2e9   : > { %v2565_v44 = vsel %vm2563_vm14, %v2546_v10, %v5563_v61 }
 0x2ea   : > { %2583 = vst [vmem:[#allocation2 + $0x560] sm:$0xf] %v2565_v44  ;;  %2303 = vrot.lane.b32.xlu1 %v5249_v25, %s4309_s27  ;;  %2301 = vrot.lane.b32.xlu0 %v5246_v24, %s4309_s27  ;;  %v5585_v24 = vld [vmem:[%s4361_s17 + $0x14] sm:$0xff] }
 0x2eb   : > { %v5595_v22 = vcombine.low %v5585_v24, %v5585_v24  ;;  %v5616_v40 = vcombine.high %v5585_v24, %v5585_v24 }
 0x2ec   : > { %v2418_v59 = vpop.permute.xlu1 %2417  ;;  %v5575_v8 = vpop.permute.xlu0 %2610 }
 0x2ed   : > { %v2438_v31 = vsel %vm6200_vm4, %v2418_v59, %v2420_v19  ;;  %v2628_v11 = vsel %vm6198_vm6, %v2609_v56, %v5575_v8  ;;  %v3386_v26 = vld [vmem:[#allocation2 + $0x518] sm:$0xff] }
 0x2ee   : > { %2456 = vst [vmem:[#allocation2 + $0x510] sm:$0xf] %v2438_v31  ;;  %2646 = vst [vmem:[#allocation2 + $0x560] sm:$0xf0] %v2628_v11  ;;  %2366 = vrot.lane.b32.xlu1 %v5573_v15, %s4310_s28  ;;  %2364 = vrot.lane.b32.xlu0 %v5236_v21, %s4310_s28  ;;  %v5665_v11 = vld [vmem:[%s4361_s17 + $0xc] sm:$0xff] }
 0x2f0   : > { %v2544_v25 = vpop.permute.xlu1 %2543  ;;  %v2481_v9 = vpop.permute.xlu0 %2480 }
 0x2f1   : > { %v2564_v20 = vsel %vm2563_vm14, %v2544_v25, %v2546_v10  ;;  %v2501_v37 = vsel %vm6199_vm5, %v2481_v9, %v2483_v48 }
 0x2f2   : > { %2582 = vst [vmem:[#allocation2 + $0x558] sm:$0xf] %v2564_v20  ;;  %2519 = vst [vmem:[#allocation2 + $0x510] sm:$0xf0] %v2501_v37  ;;  %2425 = vrot.lane.b32.xlu1 %v5585_v24, %s4311_s29  ;;  %2423 = vrot.lane.b32.xlu0 %v5233_v50, %s4311_s29 }
 0x2f4   : > { %v2672_v21 = vpop.permute.xlu1 %2671  ;;  %v2607_v42 = vpop.permute.xlu0 %2606 }
 0x2f5   : > { %v2627_v23 = vsel %vm6198_vm6, %v2607_v42, %v2609_v56  ;;  %v3395_v12 = vld [vmem:[#allocation2 + $0x560] sm:$0xff] }
 0x2f6   : > { %2645 = vst [vmem:[#allocation2 + $0x558] sm:$0xf0] %v2627_v23  ;;  %2488 = vrot.lane.b32.xlu1 %v5595_v22, %s4312_s30  ;;  %2486 = vrot.lane.b32.xlu0 %v5223_v3, %s4312_s30  ;;  %v3962_v45 = vpack.c.bf16 %v3395_v12, %v3386_v26 }
 0x2f8   : > { %v2735_v27 = vpop.permute.xlu1 %2734  ;;  %v5602_v49 = vpop.permute.xlu0 %2673  ;;  %3963 = vmatprep.subr.bf16.mxu0 %v3962_v45 }
 0x2f9   : > { %v2691_v29 = vsel %vm2689_vm7, %v2672_v21, %v5602_v49  ;;  %v3385_v35 = vld [vmem:[#allocation2 + $0x510] sm:$0xff] }
 0x2fa   : > { %2709 = vst [vmem:[#allocation2 + $0x5a8] sm:$0xf] %v2691_v29  ;;  %2551 = vrot.lane.b32.xlu1 %v5585_v24, %s4313_s4  ;;  %2549 = vrot.lane.b32.xlu0 %v5233_v50, %s4313_s4 }
 0x2fc   : > { %v2798_v52 = vpop.permute.xlu1 %2797  ;;  %v5610_v33 = vpop.permute.xlu0 %2736 }
 0x2fd   : > { %v2754_v34 = vsel %vm6195_vm8, %v2735_v27, %v5610_v33  ;;  %v3394_v36 = vld [vmem:[#allocation2 + $0x558] sm:$0xff] }
 0x2fe   : > { %2772 = vst [vmem:[#allocation2 + $0x5a8] sm:$0xf0] %v2754_v34  ;;  %2614 = vrot.lane.b32.xlu1 %v5595_v22, %s4314_s5  ;;  %2612 = vrot.lane.b32.xlu0 %v5223_v3, %s4314_s5  ;;  %v3964_v4 = vpack.c.bf16 %v3394_v36, %v3385_v35 }
 0x300   : > { %v2861_v5 = vpop.permute.xlu1 %2860  ;;  %v5622_v17 = vpop.permute.xlu0 %2799  ;;  %3965 = vmatpush1.bf16.msra.mxu0 %v3964_v4 }
 0x301   : > { %v2817_v32 = vsel %vm6194_vm9, %v2798_v52, %v5622_v17 }
 0x302   : > { %2835 = vst [vmem:[#allocation2 + $0x5f0] sm:$0xf] %v2817_v32  ;;  %2429 = vrot.lane.b32.xlu1 %v5561_v39, %s4311_s29  ;;  %2427 = vrot.lane.b32.xlu0 %v5616_v40, %s4311_s29 }
 0x304   : > { %v2670_v47 = vpop.permute.xlu1 %2669  ;;  %v5630_v18 = vpop.permute.xlu0 %2862 }
 0x305   : > { %v2690_v3 = vsel %vm2689_vm7, %v2670_v47, %v2672_v21  ;;  %v2880_v51 = vsel %vm6193_vm10, %v2861_v5, %v5630_v18  ;;  %v3404_v48 = vld [vmem:[#allocation2 + $0x5a8] sm:$0xff] }
 0x306   : > { %2708 = vst [vmem:[#allocation2 + $0x5a0] sm:$0xf] %v2690_v3  ;;  %2898 = vst [vmem:[#allocation2 + $0x5f0] sm:$0xf0] %v2880_v51  ;;  %2492 = vrot.lane.b32.xlu1 %v5573_v15, %s4312_s30  ;;  %2490 = vrot.lane.b32.xlu0 %v5585_v24, %s4312_s30 }
 0x308   : > { %v2796_v38 = vpop.permute.xlu1 %2795  ;;  %v2733_v19 = vpop.permute.xlu0 %2732 }
 0x309   : > { %v2816_v53 = vsel %vm6194_vm9, %v2796_v38, %v2798_v52  ;;  %v2753_v43 = vsel %vm6195_vm8, %v2733_v19, %v2735_v27  ;;  %vm6196_vm9 = vcmask 244736   ;;  %vm3130_vm8 = vcmask 236544  }
 0x30a   : > { %2834 = vst [vmem:[#allocation2 + $0x5e8] sm:$0xf] %v2816_v53  ;;  %2771 = vst [vmem:[#allocation2 + $0x5a0] sm:$0xf0] %v2753_v43  ;;  %2555 = vrot.lane.b32.xlu1 %v5561_v39, %s4313_s4  ;;  %2553 = vrot.lane.b32.xlu0 %v5616_v40, %s4313_s4 }
 0x30c   : > { %v2924_v55 = vpop.permute.xlu1 %2923  ;;  %v2859_v2 = vpop.permute.xlu0 %2858 }
 0x30d   : > { %v2879_v58 = vsel %vm6193_vm10, %v2859_v2, %v2861_v5  ;;  %v3413_v54 = vld [vmem:[#allocation2 + $0x5f0] sm:$0xff]  ;;  %vm3004_vm10 = vcmask 252928  }
 0x30e   : > { %2897 = vst [vmem:[#allocation2 + $0x5e8] sm:$0xf0] %v2879_v58  ;;  %2618 = vrot.lane.b32.xlu1 %v5573_v15, %s4314_s5  ;;  %2616 = vrot.lane.b32.xlu0 %v5585_v24, %s4314_s5  ;;  %v3966_v10 = vpack.c.bf16 %v3413_v54, %v3404_v48 }
 0x310   : > { %v2987_v62 = vpop.permute.xlu1 %2986  ;;  %v5650_v13 = vpop.permute.xlu0 %2925  ;;  %3967 = vmatprep.subr.bf16.mxu0 %v3966_v10  ;;  %v3237_v10 = vld [vmem:[#allocation2 + $0x70] sm:$0xff] }
 0x311   : > { %v2943_v16 = vsel %vm2941_vm11, %v2924_v55, %v5650_v13  ;;  %v3403_v59 = vld [vmem:[#allocation2 + $0x5a0] sm:$0xff] }
 0x312   : > { %2961 = vst [vmem:[#allocation2 + $0x638] sm:$0xf] %v2943_v16  ;;  %2677 = vrot.lane.b32.xlu1 %v5585_v24, %s4315_s6  ;;  %2675 = vrot.lane.b32.xlu0 %v5233_v50, %s4315_s6 }
 0x314   : > { %v3050_v57 = vpop.permute.xlu1 %3049  ;;  %v5658_v56 = vpop.permute.xlu0 %2988 }
 0x315   : > { %v3006_v44 = vsel %vm3004_vm10, %v2987_v62, %v5658_v56  ;;  %v3412_v31 = vld [vmem:[#allocation2 + $0x5e8] sm:$0xff] }
 0x316   : > { %3024 = vst [vmem:[#allocation2 + $0x638] sm:$0xf0] %v3006_v44  ;;  %2740 = vrot.lane.b32.xlu1 %v5595_v22, %s4316_s7  ;;  %2738 = vrot.lane.b32.xlu0 %v5665_v11, %s4316_s7  ;;  %v3968_v25 = vpack.c.bf16 %v3412_v31, %v3403_v59  ;;  %v5723_v44 = vld [vmem:[%s6190_s1] sm:$0xff]  ;;  %v3236_v59 = vld [vmem:[#allocation2 + $0x68] sm:$0xff] }
 0x318   : > { %v3113_v9 = vpop.permute.xlu1 %3112  ;;  %v5669_v20 = vpop.permute.xlu0 %3051  ;;  %3969 = vmatpush1.bf16.msra.mxu0 %v3968_v25  ;;  %v3255_v25 = vld [vmem:[#allocation2 + $0x100] sm:$0xff] }
 0x319   : > { %v3069_v37 = vsel %vm6196_vm9, %v3050_v57, %v5669_v20 }
 0x31a   : > { %3087 = vst [vmem:[#allocation2 + $0x680] sm:$0xf] %v3069_v37  ;;  %2803 = vrot.lane.b32.xlu1 %v5585_v24, %s4317_s8  ;;  %2801 = vrot.lane.b32.xlu0 %v5233_v50, %s4317_s8 }
 0x31c   : > { %v2922_v21 = vpop.permute.xlu1 %2921  ;;  %v5677_v42 = vpop.permute.xlu0 %3114 }
 0x31d   : > { %v2942_v23 = vsel %vm2941_vm11, %v2922_v21, %v2924_v55  ;;  %v3132_v26 = vsel %vm3130_vm8, %v3113_v9, %v5677_v42  ;;  %v3422_v36 = vld [vmem:[#allocation2 + $0x638] sm:$0xff]  ;;  %v3227_v21 = vld [vmem:[#allocation2 + $0x20] sm:$0xff] }
 0x31e   : > { %2960 = vst [vmem:[#allocation2 + $0x630] sm:$0xf] %v2942_v23  ;;  %3150 = vst [vmem:[#allocation2 + $0x680] sm:$0xf0] %v3132_v26  ;;  %2866 = vrot.lane.b32.xlu1 %v5595_v22, %s4318_s9  ;;  %2864 = vrot.lane.b32.xlu0 %v5665_v11, %s4318_s9 }
 0x320   : > { %v3048_v12 = vpop.permute.xlu1 %3047  ;;  %v2985_v45 = vpop.permute.xlu0 %2984 }
 0x321   : > { %v3068_v27 = vsel %vm6196_vm9, %v3048_v12, %v3050_v57  ;;  %v3005_v29 = vsel %vm3004_vm10, %v2985_v45, %v2987_v62  ;;  %vm6197_vm9 = vcmask 228352   ;;  %v3228_v57 = vld [vmem:[#allocation2 + $0x28] sm:$0xff]  ;;  %v4024_v12 = vpack.c.bf16 %v3236_v59, %v3227_v21  ;;  %v3246_v45 = vld [vmem:[#allocation2 + $0xb8] sm:$0xff] }
 0x322   : > { %3086 = vst [vmem:[#allocation2 + $0x678] sm:$0xf] %v3068_v27  ;;  %3023 = vst [vmem:[#allocation2 + $0x630] sm:$0xf0] %v3005_v29  ;;  %2681 = vrot.lane.b32.xlu1 %v5561_v39, %s4315_s6  ;;  %2679 = vrot.lane.b32.xlu0 %v5616_v40, %s4315_s6  ;;  %v4022_v31 = vpack.c.bf16 %v3237_v10, %v3228_v57  ;;  %v4026_v27 = vpack.c.bf16 %v3255_v25, %v3246_v45  ;;  %v3254_v29 = vld [vmem:[#allocation2 + $0xf8] sm:$0xff]  ;;  %v3327_v45 = vld [vmem:[#allocation2 + $0x340] sm:$0xff] }
 0x324   : > { %v3176_v52 = vpop.permute.xlu1 %3175  ;;  %v3111_v34 = vpop.permute.xlu0 %3110 }
 0x325   : > { %v3131_v35 = vsel %vm3130_vm8, %v3111_v34, %v3113_v9  ;;  %v3431_v4 = vld [vmem:[#allocation2 + $0x680] sm:$0xff] }
 0x326   : > { %3149 = vst [vmem:[#allocation2 + $0x678] sm:$0xf0] %v3131_v35  ;;  %2744 = vrot.lane.b32.xlu1 %v5573_v15, %s4316_s7  ;;  %2742 = vrot.lane.b32.xlu0 %v5585_v24, %s4316_s7  ;;  %v3970_v5 = vpack.c.bf16 %v3431_v4, %v3422_v36  ;;  %v3245_v35 = vld [vmem:[#allocation2 + $0xb0] sm:$0xff] }
 0x328   : > { %v3174_v32 = vpop.permute.xlu1 %3173  ;;  %v5697_v47 = vpop.permute.xlu0 %3177  ;;  %3971 = vmatprep.subr.bf16.mxu0 %v3970_v5  ;;  %v4028_v5 = vpack.c.bf16 %v3254_v29, %v3245_v35  ;;  %v3299_v29 = vld [vmem:[#allocation2 + $0x260] sm:$0xff] }
 0x329   : > { %v3194_v3 = vsel %vm6197_vm9, %v3174_v32, %v3176_v52  ;;  %v3195_v51 = vsel %vm6197_vm9, %v3176_v52, %v5697_v47  ;;  %v3421_v55 = vld [vmem:[#allocation2 + $0x630] sm:$0xff]  ;;  %vm3457_vm9 = vcmask 1043456   ;;  %v3264_v32 = vld [vmem:[#allocation2 + $0x148] sm:$0xff] }
 0x32a   : > { %3212 = vst [vmem:[#allocation2 + $0x6c0] sm:$0xf] %v3194_v3  ;;  %3213 = vst [vmem:[#allocation2 + $0x6c8] sm:$0xf] %v3195_v51  ;;  %2807 = vrot.lane.b32.xlu1 %v5561_v39, %s4317_s8  ;;  %2805 = vrot.lane.b32.xlu0 %v5616_v40, %s4317_s8  ;;  %v3272_v3 = vld [vmem:[#allocation2 + $0x188] sm:$0xff]  ;;  %v3291_v51 = vld [vmem:[#allocation2 + $0x220] sm:$0xff] }
 0x32c   : > { %v1985_v38 = vpop.permute.xlu1 %1984  ;;  %v1983_v19 = vpop.permute.xlu0 %1982 }
 0x32d   : > { %v1999_v53 = vsel %vm1996_vm12, %v5448_v63, %v1983_v19  ;;  %v2000_v43 = vsel %vm1996_vm12, %v1983_v19, %v1985_v38  ;;  %v3430_v2 = vld [vmem:[#allocation2 + $0x678] sm:$0xff] }
 0x32e   : > { %2017 = vst [vmem:[#allocation2 + $0x400] sm:$0xf0] %v1999_v53  ;;  %2018 = vst [vmem:[#allocation2 + $0x408] sm:$0xf0] %v2000_v43  ;;  %2870 = vrot.lane.b32.xlu1 %v5573_v15, %s4318_s9  ;;  %2868 = vrot.lane.b32.xlu0 %v5585_v24, %s4318_s9  ;;  %v3972_v58 = vpack.c.bf16 %v3430_v2, %v3421_v55  ;;  %v3263_v53 = vld [vmem:[#allocation2 + $0x140] sm:$0xff]  ;;  %v3282_v43 = vld [vmem:[#allocation2 + $0x1d8] sm:$0xff] }
 0x330   : > { %v2048_v48 = vpop.permute.xlu1 %2047  ;;  %v2046_v54 = vpop.permute.xlu0 %2045  ;;  %3973 = vmatpush1.bf16.msra.mxu0 %v3972_v58 }
 0x331   : > { %v2062_v63 = vsel %vm2059_vm13, %v5469_v1, %v2046_v54  ;;  %v2063_v62 = vsel %vm2059_vm13, %v2046_v54, %v2048_v48  ;;  %v3440_v16 = vld [vmem:[#allocation2 + $0x6c8] sm:$0xf]  ;;  %v3439_v1 = vld [vmem:[#allocation2 + $0x6c0] sm:$0xf]  ;;  %v4032_v54 = vpack.c.bf16 %v3272_v3, %v3263_v53 }
 0x332   : > { %2080 = vst [vmem:[#allocation2 + $0x448] sm:$0xf] %v2062_v63  ;;  %2081 = vst [vmem:[#allocation2 + $0x450] sm:$0xf] %v2063_v62  ;;  %2929 = vrot.lane.b32.xlu1 %v5585_v24, %s4319_s10  ;;  %2927 = vrot.lane.b32.xlu0 %v5233_v50, %s4319_s10 }
 0x333   : > { %3910 = vmatprep.subr.msk.mxu0 %vm3457_vm9, %v3440_v16  ;;  %v4034_v16 = vpack.c.bf16 %v3291_v51, %v3282_v43  ;;  %v3336_v43 = vld [vmem:[#allocation2 + $0x388] sm:$0xff] }
 0x334   : > { %v5726_v9 = vpop.permute.xlu1 %2110  ;;  %v2109_v37 = vpop.permute.xlu0 %2108  ;;  %3911 = vmatpush1.msk.msra.mxu0 %vm3457_vm9, %v3439_v1  ;;  %v3290_v1 = vld [vmem:[#allocation2 + $0x218] sm:$0xff] }
 0x335   : > { %v2125_v23 = vsel %vm2122_vm15, %v5477_v7, %v2109_v37  ;;  %v2126_v26 = vsel %vm2122_vm15, %v2109_v37, %v5726_v9  ;;  %4023 = vmatprep.subr.bf16.mxu0 %v4022_v31  ;;  %3550 = vmatmul.mubr.f32.vlgmr.msra.gmra.mrb[0].mxu0 %v5723_v44  ;;  %v3273_v7 = vld [vmem:[#allocation2 + $0x190] sm:$0xff]  ;;  %v3352_v55 = vld [vmem:[#allocation2 + $0x408] sm:$0xff]  ;;  %v3351_v63 = vld [vmem:[#allocation2 + $0x400] sm:$0xff] }
 0x336   : > { %2143 = vst [vmem:[#allocation2 + $0x448] sm:$0xf0] %v2125_v23  ;;  %2144 = vst [vmem:[#allocation2 + $0x450] sm:$0xf0] %v2126_v26  ;;  %2992 = vrot.lane.b32.xlu1 %v5595_v22, %s4320_s11  ;;  %2990 = vrot.lane.b32.xlu0 %v5665_v11, %s4320_s11  ;;  %v3281_v37 = vld [vmem:[#allocation2 + $0x1d0] sm:$0xff]  ;;  %v3300_v23 = vld [vmem:[#allocation2 + $0x268] sm:$0xff] }
 0x337   : > { %4025 = vmatpush1.bf16.msra.mxu0 %v4024_v12  ;;  %3918 = vmatprep.mubr.msk.f32.mxu0 %vm2563_vm14, %v5455_v6  ;;  %v4030_v6 = vpack.c.bf16 %v3273_v7, %v3264_v32  ;;  %v3308_v12 = vld [vmem:[#allocation2 + $0x2a8] sm:$0xff]  ;;  %v3345_v32 = vld [vmem:[#allocation2 + $0x3d0] sm:$0xff] }
 0x338   : > { %4027 = vmatprep.subr.bf16.mxu0 %v4026_v27  ;;  %v5740_v52 = vpop.permute.xlu1 %1988  ;;  %v1987_v34 = vpop.permute.xlu0 %1986  ;;  %v4040_v35 = vpack.c.bf16 %v3308_v12, %v3299_v29 }
 0x339   : > { %v2001_v36 = vsel %vm1996_vm12, %v1985_v38, %v1987_v34  ;;  %v2002_v4 = vsel %vm1996_vm12, %v1987_v34, %v5740_v52 }
 0x33a   : > { %2019 = vst [vmem:[#allocation2 + $0x410] sm:$0xf0] %v2001_v36  ;;  %2020 = vst [vmem:[#allocation2 + $0x418] sm:$0xf0] %v2002_v4  ;;  %3055 = vrot.lane.b32.xlu1 %v5585_v24, %s4321_s14  ;;  %3053 = vrot.lane.b32.xlu0 %v5233_v50, %s4321_s14  ;;  %v3318_v36 = vld [vmem:[#allocation2 + $0x2f8] sm:$0xff] }
 0x33b   : > { %4029 = vmatpush1.bf16.msra.mxu0 %v4028_v5  ;;  %v4042_v4 = vpack.c.bf16 %v3327_v45, %v3318_v36  ;;  %v3326_v5 = vld [vmem:[#allocation2 + $0x338] sm:$0xff] }
 0x33c   : > { %4031 = vmatprep.subr.bf16.mxu0 %v4030_v6  ;;  %v5749_v19 = vpop.permute.xlu1 %2051  ;;  %v2050_v38 = vpop.permute.xlu0 %2049 }
 0x33d   : > { %v2064_v2 = vsel %vm2059_vm13, %v2048_v48, %v2050_v38  ;;  %v2065_v58 = vsel %vm2059_vm13, %v2050_v38, %v5749_v19  ;;  %v3361_v10 = vld [vmem:[#allocation2 + $0x450] sm:$0xff]  ;;  %v3360_v62 = vld [vmem:[#allocation2 + $0x448] sm:$0xff] }
 0x33e   : > { %2082 = vst [vmem:[#allocation2 + $0x458] sm:$0xf] %v2064_v2  ;;  %2083 = vst [vmem:[#allocation2 + $0x460] sm:$0xf] %v2065_v58  ;;  %3118 = vrot.lane.b32.xlu1 %v5595_v22, %s4322_s15  ;;  %3116 = vrot.lane.b32.xlu0 %v5665_v11, %s4322_s15  ;;  %v4002_v57 = vpack.c.bf16 %v3361_v10, %v3352_v55  ;;  %v4004_v59 = vpack.c.bf16 %v3360_v62, %v3351_v63  ;;  %v3309_v48 = vld [vmem:[#allocation2 + $0x2b0] sm:$0xff]  ;;  %v3344_v2 = vld [vmem:[#allocation2 + $0x3c8] sm:$0xff] }
 0x33f   : > { %4033 = vmatpush1.bf16.msra.mxu0 %v4032_v54  ;;  %v4036_v11 = vpack.c.bf16 %v3290_v1, %v3281_v37  ;;  %v4038_v26 = vpack.c.bf16 %v3309_v48, %v3300_v23  ;;  %v4046_v55 = vpack.c.bf16 %v3345_v32, %v3336_v43 }
 0x340   : > { %4035 = vmatprep.subr.bf16.mxu0 %v4034_v16  ;;  %v5758_v31 = vpop.permute.xlu1 %2114  ;;  %v2113_v25 = vpop.permute.xlu0 %2112  ;;  %4003 = vmatprep.subr.bf16.mxu1 %v4002_v57 }
 0x341   : > { %v2127_v21 = vsel %vm2122_vm15, %v5726_v9, %v2113_v25  ;;  %v2128_v22 = vsel %vm2122_vm15, %v2113_v25, %v5758_v31  ;;  %4005 = vmatpush1.bf16.msra.mxu1 %v4004_v59  ;;  %v3354_v57 = vld [vmem:[#allocation2 + $0x418] sm:$0xff] }
 0x342   : > { %2145 = vst [vmem:[#allocation2 + $0x458] sm:$0xf0] %v2127_v21  ;;  %2146 = vst [vmem:[#allocation2 + $0x460] sm:$0xf0] %v2128_v22  ;;  %2933 = vrot.lane.b32.xlu1 %v5561_v39, %s4319_s10  ;;  %2931 = vrot.lane.b32.xlu0 %v5616_v40, %s4319_s10 }
 0x343   : > { %4037 = vmatpush1.bf16.msra.mxu0 %v4036_v11 }
 0x344   : > { %4039 = vmatprep.subr.bf16.mxu0 %v4038_v26  ;;  %v2174_v9 = vpop.permute.xlu1 %2173  ;;  %v2172_v27 = vpop.permute.xlu0 %2171 }
 0x345   : > { %v2188_v7 = vsel %vm2185_vm0, %v5500_v28, %v2172_v27  ;;  %v2189_v34 = vsel %vm2185_vm0, %v2172_v27, %v2174_v9  ;;  %v3317_v28 = vld [vmem:[#allocation2 + $0x2f0] sm:$0xff] }
 0x346   : > { %2206 = vst [vmem:[#allocation2 + $0x490] sm:$0xf] %v2188_v7  ;;  %2207 = vst [vmem:[#allocation2 + $0x498] sm:$0xf] %v2189_v34  ;;  %2996 = vrot.lane.b32.xlu1 %v5573_v15, %s4320_s11  ;;  %2994 = vrot.lane.b32.xlu0 %v5585_v24, %s4320_s11  ;;  %v4044_v53 = vpack.c.bf16 %v3326_v5, %v3317_v28 }
 0x347   : > { %4041 = vmatpush1.bf16.msra.mxu0 %v4040_v35 }
 0x348   : > { %4043 = vmatprep.subr.bf16.mxu0 %v4042_v4  ;;  %v2237_v6 = vpop.permute.xlu1 %2236  ;;  %v2235_v3 = vpop.permute.xlu0 %2234 }
 0x349   : > { %v2251_v51 = vsel %vm2248_vm1, %v5508_v30, %v2235_v3  ;;  %v2252_v38 = vsel %vm2248_vm1, %v2235_v3, %v2237_v6  ;;  %v3363_v58 = vld [vmem:[#allocation2 + $0x460] sm:$0xff]  ;;  %v3362_v1 = vld [vmem:[#allocation2 + $0x458] sm:$0xff] }
 0x34a   : > { %2269 = vst [vmem:[#allocation2 + $0x490] sm:$0xf0] %v2251_v51  ;;  %2270 = vst [vmem:[#allocation2 + $0x498] sm:$0xf0] %v2252_v38  ;;  %3059 = vrot.lane.b32.xlu1 %v5561_v39, %s4321_s14  ;;  %3057 = vrot.lane.b32.xlu0 %v5616_v40, %s4321_s14  ;;  %v3335_v30 = vld [vmem:[#allocation2 + $0x380] sm:$0xff]  ;;  %v4050_v59 = vpack.c.bf16 %v3363_v58, %v3354_v57 }
 0x34b   : > { %4045 = vmatpush1.bf16.msra.mxu0 %v4044_v53  ;;  %v4048_v16 = vpack.c.bf16 %v3344_v2, %v3335_v30 }
 0x34c   : > { %4047 = vmatprep.subr.bf16.mxu0 %v4046_v55  ;;  %v2300_v54 = vpop.permute.xlu1 %2299  ;;  %v2298_v10 = vpop.permute.xlu0 %2297 }
 0x34d   : > { %v2314_v63 = vsel %vm2311_vm2, %v5516_v41, %v2298_v10  ;;  %v2315_v62 = vsel %vm2311_vm2, %v2298_v10, %v2300_v54  ;;  %v3353_v41 = vld [vmem:[#allocation2 + $0x410] sm:$0xff] }
 0x34e   : > { %2332 = vst [vmem:[#allocation2 + $0x4d8] sm:$0xf] %v2314_v63  ;;  %2333 = vst [vmem:[#allocation2 + $0x4e0] sm:$0xf] %v2315_v62  ;;  %3122 = vrot.lane.b32.xlu1 %v5573_v15, %s4322_s15  ;;  %3120 = vrot.lane.b32.xlu0 %v5585_v24, %s4322_s15  ;;  %v4052_v22 = vpack.c.bf16 %v3362_v1, %v3353_v41  ;;  %v5797_v15 = vld [vmem:[%s4361_s17 + $0x24] sm:$0xff] }
 0x34f   : > { %4049 = vmatpush1.bf16.msra.mxu0 %v4048_v16  ;;  %v5837_v53 = vcombine.high %v5797_v15, %v5797_v15 }
 0x350   : > { %4051 = vmatprep.subr.bf16.mxu0 %v4050_v59  ;;  %v2363_v48 = vpop.permute.xlu1 %2362  ;;  %v2361_v25 = vpop.permute.xlu0 %2360 }
 0x351   : > { %v2377_v37 = vsel %vm6201_vm3, %v5524_v46, %v2361_v25  ;;  %v2378_v21 = vsel %vm6201_vm3, %v2361_v25, %v2363_v48  ;;  %v3370_v45 = vld [vmem:[#allocation2 + $0x498] sm:$0xff]  ;;  %v3369_v7 = vld [vmem:[#allocation2 + $0x490] sm:$0xff] }
 0x352   : > { %2395 = vst [vmem:[#allocation2 + $0x4d8] sm:$0xf0] %v2377_v37  ;;  %2396 = vst [vmem:[#allocation2 + $0x4e0] sm:$0xf0] %v2378_v21  ;;  %3181 = vrot.lane.b32.xlu1 %v5585_v24, %s4323_s16  ;;  %3179 = vrot.lane.b32.xlu0 %v5233_v50, %s4323_s16  ;;  %v5810_v50 = vcombine.low %v5797_v15, %v5797_v15 }
 0x353   : > { %4053 = vmatpush1.bf16.msra.mxu0 %v4052_v22 }
 0x354   : > { %v5799_v11 = vpop.permute.xlu1 %2177  ;;  %v2176_v23 = vpop.permute.xlu0 %2175 }
 0x355   : > { %v2190_v26 = vsel %vm2185_vm0, %v2174_v9, %v2176_v23  ;;  %v2191_v46 = vsel %vm2185_vm0, %v2176_v23, %v5799_v11 }
 0x356   : > { %2208 = vst [vmem:[#allocation2 + $0x4a0] sm:$0xf] %v2190_v26  ;;  %2209 = vst [vmem:[#allocation2 + $0x4a8] sm:$0xf] %v2191_v46  ;;  %3185 = vrot.lane.b32.xlu1 %v5561_v39, %s4323_s16  ;;  %3183 = vrot.lane.b32.xlu0 %v5616_v40, %s4323_s16  ;;  %v4264_v40 = vld [vmem:[%s4361_s17 + $0x1c] sm:$0xff] }
 0x358   : > { %v5812_v24 = vpop.permute.xlu1 %2240  ;;  %v2239_v12 = vpop.permute.xlu0 %2238 }
 0x359   : > { %v2253_v9 = vsel %vm2248_vm1, %v2237_v6, %v2239_v12  ;;  %v2254_v27 = vsel %vm2248_vm1, %v2239_v12, %v5812_v24  ;;  %v3379_v29 = vld [vmem:[#allocation2 + $0x4e0] sm:$0xff]  ;;  %v3378_v34 = vld [vmem:[#allocation2 + $0x4d8] sm:$0xff] }
 0x35a   : > { %2271 = vst [vmem:[#allocation2 + $0x4a0] sm:$0xf0] %v2253_v9  ;;  %2272 = vst [vmem:[#allocation2 + $0x4a8] sm:$0xf0] %v2254_v27  ;;  %1992 = vrot.lane.b32.xlu1 %v5810_v50, %s4304_s22  ;;  %1990 = vrot.lane.b32.xlu0 %v4264_v40, %s4304_s22  ;;  %v4006_v35 = vpack.c.bf16 %v3379_v29, %v3370_v45  ;;  %v4008_v36 = vpack.c.bf16 %v3378_v34, %v3369_v7 }
 0x35c   : > { %v5821_v4 = vpop.permute.xlu1 %2303  ;;  %v2302_v5 = vpop.permute.xlu0 %2301  ;;  %4007 = vmatprep.subr.bf16.mxu1 %v4006_v35 }
 0x35d   : > { %v2316_v32 = vsel %vm2311_vm2, %v2300_v54, %v2302_v5  ;;  %v2317_v6 = vsel %vm2311_vm2, %v2302_v5, %v5821_v4  ;;  %4009 = vmatpush1.bf16.msra.mxu1 %v4008_v36 }
 0x35e   : > { %2334 = vst [vmem:[#allocation2 + $0x4e8] sm:$0xf] %v2316_v32  ;;  %2335 = vst [vmem:[#allocation2 + $0x4f0] sm:$0xf] %v2317_v6  ;;  %2055 = vrot.lane.b32.xlu1 %v5797_v15, %s4305_s23  ;;  %2053 = vrot.lane.b32.xlu0 %v5259_v14, %s4305_s23 }
 0x360   : > { %v5830_v3 = vpop.permute.xlu1 %2366  ;;  %v2365_v28 = vpop.permute.xlu0 %2364 }
 0x361   : > { %v2379_v51 = vsel %vm6201_vm3, %v2363_v48, %v2365_v28  ;;  %v2380_v38 = vsel %vm6201_vm3, %v2365_v28, %v5830_v3  ;;  %v3372_v30 = vld [vmem:[#allocation2 + $0x4a8] sm:$0xff]  ;;  %v5894_v28 = vcombine.high %v5561_v39, %v5561_v39 }
 0x362   : > { %2397 = vst [vmem:[#allocation2 + $0x4e8] sm:$0xf0] %v2379_v51  ;;  %2398 = vst [vmem:[#allocation2 + $0x4f0] sm:$0xf0] %v2380_v38  ;;  %2118 = vrot.lane.b32.xlu1 %v5810_v50, %s4306_s24  ;;  %2116 = vrot.lane.b32.xlu0 %v4264_v40, %s4306_s24 }
 0x364   : > { %v2426_v43 = vpop.permute.xlu1 %2425  ;;  %v2424_v55 = vpop.permute.xlu0 %2423 }
 0x365   : > { %v2440_v2 = vsel %vm6200_vm4, %v5544_v0, %v2424_v55  ;;  %v2441_v58 = vsel %vm6200_vm4, %v2424_v55, %v2426_v43  ;;  %v3371_v0 = vld [vmem:[#allocation2 + $0x4a0] sm:$0xff] }
 0x366   : > { %2458 = vst [vmem:[#allocation2 + $0x520] sm:$0xf] %v2440_v2  ;;  %2459 = vst [vmem:[#allocation2 + $0x528] sm:$0xf] %v2441_v58  ;;  %2057 = vrot.lane.b32.xlu1 %v5837_v53, %s4305_s23  ;;  %1994 = vrot.lane.b32.xlu0 %v5797_v15, %s4304_s22 }
 0x368   : > { %v2489_v54 = vpop.permute.xlu1 %2488  ;;  %v2487_v10 = vpop.permute.xlu0 %2486 }
 0x369   : > { %v2503_v63 = vsel %vm6199_vm5, %v5552_v60, %v2487_v10  ;;  %v2504_v62 = vsel %vm6199_vm5, %v2487_v10, %v2489_v54  ;;  %v3381_v16 = vld [vmem:[#allocation2 + $0x4f0] sm:$0xff]  ;;  %v3380_v57 = vld [vmem:[#allocation2 + $0x4e8] sm:$0xff] }
 0x36a   : > { %2521 = vst [vmem:[#allocation2 + $0x520] sm:$0xf0] %v2503_v63  ;;  %2522 = vst [vmem:[#allocation2 + $0x528] sm:$0xf0] %v2504_v62  ;;  %2179 = vrot.lane.b32.xlu1 %v5259_v14, %s4307_s25  ;;  %2120 = vrot.lane.b32.xlu0 %v5797_v15, %s4306_s24  ;;  %v4054_v59 = vpack.c.bf16 %v3381_v16, %v3372_v30  ;;  %v4056_v1 = vpack.c.bf16 %v3380_v57, %v3371_v0 }
 0x36c   : > { %v2552_v48 = vpop.permute.xlu1 %2551  ;;  %v2550_v25 = vpop.permute.xlu0 %2549  ;;  %4055 = vmatprep.subr.bf16.mxu0 %v4054_v59 }
 0x36d   : > { %v2566_v60 = vsel %vm2563_vm14, %v5563_v61, %v2550_v25  ;;  %v2567_v41 = vsel %vm2563_vm14, %v2550_v25, %v2552_v48  ;;  %4057 = vmatpush1.bf16.msra.mxu0 %v4056_v1 }
 0x36e   : > { %2584 = vst [vmem:[#allocation2 + $0x568] sm:$0xf] %v2566_v60  ;;  %2585 = vst [vmem:[#allocation2 + $0x570] sm:$0xf] %v2567_v41  ;;  %2242 = vrot.lane.b32.xlu1 %v4264_v40, %s4308_s26  ;;  %2181 = vrot.lane.b32.xlu0 %v5797_v15, %s4307_s25 }
 0x370   : > { %v2615_v37 = vpop.permute.xlu1 %2614  ;;  %v2613_v21 = vpop.permute.xlu0 %2612 }
 0x371   : > { %v2629_v22 = vsel %vm6198_vm6, %v5575_v8, %v2613_v21  ;;  %v2630_v23 = vsel %vm6198_vm6, %v2613_v21, %v2615_v37  ;;  %v3388_v45 = vld [vmem:[#allocation2 + $0x528] sm:$0xff]  ;;  %v3387_v7 = vld [vmem:[#allocation2 + $0x520] sm:$0xff] }
 0x372   : > { %2647 = vst [vmem:[#allocation2 + $0x568] sm:$0xf0] %v2629_v22  ;;  %2648 = vst [vmem:[#allocation2 + $0x570] sm:$0xf0] %v2630_v23  ;;  %2305 = vrot.lane.b32.xlu1 %v5259_v14, %s4309_s27  ;;  %2244 = vrot.lane.b32.xlu0 %v5810_v50, %s4308_s26 }
 0x374   : > { %v5869_v61 = vpop.permute.xlu1 %2429  ;;  %v2428_v26 = vpop.permute.xlu0 %2427 }
 0x375   : > { %v2442_v46 = vsel %vm6200_vm4, %v2426_v43, %v2428_v26  ;;  %v2443_v12 = vsel %vm6200_vm4, %v2428_v26, %v5869_v61  ;;  %vm6206_vm4 = vcmask 269312  }
 0x376   : > { %2460 = vst [vmem:[#allocation2 + $0x530] sm:$0xf] %v2442_v46  ;;  %2461 = vst [vmem:[#allocation2 + $0x538] sm:$0xf] %v2443_v12  ;;  %2368 = vrot.lane.b32.xlu1 %v5561_v39, %s4310_s28  ;;  %2307 = vrot.lane.b32.xlu0 %v5797_v15, %s4309_s27 }
 0x377   : > { %vm6207_vm3 = vmmov %vm6206_vm4 }
 0x378   : > { %v5878_v14 = vpop.permute.xlu1 %2492  ;;  %v2491_v8 = vpop.permute.xlu0 %2490 }
 0x379   : > { %v2505_v9 = vsel %vm6199_vm5, %v2489_v54, %v2491_v8  ;;  %v2506_v27 = vsel %vm6199_vm5, %v2491_v8, %v5878_v14  ;;  %v3397_v29 = vld [vmem:[#allocation2 + $0x570] sm:$0xff]  ;;  %v3396_v34 = vld [vmem:[#allocation2 + $0x568] sm:$0xff] }
 0x37a   : > { %2523 = vst [vmem:[#allocation2 + $0x530] sm:$0xf0] %v2505_v9  ;;  %2524 = vst [vmem:[#allocation2 + $0x538] sm:$0xf0] %v2506_v27  ;;  %2183 = vrot.lane.b32.xlu1 %v5837_v53, %s4307_s25  ;;  %2370 = vrot.lane.b32.xlu0 %v5810_v50, %s4310_s28  ;;  %v4010_v40 = vpack.c.bf16 %v3397_v29, %v3388_v45  ;;  %v4012_v35 = vpack.c.bf16 %v3396_v34, %v3387_v7 }
 0x37c   : > { %v5887_v36 = vpop.permute.xlu1 %2555  ;;  %v2554_v5 = vpop.permute.xlu0 %2553  ;;  %4011 = vmatprep.subr.bf16.mxu1 %v4010_v40 }
 0x37d   : > { %v2568_v32 = vsel %vm2563_vm14, %v2552_v48, %v2554_v5  ;;  %v2569_v6 = vsel %vm2563_vm14, %v2554_v5, %v5887_v36  ;;  %4013 = vmatpush1.bf16.msra.mxu1 %v4012_v35 }
 0x37e   : > { %2586 = vst [vmem:[#allocation2 + $0x578] sm:$0xf] %v2568_v32  ;;  %2587 = vst [vmem:[#allocation2 + $0x580] sm:$0xf] %v2569_v6  ;;  %2309 = vrot.lane.b32.xlu1 %v5837_v53, %s4309_s27  ;;  %2246 = vrot.lane.b32.xlu0 %v5797_v15, %s4308_s26  ;;  %s4155_s27 = smul.u32 72, %s6249_s13 }
 0x380   : > { %v5900_v51 = vpop.permute.xlu1 %2618  ;;  %v2617_v38 = vpop.permute.xlu0 %2616 }
 0x381   : > { %v2631_v43 = vsel %vm6198_vm6, %v2615_v37, %v2617_v38  ;;  %v2632_v55 = vsel %vm6198_vm6, %v2617_v38, %v5900_v51  ;;  %v3390_v62 = vld [vmem:[#allocation2 + $0x538] sm:$0xff]  ;;  %vm6202_vm6 = vcmask 531456  }
 0x382   : > { %2649 = vst [vmem:[#allocation2 + $0x578] sm:$0xf0] %v2631_v43  ;;  %2650 = vst [vmem:[#allocation2 + $0x580] sm:$0xf0] %v2632_v55  ;;  %2431 = vrot.lane.b32.xlu1 %v5894_v28, %s4311_s29  ;;  %2372 = vrot.lane.b32.xlu0 %v5797_v15, %s4310_s28 }
 0x383   : > { %vm6203_vm5 = vmmov %vm6202_vm6 }
 0x384   : > { %v2678_v2 = vpop.permute.xlu1 %2677  ;;  %v2676_v58 = vpop.permute.xlu0 %2675 }
 0x385   : > { %v2692_v54 = vsel %vm2689_vm7, %v5602_v49, %v2676_v58  ;;  %v2693_v10 = vsel %vm2689_vm7, %v2676_v58, %v2678_v2  ;;  %v3389_v49 = vld [vmem:[#allocation2 + $0x530] sm:$0xff] }
 0x386   : > { %2710 = vst [vmem:[#allocation2 + $0x5b0] sm:$0xf] %v2692_v54  ;;  %2711 = vst [vmem:[#allocation2 + $0x5b8] sm:$0xf] %v2693_v10  ;;  %2494 = vrot.lane.b32.xlu1 %v5561_v39, %s4312_s30  ;;  %2433 = vrot.lane.b32.xlu0 %v5797_v15, %s4311_s29 }
 0x388   : > { %v2741_v30 = vpop.permute.xlu1 %2740  ;;  %v2739_v63 = vpop.permute.xlu0 %2738 }
 0x389   : > { %v2755_v16 = vsel %vm6202_vm6, %v5610_v33, %v2739_v63  ;;  %v2756_v0 = vsel %vm6203_vm5, %v2739_v63, %v2741_v30  ;;  %v3399_v57 = vld [vmem:[#allocation2 + $0x580] sm:$0xff]  ;;  %v3398_v59 = vld [vmem:[#allocation2 + $0x578] sm:$0xff]  ;;  %vm6204_vm6 = vcmask 277504  }
 0x38a   : > { %2773 = vst [vmem:[#allocation2 + $0x5b0] sm:$0xf0] %v2755_v16  ;;  %2774 = vst [vmem:[#allocation2 + $0x5b8] sm:$0xf0] %v2756_v0  ;;  %2557 = vrot.lane.b32.xlu1 %v5894_v28, %s4313_s4  ;;  %2496 = vrot.lane.b32.xlu0 %v5810_v50, %s4312_s30  ;;  %v4058_v1 = vpack.c.bf16 %v3399_v57, %v3390_v62  ;;  %v4060_v48 = vpack.c.bf16 %v3398_v59, %v3389_v49  ;;  %v5977_v63 = vld [vmem:[%s4361_s17 + $0x1c] sm:$0xff] }
 0x38b   : > { %vm6205_vm5 = vmmov %vm6204_vm6 }
 0x38c   : > { %v2804_v25 = vpop.permute.xlu1 %2803  ;;  %v2802_v60 = vpop.permute.xlu0 %2801  ;;  %4059 = vmatprep.subr.bf16.mxu0 %v4058_v1 }
 0x38d   : > { %v2818_v33 = vsel %vm6204_vm6, %v5622_v17, %v2802_v60  ;;  %v2819_v41 = vsel %vm6205_vm5, %v2802_v60, %v2804_v25  ;;  %4061 = vmatpush1.bf16.msra.mxu0 %v4060_v48  ;;  %vm6210_vm6 = vmmov %vm6205_vm5 }
 0x38e   : > { %2836 = vst [vmem:[#allocation2 + $0x5f8] sm:$0xf] %v2818_v33  ;;  %2837 = vst [vmem:[#allocation2 + $0x600] sm:$0xf] %v2819_v41  ;;  %2620 = vrot.lane.b32.xlu1 %v5561_v39, %s4314_s5  ;;  %2559 = vrot.lane.b32.xlu0 %v5797_v15, %s4313_s4 }
 0x390   : > { %v2867_v37 = vpop.permute.xlu1 %2866  ;;  %v2865_v21 = vpop.permute.xlu0 %2864 }
 0x391   : > { %v2881_v22 = vsel %vm6206_vm4, %v5630_v18, %v2865_v21  ;;  %v2882_v23 = vsel %vm6207_vm3, %v2865_v21, %v2867_v37  ;;  %v3406_v45 = vld [vmem:[#allocation2 + $0x5b8] sm:$0xff]  ;;  %vm6208_vm3 = vcmask 531456   ;;  %v3405_v7 = vld [vmem:[#allocation2 + $0x5b0] sm:$0xff] }
 0x392   : > { %2899 = vst [vmem:[#allocation2 + $0x5f8] sm:$0xf0] %v2881_v22  ;;  %2900 = vst [vmem:[#allocation2 + $0x600] sm:$0xf0] %v2882_v23  ;;  %2435 = vrot.lane.b32.xlu1 %v5837_v53, %s4311_s29  ;;  %2622 = vrot.lane.b32.xlu0 %v5810_v50, %s4314_s5 }
 0x393   : > { %vm6209_vm4 = vmmov %vm6208_vm3 }
 0x394   : > { %v5937_v17 = vpop.permute.xlu1 %2681  ;;  %v2680_v26 = vpop.permute.xlu0 %2679 }
 0x395   : > { %v2694_v46 = vsel %vm2689_vm7, %v2678_v2, %v2680_v26  ;;  %v2695_v12 = vsel %vm2689_vm7, %v2680_v26, %v5937_v17 }
 0x396   : > { %2712 = vst [vmem:[#allocation2 + $0x5c0] sm:$0xf] %v2694_v46  ;;  %2713 = vst [vmem:[#allocation2 + $0x5c8] sm:$0xf] %v2695_v12  ;;  %2561 = vrot.lane.b32.xlu1 %v5837_v53, %s4313_s4  ;;  %2498 = vrot.lane.b32.xlu0 %v5797_v15, %s4312_s30  ;;  %s170_s30 = scalar_lea.vmem %s6192_s3, %s4155_s27 }
 0x398   : > { %v5946_v18 = vpop.permute.xlu1 %2744  ;;  %v2743_v8 = vpop.permute.xlu0 %2742 }
 0x399   : > { %v2757_v9 = vsel %vm6208_vm3, %v2741_v30, %v2743_v8  ;;  %v2758_v27 = vsel %vm6209_vm4, %v2743_v8, %v5946_v18  ;;  %v3415_v29 = vld [vmem:[#allocation2 + $0x600] sm:$0xff]  ;;  %v3414_v34 = vld [vmem:[#allocation2 + $0x5f8] sm:$0xff]  ;;  %vm6211_vm3 = vcmask 269312  }
 0x39a   : > { %2775 = vst [vmem:[#allocation2 + $0x5c0] sm:$0xf0] %v2757_v9  ;;  %2776 = vst [vmem:[#allocation2 + $0x5c8] sm:$0xf0] %v2758_v27  ;;  %2683 = vrot.lane.b32.xlu1 %v5894_v28, %s4315_s6  ;;  %2624 = vrot.lane.b32.xlu0 %v5797_v15, %s4314_s5  ;;  %v4014_v40 = vpack.c.bf16 %v3415_v29, %v3406_v45  ;;  %v4016_v35 = vpack.c.bf16 %v3414_v34, %v3405_v7 }
 0x39b   : > { %vm6212_vm4 = vmmov %vm6211_vm3 }
 0x39c   : > { %v5955_v5 = vpop.permute.xlu1 %2807  ;;  %v2806_v32 = vpop.permute.xlu0 %2805  ;;  %4015 = vmatprep.subr.bf16.mxu1 %v4014_v40 }
 0x39d   : > { %v2820_v6 = vsel %vm6210_vm6, %v2804_v25, %v2806_v32  ;;  %v2821_v38 = vsel %vm6205_vm5, %v2806_v32, %v5955_v5  ;;  %4017 = vmatpush1.bf16.msra.mxu1 %v4016_v35  ;;  %vm6213_vm6 = vcmask 244736  }
 0x39e   : > { %2838 = vst [vmem:[#allocation2 + $0x608] sm:$0xf] %v2820_v6  ;;  %2839 = vst [vmem:[#allocation2 + $0x610] sm:$0xf] %v2821_v38  ;;  %2746 = vrot.lane.b32.xlu1 %v5561_v39, %s4316_s7  ;;  %2685 = vrot.lane.b32.xlu0 %v5797_v15, %s4315_s6 }
 0x39f   : > { %vm6214_vm5 = vmmov %vm6213_vm6 }
 0x3a0   : > { %v5964_v43 = vpop.permute.xlu1 %2870  ;;  %v2869_v55 = vpop.permute.xlu0 %2868 }
 0x3a1   : > { %v2883_v2 = vsel %vm6211_vm3, %v2867_v37, %v2869_v55  ;;  %v2884_v58 = vsel %vm6212_vm4, %v2869_v55, %v5964_v43  ;;  %v3408_v0 = vld [vmem:[#allocation2 + $0x5c8] sm:$0xff]  ;;  %v3407_v59 = vld [vmem:[#allocation2 + $0x5c0] sm:$0xff]  ;;  %vm6215_vm3 = vmmov %vm6214_vm5 }
 0x3a2   : > { %2901 = vst [vmem:[#allocation2 + $0x608] sm:$0xf0] %v2883_v2  ;;  %2902 = vst [vmem:[#allocation2 + $0x610] sm:$0xf0] %v2884_v58  ;;  %2809 = vrot.lane.b32.xlu1 %v5894_v28, %s4317_s8  ;;  %2748 = vrot.lane.b32.xlu0 %v5810_v50, %s4316_s7  ;;  %v4324_v2 = vmov 0  }
 0x3a3   : > { %vm6216_vm4 = vmmov %vm6215_vm3  ;;  %4215 = vset.pattern.permute.xlu0 %v4324_v2 }
 0x3a4   : > { %v2930_v39 = vpop.permute.xlu1 %2929  ;;  %v2928_v54 = vpop.permute.xlu0 %2927 }
 0x3a5   : > { %v2944_v10 = vsel %vm2941_vm11, %v5650_v13, %v2928_v54  ;;  %v2945_v30 = vsel %vm2941_vm11, %v2928_v54, %v2930_v39 }
 0x3a6   : > { %2962 = vst [vmem:[#allocation2 + $0x640] sm:$0xf] %v2944_v10  ;;  %2963 = vst [vmem:[#allocation2 + $0x648] sm:$0xf] %v2945_v30  ;;  %2872 = vrot.lane.b32.xlu1 %v5977_v63, %s4318_s9  ;;  %2811 = vrot.lane.b32.xlu0 %v5797_v15, %s4317_s8 }
 0x3a8   : > { %v2993_v62 = vpop.permute.xlu1 %2992  ;;  %v2991_v16 = vpop.permute.xlu0 %2990 }
 0x3a9   : > { %v3007_v57 = vsel %vm3004_vm10, %v5658_v56, %v2991_v16  ;;  %v3008_v13 = vsel %vm3004_vm10, %v2991_v16, %v2993_v62  ;;  %v3417_v49 = vld [vmem:[#allocation2 + $0x610] sm:$0xff]  ;;  %v3416_v1 = vld [vmem:[#allocation2 + $0x608] sm:$0xff] }
 0x3aa   : > { %3025 = vst [vmem:[#allocation2 + $0x640] sm:$0xf0] %v3007_v57  ;;  %3026 = vst [vmem:[#allocation2 + $0x648] sm:$0xf0] %v3008_v13  ;;  %2687 = vrot.lane.b32.xlu1 %v5837_v53, %s4315_s6  ;;  %2874 = vrot.lane.b32.xlu0 %v5810_v50, %s4318_s9  ;;  %v4062_v48 = vpack.c.bf16 %v3417_v49, %v3408_v0  ;;  %v4064_v25 = vpack.c.bf16 %v3416_v1, %v3407_v59 }
 0x3ac   : > { %v3056_v60 = vpop.permute.xlu1 %3055  ;;  %v3054_v33 = vpop.permute.xlu0 %3053  ;;  %4063 = vmatprep.subr.bf16.mxu0 %v4062_v48 }
 0x3ad   : > { %v3070_v56 = vsel %vm6213_vm6, %v5669_v20, %v3054_v33  ;;  %v3071_v41 = vsel %vm6214_vm5, %v3054_v33, %v3056_v60  ;;  %4065 = vmatpush1.bf16.msra.mxu0 %v4064_v25  ;;  %vm6217_vm6 = vcmask 228352  }
 0x3ae   : > { %3088 = vst [vmem:[#allocation2 + $0x688] sm:$0xf] %v3070_v56  ;;  %3089 = vst [vmem:[#allocation2 + $0x690] sm:$0xf] %v3071_v41  ;;  %2813 = vrot.lane.b32.xlu1 %v5837_v53, %s4317_s8  ;;  %2750 = vrot.lane.b32.xlu0 %v5797_v15, %s4316_s7  ;;  %v3239_v56 = vld [vmem:[#allocation2 + $0x80] sm:$0xff] }
 0x3af   : > { %vm6218_vm5 = vmmov %vm6217_vm6 }
 0x3b0   : > { %v3119_v37 = vpop.permute.xlu1 %3118  ;;  %v3117_v21 = vpop.permute.xlu0 %3116 }
 0x3b1   : > { %v3133_v22 = vsel %vm3130_vm8, %v5677_v42, %v3117_v21  ;;  %v3134_v23 = vsel %vm3130_vm8, %v3117_v21, %v3119_v37  ;;  %v3424_v45 = vld [vmem:[#allocation2 + $0x648] sm:$0xff]  ;;  %v3423_v7 = vld [vmem:[#allocation2 + $0x640] sm:$0xff] }
 0x3b2   : > { %3151 = vst [vmem:[#allocation2 + $0x688] sm:$0xf0] %v3133_v22  ;;  %3152 = vst [vmem:[#allocation2 + $0x690] sm:$0xf0] %v3134_v23  ;;  %2935 = vrot.lane.b32.xlu1 %v5894_v28, %s4319_s10  ;;  %2876 = vrot.lane.b32.xlu0 %v5797_v15, %s4318_s9  ;;  %v3230_v23 = vld [vmem:[#allocation2 + $0x38] sm:$0xff] }
 0x3b4   : > { %v6004_v20 = vpop.permute.xlu1 %2933  ;;  %v2932_v26 = vpop.permute.xlu0 %2931 }
 0x3b5   : > { %v2946_v46 = vsel %vm2941_vm11, %v2930_v39, %v2932_v26  ;;  %v2947_v12 = vsel %vm2941_vm11, %v2932_v26, %v6004_v20  ;;  %v3257_v26 = vld [vmem:[#allocation2 + $0x110] sm:$0xff] }
 0x3b6   : > { %2964 = vst [vmem:[#allocation2 + $0x650] sm:$0xf] %v2946_v46  ;;  %2965 = vst [vmem:[#allocation2 + $0x658] sm:$0xf] %v2947_v12  ;;  %2998 = vrot.lane.b32.xlu1 %v5977_v63, %s4320_s11  ;;  %2937 = vrot.lane.b32.xlu0 %v5797_v15, %s4319_s10  ;;  %v3229_v46 = vld [vmem:[#allocation2 + $0x30] sm:$0xff] }
 0x3b8   : > { %v6013_v42 = vpop.permute.xlu1 %2996  ;;  %v2995_v8 = vpop.permute.xlu0 %2994 }
 0x3b9   : > { %v3009_v9 = vsel %vm3004_vm10, %v2993_v62, %v2995_v8  ;;  %v3010_v27 = vsel %vm3004_vm10, %v2995_v8, %v6013_v42  ;;  %v3433_v29 = vld [vmem:[#allocation2 + $0x690] sm:$0xff]  ;;  %v3432_v34 = vld [vmem:[#allocation2 + $0x688] sm:$0xff] }
 0x3ba   : > { %3027 = vst [vmem:[#allocation2 + $0x650] sm:$0xf0] %v3009_v9  ;;  %3028 = vst [vmem:[#allocation2 + $0x658] sm:$0xf0] %v3010_v27  ;;  %3061 = vrot.lane.b32.xlu1 %v5894_v28, %s4321_s14  ;;  %3000 = vrot.lane.b32.xlu0 %v5810_v50, %s4320_s11  ;;  %v4018_v40 = vpack.c.bf16 %v3433_v29, %v3424_v45  ;;  %v4020_v35 = vpack.c.bf16 %v3432_v34, %v3423_v7  ;;  %v3248_v9 = vld [vmem:[#allocation2 + $0xc8] sm:$0xff] }
 0x3bb   : > { %v3240_v27 = vld [vmem:[#allocation2 + $0x88] sm:$0xff]  ;;  %v4074_v7 = vpack.c.bf16 %v3257_v26, %v3248_v9 }
 0x3bc   : > { %v6022_v32 = vpop.permute.xlu1 %3059  ;;  %v3058_v6 = vpop.permute.xlu0 %3057  ;;  %4019 = vmatprep.subr.bf16.mxu1 %v4018_v40  ;;  %v3256_v40 = vld [vmem:[#allocation2 + $0x108] sm:$0xff] }
 0x3bd   : > { %v3072_v38 = vsel %vm6215_vm3, %v3056_v60, %v3058_v6  ;;  %v3073_v55 = vsel %vm6216_vm4, %v3058_v6, %v6022_v32  ;;  %4021 = vmatpush1.bf16.msra.mxu1 %v4020_v35  ;;  %vm6219_vm3 = vmmov %vm6218_vm5  ;;  %v3231_v35 = vld [vmem:[#allocation2 + $0x40] sm:$0xff] }
 0x3be   : > { %3090 = vst [vmem:[#allocation2 + $0x698] sm:$0xf] %v3072_v38  ;;  %3091 = vst [vmem:[#allocation2 + $0x6a0] sm:$0xf] %v3073_v55  ;;  %3124 = vrot.lane.b32.xlu1 %v5977_v63, %s4322_s15  ;;  %3063 = vrot.lane.b32.xlu0 %v5797_v15, %s4321_s14  ;;  %v3275_v6 = vld [vmem:[#allocation2 + $0x1a0] sm:$0xff]  ;;  %v4119_v55 = vpack.c.bf16 %v3240_v27, %v3231_v35 }
 0x3bf   : > { %vm6220_vm4 = vmmov %vm6219_vm3  ;;  %v3247_v38 = vld [vmem:[#allocation2 + $0xc0] sm:$0xff] }
 0x3c0   : > { %v6031_v58 = vpop.permute.xlu1 %3122  ;;  %v3121_v39 = vpop.permute.xlu0 %3120 }
 0x3c1   : > { %v3135_v54 = vsel %vm3130_vm8, %v3119_v37, %v3121_v39  ;;  %v3136_v10 = vsel %vm3130_vm8, %v3121_v39, %v6031_v58  ;;  %v3426_v13 = vld [vmem:[#allocation2 + $0x658] sm:$0xff]  ;;  %v3425_v59 = vld [vmem:[#allocation2 + $0x650] sm:$0xff] }
 0x3c2   : > { %3153 = vst [vmem:[#allocation2 + $0x698] sm:$0xf0] %v3135_v54  ;;  %3154 = vst [vmem:[#allocation2 + $0x6a0] sm:$0xf0] %v3136_v10  ;;  %2939 = vrot.lane.b32.xlu1 %v5837_v53, %s4319_s10  ;;  %3126 = vrot.lane.b32.xlu0 %v5810_v50, %s4322_s15  ;;  %v4325_v54 = vmov 0.0|0.0   ;;  %v4076_v10 = vpack.c.bf16 %v3256_v40, %v3247_v38 }
 0x3c4   : > { %v3182_v30 = vpop.permute.xlu1 %3181  ;;  %v3180_v63 = vpop.permute.xlu0 %3179 }
 0x3c5   : > { %v3196_v62 = vsel %vm6217_vm6, %v5697_v47, %v3180_v63  ;;  %v3197_v16 = vsel %vm6218_vm5, %v3180_v63, %v3182_v30  ;;  %v3258_v63 = vld [vmem:[#allocation2 + $0x118] sm:$0xff]  ;;  %vm6228_vm5 = vcmask 547840  }
 0x3c6   : > { %3214 = vst [vmem:[#allocation2 + $0x6d0] sm:$0xf] %v3196_v62  ;;  %3215 = vst [vmem:[#allocation2 + $0x6d8] sm:$0xf] %v3197_v16  ;;  %3065 = vrot.lane.b32.xlu1 %v5837_v53, %s4321_s14  ;;  %3002 = vrot.lane.b32.xlu0 %v5797_v15, %s4320_s11 }
 0x3c8   : > { %v6047_v0 = vpop.permute.xlu1 %3185  ;;  %v3184_v57 = vpop.permute.xlu0 %3183 }
 0x3c9   : > { %v3198_v50 = vsel %vm6219_vm3, %v3182_v30, %v3184_v57  ;;  %v3199_v49 = vsel %vm6220_vm4, %v3184_v57, %v6047_v0  ;;  %v3435_v47 = vld [vmem:[#allocation2 + $0x6a0] sm:$0xff]  ;;  %v3434_v1 = vld [vmem:[#allocation2 + $0x698] sm:$0xff]  ;;  %vm6230_vm4 = vmmov %vm6228_vm5 }
 0x3ca   : > { %3216 = vst [vmem:[#allocation2 + $0x6e0] sm:$0xf] %v3198_v50  ;;  %3217 = vst [vmem:[#allocation2 + $0x6e8] sm:$0xf] %v3199_v49  ;;  %3187 = vrot.lane.b32.xlu1 %v5894_v28, %s4323_s16  ;;  %3128 = vrot.lane.b32.xlu0 %v5797_v15, %s4322_s15  ;;  %v4066_v48 = vpack.c.bf16 %v3435_v47, %v3426_v13  ;;  %v4068_v25 = vpack.c.bf16 %v3434_v1, %v3425_v59  ;;  %v3238_v28 = vld [vmem:[#allocation2 + $0x78] sm:$0xff]  ;;  %v3249_v50 = vld [vmem:[#allocation2 + $0xd0] sm:$0xff] }
 0x3cb   : > { %v4072_v45 = vpack.c.bf16 %v3238_v28, %v3229_v46  ;;  %v3266_v30 = vld [vmem:[#allocation2 + $0x158] sm:$0xff]  ;;  %v3293_v49 = vld [vmem:[#allocation2 + $0x230] sm:$0xff]  ;;  %v4122_v47 = vpack.c.bf16 %v3258_v63, %v3249_v50  ;;  %v3311_v28 = vld [vmem:[#allocation2 + $0x2c0] sm:$0xff] }
 0x3cc   : > { %v6056_v60 = vpop.permute.xlu1 %1992  ;;  %v1991_v33 = vpop.permute.xlu0 %1990  ;;  %4067 = vmatprep.subr.bf16.mxu0 %v4066_v48  ;;  %v4078_v57 = vpack.c.bf16 %v3275_v6, %v3266_v30  ;;  %v3274_v13 = vld [vmem:[#allocation2 + $0x198] sm:$0xff]  ;;  %v3347_v30 = vld [vmem:[#allocation2 + $0x3e0] sm:$0xff] }
 0x3cd   : > { %v2003_v41 = vsel %vm1996_vm12, %v5740_v52, %v1991_v33  ;;  %v2004_v37 = vsel %vm1996_vm12, %v1991_v33, %v6056_v60  ;;  %4069 = vmatpush1.bf16.msra.mxu0 %v4068_v25  ;;  %v3442_v21 = vld [vmem:[#allocation2 + $0x6d8] sm:$0xf]  ;;  %v3441_v22 = vld [vmem:[#allocation2 + $0x6d0] sm:$0xf]  ;;  %v4070_v52 = vpack.c.bf16 %v3239_v56, %v3230_v23  ;;  %v3284_v25 = vld [vmem:[#allocation2 + $0x1e8] sm:$0xff] }
 0x3ce   : > { %2021 = vst [vmem:[#allocation2 + $0x420] sm:$0xf0] %v2003_v41  ;;  %2022 = vst [vmem:[#allocation2 + $0x428] sm:$0xf0] %v2004_v37  ;;  %3191 = vrot.lane.b32.xlu1 %v5837_v53, %s4323_s16  ;;  %3189 = vrot.lane.b32.xlu0 %v5797_v15, %s4323_s16  ;;  %v3276_v33 = vld [vmem:[#allocation2 + $0x1a8] sm:$0xff]  ;;  %v4082_v37 = vpack.c.bf16 %v3293_v49, %v3284_v25  ;;  %v3283_v23 = vld [vmem:[#allocation2 + $0x1e0] sm:$0xff] }
 0x3cf   : > { %3913 = vmatprep.subr.msk.mxu1 %vm3457_vm9, %v3442_v21  ;;  %v3292_v21 = vld [vmem:[#allocation2 + $0x228] sm:$0xff]  ;;  %v3319_v63 = vld [vmem:[#allocation2 + $0x300] sm:$0xff]  ;;  %v3338_v50 = vld [vmem:[#allocation2 + $0x398] sm:$0xff] }
 0x3d0   : > { %3914 = vmatpush1.msk.msra.mxu1 %vm3457_vm9, %v3441_v22  ;;  %v2056_v12 = vpop.permute.xlu1 %2055  ;;  %v2054_v8 = vpop.permute.xlu0 %2053  ;;  %v3267_v22 = vld [vmem:[#allocation2 + $0x160] sm:$0xff] }
 0x3d1   : > { %v2066_v29 = vsel %vm2059_vm13, %v5749_v19, %v2054_v8  ;;  %v2067_v53 = vsel %vm2059_vm13, %v2054_v8, %v2056_v12  ;;  %4071 = vmatprep.subr.bf16.mxu1 %v4070_v52  ;;  %3621 = vmatmul.mubr.f32.vlgmr.msra.gmra.mrb[0].mxu1 %v5723_v44  ;;  %v3444_v15 = vld [vmem:[#allocation2 + $0x6e8] sm:$0xf]  ;;  %v3443_v34 = vld [vmem:[#allocation2 + $0x6e0] sm:$0xf]  ;;  %v4125_v26 = vpack.c.bf16 %v3276_v33, %v3267_v22 }
 0x3d2   : > { %2084 = vst [vmem:[#allocation2 + $0x468] sm:$0xf] %v2066_v29  ;;  %2085 = vst [vmem:[#allocation2 + $0x470] sm:$0xf] %v2067_v53  ;;  %4073 = vmatpush1.bf16.msra.mxu1 %v4072_v45  ;;  %3916 = vmatprep.subr.msk.mxu0 %vm3457_vm9, %v3444_v15  ;;  %v3448_v19 = vld [vmem:[%s6191_s2] sm:$0xff]  ;;  %v4084_v8 = vpack.c.bf16 %v3292_v21, %v3283_v23  ;;  %v3294_v45 = vld [vmem:[#allocation2 + $0x238] sm:$0xff] }
 0x3d3   : > { %4075 = vmatprep.subr.bf16.mxu1 %v4074_v7  ;;  %3917 = vmatpush1.msk.msra.mxu0 %vm3457_vm9, %v3443_v34  ;;  %v3310_v29 = vld [vmem:[#allocation2 + $0x2b8] sm:$0xff]  ;;  %v3285_v53 = vld [vmem:[#allocation2 + $0x1f0] sm:$0xff] }
 0x3d4   : > { %v2119_v2 = vpop.permute.xlu1 %2118  ;;  %v2117_v39 = vpop.permute.xlu0 %2116  ;;  %4118 = vmatprep.subr.bf16.mxu0 %v4325_v54  ;;  %3692 = vmatmul.mubr.f32.vlgmr.msra.gmra.mrb[2].mxu0 %v5723_v44  ;;  %v3265_v44 = vld [vmem:[#allocation2 + $0x150] sm:$0xff]  ;;  %v4128_v34 = vpack.c.bf16 %v3294_v45, %v3285_v53 }
 0x3d5   : > { %v2129_v62 = vsel %vm2122_vm15, %v5758_v31, %v2117_v39  ;;  %v2130_v16 = vsel %vm2122_vm15, %v2117_v39, %v2119_v2  ;;  %4120 = vmatpush1.bf16.msra.mxu0 %v4119_v55  ;;  %3451 = vperm.xlu0 %4215, %v3448_v19   ;;  %v4266_v31 = vld [vmem:[%s6190_s1 + $0x8] sm:$0xff]  ;;  %v4080_v48 = vpack.c.bf16 %v3274_v13, %v3265_v44  ;;  %v3329_v15 = vld [vmem:[#allocation2 + $0x350] sm:$0xff] }
 0x3d6   : > { %2147 = vst [vmem:[#allocation2 + $0x468] sm:$0xf0] %v2129_v62  ;;  %2148 = vst [vmem:[#allocation2 + $0x470] sm:$0xf0] %v2130_v16  ;;  %4077 = vmatpush1.bf16.msra.mxu1 %v4076_v10  ;;  %4121 = vmatprep.subr.bf16.mxu0 %v4325_v54  ;;  %v3301_v7 = vld [vmem:[#allocation2 + $0x270] sm:$0xff]  ;;  %v3320_v19 = vld [vmem:[#allocation2 + $0x308] sm:$0xff] }
 0x3d7   : > { %4079 = vmatprep.subr.bf16.mxu1 %v4078_v57  ;;  %3921 = vmatprep.mubr.msk.f32.mxu1 %vm2563_vm14, %v4266_v31  ;;  %v4088_v6 = vpack.c.bf16 %v3310_v29, %v3301_v7  ;;  %v3328_v39 = vld [vmem:[#allocation2 + $0x348] sm:$0xff]  ;;  %v3303_v10 = vld [vmem:[#allocation2 + $0x280] sm:$0xff] }
 0x3d8   : > { %v2058_v59 = vpop.permute.xlu1 %2057  ;;  %v1995_v1 = vpop.permute.xlu0 %1994  ;;  %3923 = vmatprep.mubr.msk.f32.mxu0 %vm2563_vm14, %v4266_v31  ;;  %v4092_v13 = vpack.c.bf16 %v3328_v39, %v3319_v63  ;;  %v3346_v31 = vld [vmem:[#allocation2 + $0x3d8] sm:$0xff] }
 0x3d9   : > { %v2068_v56 = vsel %vm2059_vm13, %v2056_v12, %v2058_v59  ;;  %v2005_v41 = vsel %vm1996_vm12, %v6056_v60, %v1995_v1  ;;  %4123 = vmatpush1.bf16.msra.mxu0 %v4122_v47  ;;  %v3302_v12 = vld [vmem:[#allocation2 + $0x278] sm:$0xff]  ;;  %v4094_v47 = vpack.c.bf16 %v3347_v30, %v3338_v50  ;;  %v3321_v59 = vld [vmem:[#allocation2 + $0x310] sm:$0xff]  ;;  %vm6221_vm12 = vcmask 580608  }
 0x3da   : > { %2086 = vst [vmem:[#allocation2 + $0x478] sm:$0xf] %v2068_v56  ;;  %2023 = vst [vmem:[#allocation2 + $0x430] sm:$0xf0] %v2005_v41  ;;  %4081 = vmatpush1.bf16.msra.mxu1 %v4080_v48  ;;  %4124 = vmatprep.subr.bf16.mxu0 %v4325_v54  ;;  %v4086_v27 = vpack.c.bf16 %v3311_v28, %v3302_v12  ;;  %v3337_v48 = vld [vmem:[#allocation2 + $0x390] sm:$0xff] }
 0x3db   : > { %4083 = vmatprep.subr.bf16.mxu1 %v4082_v37  ;;  %v4096_v41 = vpack.c.bf16 %v3346_v31, %v3337_v48  ;;  %v3356_v37 = vld [vmem:[#allocation2 + $0x428] sm:$0xff]  ;;  %vm6222_vm13 = vmmov %vm6221_vm12 }
 0x3dc   : > { %v2180_v52 = vpop.permute.xlu1 %2179  ;;  %v2121_v46 = vpop.permute.xlu0 %2120 }
 0x3dd   : > { %v2192_v60 = vsel %vm2185_vm0, %v5799_v11, %v2180_v52  ;;  %v2131_v9 = vsel %vm2122_vm15, %v2119_v2, %v2121_v46  ;;  %4126 = vmatpush1.bf16.msra.mxu0 %v4125_v26  ;;  %v3312_v11 = vld [vmem:[#allocation2 + $0x2c8] sm:$0xff]  ;;  %v4090_v2 = vpack.c.bf16 %v3329_v15, %v3320_v19  ;;  %v3365_v1 = vld [vmem:[#allocation2 + $0x470] sm:$0xff]  ;;  %v3339_v26 = vld [vmem:[#allocation2 + $0x3a0] sm:$0xff]  ;;  %vm6223_vm15 = vcmask 572416  }
 0x3de   : > { %2210 = vst [vmem:[#allocation2 + $0x4b0] sm:$0xf] %v2192_v60  ;;  %2149 = vst [vmem:[#allocation2 + $0x478] sm:$0xf0] %v2131_v9  ;;  %4085 = vmatpush1.bf16.msra.mxu1 %v4084_v8  ;;  %4127 = vmatprep.subr.bf16.mxu0 %v4325_v54  ;;  %v4131_v62 = vpack.c.bf16 %v3312_v11, %v3303_v10  ;;  %v4098_v28 = vpack.c.bf16 %v3365_v1, %v3356_v37  ;;  %v3364_v23 = vld [vmem:[#allocation2 + $0x468] sm:$0xff] }
 0x3df   : > { %4087 = vmatprep.subr.bf16.mxu1 %v4086_v27 }
 0x3e0   : > { %v2243_v40 = vpop.permute.xlu1 %2242  ;;  %v2182_v35 = vpop.permute.xlu0 %2181 }
 0x3e1   : > { %v2255_v38 = vsel %vm2248_vm1, %v5812_v24, %v2243_v40  ;;  %v2193_v55 = vsel %vm2185_vm0, %v2180_v52, %v2182_v35  ;;  %4129 = vmatpush1.bf16.msra.mxu0 %v4128_v34  ;;  %v3330_v24 = vld [vmem:[#allocation2 + $0x358] sm:$0xff]  ;;  %v3355_v52 = vld [vmem:[#allocation2 + $0x420] sm:$0xff]  ;;  %v3357_v27 = vld [vmem:[#allocation2 + $0x430] sm:$0xff] }
 0x3e2   : > { %2273 = vst [vmem:[#allocation2 + $0x4b0] sm:$0xf0] %v2255_v38  ;;  %2211 = vst [vmem:[#allocation2 + $0x4b8] sm:$0xf] %v2193_v55  ;;  %4089 = vmatpush1.bf16.msra.mxu1 %v4088_v6  ;;  %4130 = vmatprep.subr.bf16.mxu0 %v4325_v54  ;;  %v4134_v25 = vpack.c.bf16 %v3330_v24, %v3321_v59  ;;  %v4100_v45 = vpack.c.bf16 %v3364_v23, %v3355_v52 }
 0x3e3   : > { %4091 = vmatprep.subr.bf16.mxu1 %v4090_v2 }
 0x3e4   : > { %v2306_v16 = vpop.permute.xlu1 %2305  ;;  %v2245_v57 = vpop.permute.xlu0 %2244 }
 0x3e5   : > { %v2318_v49 = vsel %vm2311_vm2, %v5821_v4, %v2306_v16  ;;  %v2256_v44 = vsel %vm2248_vm1, %v2243_v40, %v2245_v57  ;;  %4132 = vmatpush1.bf16.msra.mxu0 %v4131_v62  ;;  %v3348_v4 = vld [vmem:[#allocation2 + $0x3e8] sm:$0xff]  ;;  %v3366_v60 = vld [vmem:[#allocation2 + $0x478] sm:$0xff] }
 0x3e6   : > { %2336 = vst [vmem:[#allocation2 + $0x4f8] sm:$0xf] %v2318_v49  ;;  %2274 = vst [vmem:[#allocation2 + $0x4b8] sm:$0xf0] %v2256_v44  ;;  %4093 = vmatpush1.bf16.msra.mxu1 %v4092_v13  ;;  %4133 = vmatprep.subr.bf16.mxu0 %v4325_v54  ;;  %v4137_v46 = vpack.c.bf16 %v3348_v4, %v3339_v26  ;;  %v4140_v29 = vpack.c.bf16 %v3366_v60, %v3357_v27 }
 0x3e7   : > { %4095 = vmatprep.subr.bf16.mxu1 %v4094_v47 }
 0x3e8   : > { %v2369_v33 = vpop.permute.xlu1 %2368  ;;  %v2308_v56 = vpop.permute.xlu0 %2307 }
 0x3e9   : > { %v2381_v21 = vsel %vm6221_vm12, %v5830_v3, %v2369_v33  ;;  %v2319_v22 = vsel %vm2311_vm2, %v2306_v16, %v2308_v56  ;;  %4135 = vmatpush1.bf16.msra.mxu0 %v4134_v25  ;;  %v3373_v39 = vld [vmem:[#allocation2 + $0x4b0] sm:$0xff] }
 0x3ea   : > { %2399 = vst [vmem:[#allocation2 + $0x4f8] sm:$0xf0] %v2381_v21  ;;  %2337 = vst [vmem:[#allocation2 + $0x500] sm:$0xf] %v2319_v22  ;;  %4097 = vmatpush1.bf16.msra.mxu1 %v4096_v41  ;;  %4136 = vmatprep.subr.bf16.mxu0 %v4325_v54 }
 0x3eb   : > { %4099 = vmatprep.subr.bf16.mxu1 %v4098_v28 }
 0x3ec   : > { %v2184_v8 = vpop.permute.xlu1 %2183  ;;  %v2371_v12 = vpop.permute.xlu0 %2370 }
 0x3ed   : > { %v2194_v3 = vsel %vm2185_vm0, %v2182_v35, %v2184_v8  ;;  %v2382_v9 = vsel %vm6222_vm13, %v2369_v33, %v2371_v12  ;;  %4138 = vmatpush1.bf16.msra.mxu0 %v4137_v46  ;;  %vm6224_vm0 = vmmov %vm6221_vm12  ;;  %v3374_v38 = vld [vmem:[#allocation2 + $0x4b8] sm:$0xff] }
 0x3ee   : > { %2212 = vst [vmem:[#allocation2 + $0x4c0] sm:$0xf] %v2194_v3  ;;  %2400 = vst [vmem:[#allocation2 + $0x500] sm:$0xf0] %v2382_v9  ;;  %4101 = vmatpush1.bf16.msra.mxu1 %v4100_v45  ;;  %4139 = vmatprep.subr.bf16.mxu0 %v4325_v54 }
 0x3ef   : > { %vm6232_vm13 = vmmov %vm6230_vm4 }
 0x3f0   : > { %v2310_v53 = vpop.permute.xlu1 %2309  ;;  %v2247_v15 = vpop.permute.xlu0 %2246 }
 0x3f1   : > { %v2320_v7 = vsel %vm2311_vm2, %v2308_v56, %v2310_v53  ;;  %v2257_v34 = vsel %vm2248_vm1, %v2245_v57, %v2247_v15  ;;  %4141 = vmatpush1.bf16.msra.mxu0 %v4140_v29  ;;  %v3382_v6 = vld [vmem:[#allocation2 + $0x4f8] sm:$0xff]  ;;  %vm6225_vm1 = vcmask 564224   ;;  %vm6226_vm2 = vmmov %vm6223_vm15 }
 0x3f2   : > { %2338 = vst [vmem:[#allocation2 + $0x508] sm:$0xf] %v2320_v7  ;;  %2275 = vst [vmem:[#allocation2 + $0x4c0] sm:$0xf0] %v2257_v34  ;;  %4142 = vmatprep.subr.bf16.mxu0 %v4325_v54  ;;  %v4104_v10 = vpack.c.bf16 %v3382_v6, %v3373_v39 }
 0x3f3   : > { %vm6227_vm6 = vmmov %vm6225_vm1 }
 0x3f4   : > { %v2432_v40 = vpop.permute.xlu1 %2431  ;;  %v2373_v35 = vpop.permute.xlu0 %2372  ;;  %vm6229_vm3 = vmmov %vm6226_vm2 }
 0x3f5   : > { %v2444_v19 = vsel %vm6223_vm15, %v5869_v61, %v2432_v40  ;;  %v2383_v11 = vsel %vm6224_vm0, %v2371_v12, %v2373_v35  ;;  %v3383_v55 = vld [vmem:[#allocation2 + $0x500] sm:$0xff]  ;;  %vm6231_vm12 = vmmov %vm6225_vm1  ;;  %vm6234_vm15 = vcmask 277504  }
 0x3f6   : > { %2462 = vst [vmem:[#allocation2 + $0x540] sm:$0xf] %v2444_v19  ;;  %2401 = vst [vmem:[#allocation2 + $0x508] sm:$0xf0] %v2383_v11  ;;  %v4102_v2 = vpack.c.bf16 %v3383_v55, %v3374_v38 }
 0x3f8   : > { %v2495_v30 = vpop.permute.xlu1 %2494  ;;  %v2434_v63 = vpop.permute.xlu0 %2433  ;;  %4103 = vmatprep.subr.bf16.mxu1 %v4102_v2 }
 0x3f9   : > { %v2507_v62 = vsel %vm6225_vm1, %v5878_v14, %v2495_v30  ;;  %v2445_v16 = vsel %vm6226_vm2, %v2432_v40, %v2434_v63  ;;  %4105 = vmatpush1.bf16.msra.mxu1 %v4104_v10  ;;  %v3375_v24 = vld [vmem:[#allocation2 + $0x4c0] sm:$0xff]  ;;  %vm6236_vm1 = vcmask 269312   ;;  %vm6237_vm2 = vmmov %vm6234_vm15 }
 0x3fa   : > { %2525 = vst [vmem:[#allocation2 + $0x540] sm:$0xf0] %v2507_v62  ;;  %2463 = vst [vmem:[#allocation2 + $0x548] sm:$0xf] %v2445_v16 }
 0x3fc   : > { %v2558_v61 = vpop.permute.xlu1 %2557  ;;  %v2497_v57 = vpop.permute.xlu0 %2496 }
 0x3fd   : > { %v2570_v13 = vsel %vm2563_vm14, %v5887_v36, %v2558_v61  ;;  %v2508_v50 = vsel %vm6227_vm6, %v2495_v30, %v2497_v57  ;;  %v3384_v49 = vld [vmem:[#allocation2 + $0x508] sm:$0xff]  ;;  %vm6238_vm6 = vmmov %vm6236_vm1 }
 0x3fe   : > { %2588 = vst [vmem:[#allocation2 + $0x588] sm:$0xf] %v2570_v13  ;;  %2526 = vst [vmem:[#allocation2 + $0x548] sm:$0xf0] %v2508_v50  ;;  %v4143_v44 = vpack.c.bf16 %v3384_v49, %v3375_v24 }
 0x400   : > { %v2621_v47 = vpop.permute.xlu1 %2620  ;;  %v2560_v31 = vpop.permute.xlu0 %2559  ;;  %4144 = vmatpush1.bf16.msra.mxu0 %v4143_v44 }
 0x401   : > { %v2633_v14 = vsel %vm6228_vm5, %v5900_v51, %v2621_v47  ;;  %v2571_v59 = vsel %vm2563_vm14, %v2558_v61, %v2560_v31  ;;  %4145 = vmatprep.subr.bf16.mxu0 %v4325_v54  ;;  %v3391_v12 = vld [vmem:[#allocation2 + $0x540] sm:$0xff]  ;;  %vm6239_vm5 = vmmov %vm6237_vm2 }
 0x402   : > { %2651 = vst [vmem:[#allocation2 + $0x588] sm:$0xf0] %v2633_v14  ;;  %2589 = vst [vmem:[#allocation2 + $0x590] sm:$0xf] %v2571_v59 }
 0x404   : > { %v2436_v36 = vpop.permute.xlu1 %2435  ;;  %v2623_v1 = vpop.permute.xlu0 %2622 }
 0x405   : > { %v2446_v48 = vsel %vm6229_vm3, %v2434_v63, %v2436_v36  ;;  %v2634_v25 = vsel %vm6230_vm4, %v2621_v47, %v2623_v1  ;;  %v3392_v52 = vld [vmem:[#allocation2 + $0x548] sm:$0xff]  ;;  %vm6241_vm4 = vmmov %vm6236_vm1 }
 0x406   : > { %2464 = vst [vmem:[#allocation2 + $0x550] sm:$0xf] %v2446_v48  ;;  %2652 = vst [vmem:[#allocation2 + $0x590] sm:$0xf0] %v2634_v25 }
 0x408   : > { %v2562_v33 = vpop.permute.xlu1 %2561  ;;  %v2499_v56 = vpop.permute.xlu0 %2498 }
 0x409   : > { %v2572_v41 = vsel %vm2563_vm14, %v2560_v31, %v2562_v33  ;;  %v2509_v51 = vsel %vm6231_vm12, %v2497_v57, %v2499_v56  ;;  %v6131_v37 = vpop.f32.mrb[0].mxu0  ;;  %v3400_v28 = vld [vmem:[#allocation2 + $0x588] sm:$0xff]  ;;  %vm6233_vm14 = vcmask 531456  }
 0x40a   : > { %2590 = vst [vmem:[#allocation2 + $0x598] sm:$0xf] %v2572_v41  ;;  %2527 = vst [vmem:[#allocation2 + $0x550] sm:$0xf0] %v2509_v51  ;;  %v6133_v4 = vpop.f32.mrb[1].mxu0  ;;  %v4108_v45 = vpack.c.bf16 %v3400_v28, %v3391_v12 }
 0x40b   : > { %vm6235_vm0 = vmmov %vm6233_vm14 }
 0x40c   : > { %v2684_v21 = vpop.permute.xlu1 %2683  ;;  %v2625_v22 = vpop.permute.xlu0 %2624  ;;  %vm6240_vm3 = vmmov %vm6235_vm0 }
 0x40d   : > { %v2696_v23 = vsel %vm2689_vm7, %v5937_v17, %v2684_v21  ;;  %v2635_v26 = vsel %vm6232_vm13, %v2623_v1, %v2625_v22  ;;  %v3401_v46 = vld [vmem:[#allocation2 + $0x590] sm:$0xff] }
 0x40e   : > { %2714 = vst [vmem:[#allocation2 + $0x5d0] sm:$0xf] %v2696_v23  ;;  %2653 = vst [vmem:[#allocation2 + $0x598] sm:$0xf0] %v2635_v26  ;;  %v4106_v8 = vpack.c.bf16 %v3401_v46, %v3392_v52 }
 0x410   : > { %v2747_v60 = vpop.permute.xlu1 %2746  ;;  %v2686_v3 = vpop.permute.xlu0 %2685  ;;  %4107 = vmatprep.subr.bf16.mxu1 %v4106_v8 }
 0x411   : > { %v2759_v9 = vsel %vm6233_vm14, %v5946_v18, %v2747_v60  ;;  %v2697_v27 = vsel %vm2689_vm7, %v2684_v21, %v2686_v3  ;;  %4109 = vmatpush1.bf16.msra.mxu1 %v4108_v45  ;;  %v3393_v7 = vld [vmem:[#allocation2 + $0x550] sm:$0xff]  ;;  %vm6245_vm14 = vcmask 228352  }
 0x412   : > { %2777 = vst [vmem:[#allocation2 + $0x5d0] sm:$0xf0] %v2759_v9  ;;  %2715 = vst [vmem:[#allocation2 + $0x5d8] sm:$0xf] %v2697_v27 }
 0x414   : > { %v2810_v17 = vpop.permute.xlu1 %2809  ;;  %v2749_v29 = vpop.permute.xlu0 %2748 }
 0x415   : > { %v2822_v53 = vsel %vm6234_vm15, %v5955_v5, %v2810_v17  ;;  %v2760_v15 = vsel %vm6235_vm0, %v2747_v60, %v2749_v29  ;;  %v3402_v34 = vld [vmem:[#allocation2 + $0x598] sm:$0xff] }
 0x416   : > { %2840 = vst [vmem:[#allocation2 + $0x618] sm:$0xf] %v2822_v53  ;;  %2778 = vst [vmem:[#allocation2 + $0x5d8] sm:$0xf0] %v2760_v15  ;;  %v4146_v40 = vpack.c.bf16 %v3402_v34, %v3393_v7 }
 0x418   : > { %v2873_v35 = vpop.permute.xlu1 %2872  ;;  %v2812_v6 = vpop.permute.xlu0 %2811  ;;  %4147 = vmatpush1.bf16.msra.mxu0 %v4146_v40 }
 0x419   : > { %v2885_v18 = vsel %vm6236_vm1, %v5964_v43, %v2873_v35  ;;  %v2823_v19 = vsel %vm6237_vm2, %v2810_v17, %v2812_v6  ;;  %4148 = vmatprep.subr.bf16.mxu0 %v4325_v54  ;;  %v3409_v24 = vld [vmem:[#allocation2 + $0x5d0] sm:$0xff] }
 0x41a   : > { %2903 = vst [vmem:[#allocation2 + $0x618] sm:$0xf0] %v2885_v18  ;;  %2841 = vst [vmem:[#allocation2 + $0x620] sm:$0xf] %v2823_v19 }
 0x41c   : > { %v2688_v5 = vpop.permute.xlu1 %2687  ;;  %v2875_v11 = vpop.permute.xlu0 %2874 }
 0x41d   : > { %v2698_v38 = vsel %vm2689_vm7, %v2686_v3, %v2688_v5  ;;  %v2886_v55 = vsel %vm6238_vm6, %v2873_v35, %v2875_v11  ;;  %v3410_v57 = vld [vmem:[#allocation2 + $0x5d8] sm:$0xff]  ;;  %vm6242_vm7 = vcmask 244736   ;;  %v4267_v5 = vld [vmem:[%s6190_s1] sm:$0xff] }
 0x41e   : > { %2716 = vst [vmem:[#allocation2 + $0x5e0] sm:$0xf] %v2698_v38  ;;  %2904 = vst [vmem:[#allocation2 + $0x620] sm:$0xf0] %v2886_v55 }
 0x41f   : > { %vm6243_vm12 = vmmov %vm6242_vm7 }
 0x420   : > { %v2814_v2 = vpop.permute.xlu1 %2813  ;;  %v2751_v39 = vpop.permute.xlu0 %2750  ;;  %vm6244_vm13 = vmmov %vm6242_vm7 }
 0x421   : > { %v2824_v10 = vsel %vm6239_vm5, %v2812_v6, %v2814_v2  ;;  %v2761_v43 = vsel %vm6240_vm3, %v2749_v29, %v2751_v39  ;;  %v3418_v62 = vld [vmem:[#allocation2 + $0x618] sm:$0xff]  ;;  %v4326_v6 = vmov 0.0  }
 0x422   : > { %2842 = vst [vmem:[#allocation2 + $0x628] sm:$0xf] %v2824_v10  ;;  %2779 = vst [vmem:[#allocation2 + $0x5e0] sm:$0xf0] %v2761_v43  ;;  %v4112_v49 = vpack.c.bf16 %v3418_v62, %v3409_v24 }
 0x424   : > { %v2936_v30 = vpop.permute.xlu1 %2935  ;;  %v2877_v63 = vpop.permute.xlu0 %2876 }
 0x425   : > { %v2948_v16 = vsel %vm2941_vm11, %v6004_v20, %v2936_v30  ;;  %v2887_v61 = vsel %vm6241_vm4, %v2875_v11, %v2877_v63  ;;  %v3419_v13 = vld [vmem:[#allocation2 + $0x620] sm:$0xff] }
 0x426   : > { %2966 = vst [vmem:[#allocation2 + $0x660] sm:$0xf] %v2948_v16  ;;  %2905 = vst [vmem:[#allocation2 + $0x628] sm:$0xf0] %v2887_v61  ;;  %v4110_v50 = vpack.c.bf16 %v3419_v13, %v3410_v57 }
 0x428   : > { %v2999_v44 = vpop.permute.xlu1 %2998  ;;  %v2938_v47 = vpop.permute.xlu0 %2937  ;;  %4111 = vmatprep.subr.bf16.mxu1 %v4110_v50 }
 0x429   : > { %v3011_v31 = vsel %vm3004_vm10, %v6013_v42, %v2999_v44  ;;  %v2949_v14 = vsel %vm2941_vm11, %v2936_v30, %v2938_v47  ;;  %4113 = vmatpush1.bf16.msra.mxu1 %v4112_v49  ;;  %v3411_v48 = vld [vmem:[#allocation2 + $0x5e0] sm:$0xff] }
 0x42a   : > { %3029 = vst [vmem:[#allocation2 + $0x660] sm:$0xf0] %v3011_v31  ;;  %2967 = vst [vmem:[#allocation2 + $0x668] sm:$0xf] %v2949_v14 }
 0x42c   : > { %v3062_v20 = vpop.permute.xlu1 %3061  ;;  %v3001_v59 = vpop.permute.xlu0 %3000 }
 0x42d   : > { %v3074_v36 = vsel %vm6242_vm7, %v6022_v32, %v3062_v20  ;;  %v3012_v1 = vsel %vm3004_vm10, %v2999_v44, %v3001_v59  ;;  %v3420_v25 = vld [vmem:[#allocation2 + $0x628] sm:$0xff] }
 0x42e   : > { %3092 = vst [vmem:[#allocation2 + $0x6a8] sm:$0xf] %v3074_v36  ;;  %3030 = vst [vmem:[#allocation2 + $0x668] sm:$0xf0] %v3012_v1  ;;  %v4149_v33 = vpack.c.bf16 %v3420_v25, %v3411_v48 }
 0x430   : > { %v3125_v56 = vpop.permute.xlu1 %3124  ;;  %v3064_v41 = vpop.permute.xlu0 %3063  ;;  %4150 = vmatpush1.bf16.msra.mxu0 %v4149_v33 }
 0x431   : > { %v3137_v42 = vsel %vm3130_vm8, %v6031_v58, %v3125_v56  ;;  %v3075_v51 = vsel %vm6243_vm12, %v3062_v20, %v3064_v41  ;;  %4151 = vmatprep.subr.bf16.mxu0 %v4325_v54  ;;  %v3427_v27 = vld [vmem:[#allocation2 + $0x660] sm:$0xff] }
 0x432   : > { %3155 = vst [vmem:[#allocation2 + $0x6a8] sm:$0xf0] %v3137_v42  ;;  %3093 = vst [vmem:[#allocation2 + $0x6b0] sm:$0xf] %v3075_v51 }
 0x434   : > { %v2940_v32 = vpop.permute.xlu1 %2939  ;;  %v3127_v21 = vpop.permute.xlu0 %3126 }
 0x435   : > { %v2950_v22 = vsel %vm2941_vm11, %v2938_v47, %v2940_v32  ;;  %v3138_v28 = vsel %vm3130_vm8, %v3125_v56, %v3127_v21  ;;  %v3428_v60 = vld [vmem:[#allocation2 + $0x668] sm:$0xff] }
 0x436   : > { %2968 = vst [vmem:[#allocation2 + $0x670] sm:$0xf] %v2950_v22  ;;  %3156 = vst [vmem:[#allocation2 + $0x6b0] sm:$0xf0] %v3138_v28 }
 0x438   : > { %v3066_v23 = vpop.permute.xlu1 %3065  ;;  %v3003_v26 = vpop.permute.xlu0 %3002 }
 0x439   : > { %v3076_v52 = vsel %vm6244_vm13, %v3064_v41, %v3066_v23  ;;  %v3013_v58 = vsel %vm3004_vm10, %v3001_v59, %v3003_v26  ;;  %v3436_v8 = vld [vmem:[#allocation2 + $0x6a8] sm:$0xff]  ;;  %vm6246_vm10 = vmmov %vm6245_vm14 }
 0x43a   : > { %3094 = vst [vmem:[#allocation2 + $0x6b8] sm:$0xf] %v3076_v52  ;;  %3031 = vst [vmem:[#allocation2 + $0x670] sm:$0xf0] %v3013_v58  ;;  %v4116_v17 = vpack.c.bf16 %v3436_v8, %v3427_v27 }
 0x43b   : > { %vm6247_vm11 = vmmov %vm6246_vm10 }
 0x43c   : > { %v3188_v46 = vpop.permute.xlu1 %3187  ;;  %v3129_v54 = vpop.permute.xlu0 %3128 }
 0x43d   : > { %v3200_v12 = vsel %vm6245_vm14, %v6047_v0, %v3188_v46  ;;  %v3139_v45 = vsel %vm3130_vm8, %v3127_v21, %v3129_v54  ;;  %v3437_v3 = vld [vmem:[#allocation2 + $0x6b0] sm:$0xff] }
 0x43e   : > { %3218 = vst [vmem:[#allocation2 + $0x6f0] sm:$0xf] %v3200_v12  ;;  %3157 = vst [vmem:[#allocation2 + $0x6b8] sm:$0xf0] %v3139_v45  ;;  %v4114_v9 = vpack.c.bf16 %v3437_v3, %v3428_v60 }
 0x440   : > { %v3192_v29 = vpop.permute.xlu1 %3191  ;;  %v3190_v53 = vpop.permute.xlu0 %3189  ;;  %4115 = vmatprep.subr.bf16.mxu1 %v4114_v9 }
 0x441   : > { %v3201_v15 = vsel %vm6246_vm10, %v3188_v46, %v3190_v53  ;;  %v3202_v7 = vsel %vm6247_vm11, %v3190_v53, %v3192_v29  ;;  %4117 = vmatpush1.bf16.msra.mxu1 %v4116_v17  ;;  %v3429_v0 = vld [vmem:[#allocation2 + $0x670] sm:$0xff] }
 0x442   : > { %3219 = vst [vmem:[#allocation2 + $0x6f8] sm:$0xf] %v3201_v15  ;;  %3220 = vst [vmem:[#allocation2 + $0x700] sm:$0xf] %v3202_v7 }
 0x445   : > { %v3438_v34 = vld [vmem:[#allocation2 + $0x6b8] sm:$0xff]  ;;  %v3445_v18 = vld [vmem:[#allocation2 + $0x6f0] sm:$0xf] }
 0x446   : > { %v4152_v40 = vpack.c.bf16 %v3438_v34, %v3429_v0 }
 0x448   : > { %4153 = vmatpush1.bf16.msra.mxu0 %v4152_v40 }
 0x449   : > { %v3446_v35 = vld [vmem:[#allocation2 + $0x6f8] sm:$0xf]  ;;  %3817 = vmatprep.subr.mxu0 %v4326_v6  ;;  %v3447_v19 = vld [vmem:[#allocation2 + $0x700] sm:$0xf] }
 0x44a   : > { %3919 = vmatprep.subr.msk.mxu1 %vm3457_vm9, %v3446_v35 }
 0x44b   : > { %3920 = vmatpush1.msk.msra.mxu1 %vm3457_vm9, %v3445_v18 }
 0x44c   : > { %3763 = vmatmul.mubr.f32.vlgmr.msra.gmra.mrb[2].mxu1 %v4267_v5  ;;  %3922 = vmatpush1.msk.msra.mxu0 %vm3457_vm9, %v3447_v19 }
 0x44d   : > { %3834 = vmatmul.mubr.f32.vlgmr.msra.gmra.mrb[4].mxu0 %v4267_v5 }
 0x454   : > { %v3452_v11 = vpop.permute.xlu0 %3451 }
 0x455   : > { %v3552_v38 = vadd.f32 %v6131_v37, %v3452_v11  ;;  %v3554_v55 = vadd.f32 %v6133_v4, %v3452_v11 }
 0x457   : > { %3839 = vst [vmem:[%s170_s30] sm:$0xff] %v3552_v38  ;;  %3840 = vst [vmem:[%s170_s30 + $0x8] sm:$0xff] %v3554_v55 }
 0x4a4   : > { %v3622_v2 = vpop.f32.mrb[0].mxu1 }
 0x4a5   : > { %v3623_v39 = vadd.f32 %v3622_v2, %v3452_v11  ;;  %v3624_v10 = vpop.f32.mrb[1].mxu1 }
 0x4a6   : > { %v3625_v43 = vadd.f32 %v3624_v10, %v3452_v11 }
 0x4a7   : > { %3841 = vst [vmem:[%s170_s30 + $0x10] sm:$0xff] %v3623_v39  ;;  %v3693_v30 = vpop.f32.mrb[2].mxu0 }
 0x4a8   : > { %3842 = vst [vmem:[%s170_s30 + $0x18] sm:$0xff] %v3625_v43  ;;  %v3694_v63 = vadd.f32 %v3693_v30, %v3452_v11  ;;  %v3695_v62 = vpop.f32.mrb[3].mxu0 }
 0x4a9   : > { %v3696_v16 = vadd.f32 %v3695_v62, %v3452_v11 }
 0x4aa   : > { %3843 = vst [vmem:[%s170_s30 + $0x20] sm:$0xff] %v3694_v63 }
 0x4ab   : > { %3844 = vst [vmem:[%s170_s30 + $0x28] sm:$0xff] %v3696_v16 }
 0x51f   : > { %v3764_v61 = vpop.f32.mrb[2].mxu1 }
 0x520   : > { %v3765_v57 = vadd.f32 %v3764_v61, %v3452_v11  ;;  %v3766_v13 = vpop.f32.mrb[3].mxu1  ;;  %v3835_v37 = vpop.f32.mrb[4].mxu0 }
 0x521   : > { %v3767_v50 = vadd.f32 %v3766_v13, %v3452_v11  ;;  %v3836_v4 = vadd.f32 %v3835_v37, %v3452_v11  ;;  %v3837_v24 = vpop.f32.mrb[5].mxu0 }
 0x522   : > { %3845 = vst [vmem:[%s170_s30 + $0x30] sm:$0xff] %v3765_v57 }
 0x523   : > { %3846 = vst [vmem:[%s170_s30 + $0x38] sm:$0xff] %v3767_v50  ;;  %3847 = vst [vmem:[%s170_s30 + $0x40] sm:$0xff] %v3836_v4 }
 0x524 PF: > { %s13_s12 = sadd.s32 1, %s4274_s12  }
 0x525   : > { %p10_p4 = scmp.ge.s32.totalorder %s13_s12, 4  }
 0x527   :  { %12 = sbr.rel (!%p10_p4) target bundleno = 1 (0x1), region = 62 }

</bundles_post_ra>
